<compile_context>
chip_gen: v7x
topology: tpu7x:2x2x1
jax: 0.10.0
libtpu: 0.0.40
codegen_flags: <defaults>
</compile_context>

<pallas_src>
import functools

import jax
import jax.numpy as jnp
from jax import lax
from jax.experimental import pallas as pl
from jax.experimental.pallas import tpu as pltpu


def _cg_kernel(b_ref, x0_ref, a_hbm_ref, out_ref, a_vmem, a_sem, *,
               max_iter, l2lam, eps, check_every):
    """Runs the whole batched conjugate-gradient loop in VMEM.

    b_ref, x0_ref, out_ref: (B_pad, N) float32 VMEM tiles
    a_hbm_ref:              (N, N) bfloat16 in HBM (memory_space=pl.ANY)
    a_vmem:                 (N, N) bfloat16 VMEM scratch (single resident copy of A)
    a_sem:                  DMA semaphore for the A copy
    """
    # Single HBM->VMEM copy of A, overlapped with the (tiny) b/x0 vreg loads.
    a_copy = pltpu.make_async_copy(a_hbm_ref, a_vmem, a_sem)
    a_copy.start()

    b = b_ref[...]
    x0 = x0_ref[...]
    eps_f = jnp.float32(eps)

    a_copy.wait()

    def Aop(v):
        # bf16 x bf16 MXU matmul with f32 accumulation; lane-dense (B_pad, N) output.
        out = jnp.dot(v.astype(jnp.bfloat16), a_vmem[...],
                      preferred_element_type=jnp.float32)
        if l2lam > 0:  # static python branch, mirrors `if l2lam > 0` in torch code
            out = out + jnp.float32(l2lam) * v
        return out

    def ip_batch(u, w):
        # torch.sum(u * w, dim=[1..]) -> keep as (B_pad, 1) for clean broadcasting
        return jnp.sum(u * w, axis=1, keepdims=True)

    def one_iter(x, r, p, rsold):
        Ap = Aop(p)
        pAp = ip_batch(p, Ap)
        # Guarded divisions: 0/0 -> 0 (converged / padded rows) instead of NaN.
        alpha = jnp.where(pAp > 0, rsold / pAp, jnp.float32(0.0))     # (B_pad, 1)
        x = x + alpha * p
        r = r - alpha * Ap
        rsnew = ip_batch(r, r)
        beta = jnp.where(rsold > 0, rsnew / rsold, jnp.float32(0.0))  # (B_pad, 1)
        p = beta * p + r
        return x, r, p, rsnew

    # r = b - (Aop(x) [+ l2lam * x])
    r0 = b - Aop(x0)
    p0 = r0
    rs0 = ip_batch(r0, r0)

    n_blocks = max_iter // check_every  # check_every divides max_iter by construction

    def cond(carry):
        blk, _x, _r, _p, _rs, rsmax = carry
        # torch: `if rsnew.max() < eps: break` (squared residual vs eps, as written)
        return jnp.logical_and(blk < n_blocks, rsmax >= eps_f)

    def body(carry):
        blk, x, r, p, rs, _ = carry
        for _ in range(check_every):     # fixed-trip, python-unrolled inner steps
            x, r, p, rs = one_iter(x, r, p, rs)
        # max-reduce only once per convergence check (not every CG step)
        return (blk + 1, x, r, p, rs, jnp.max(rs))

    init = (jnp.int32(0), x0, r0, p0, rs0, jnp.max(rs0))
    _, x, _, _, _, _ = lax.while_loop(cond, body, init)
    out_ref[...] = x


@functools.partial(jax.jit, static_argnames=("max_iter", "l2lam", "eps"))
def conjgrad_pallas(x, b, A_bf16, *, max_iter=20, l2lam=0.0, eps=1e-6):
    """x, b: (B, C, H, W) float32;  A_bf16: (N, N) SPD (bfloat16) with N = C*H*W."""
    B, C, H, W = x.shape
    N = C * H * W
    assert A_bf16.shape == (N, N)

    # Pad batch rows to a multiple of 8 sublanes (zero rows stay zero thanks to
    # the guarded divisions).  Stacking more independent solves along B is the
    # main throughput lever -- the per-iteration MXU weight push is amortized.
    B_pad = max(8, ((B + 7) // 8) * 8)
    x_flat = jnp.pad(x.reshape(B, N).astype(jnp.float32), ((0, B_pad - B), (0, 0)))
    b_flat = jnp.pad(b.reshape(B, N).astype(jnp.float32), ((0, B_pad - B), (0, 0)))

    check_every = 2 if (max_iter % 2 == 0 and max_iter >= 2) else 1

    kernel = functools.partial(_cg_kernel, max_iter=max_iter, l2lam=l2lam,
                               eps=eps, check_every=check_every)

    # Generation-aware VMEM budget: working set, capped at physical VMEM minus
    # ~16 MiB headroom (keeps larger A resident on v5e/v6e's 128 MiB, stays
    # under v7x's 64 MiB/TC).
    try:
        vmem_cap = int(pltpu.get_tpu_info().vmem_capacity_bytes)
    except Exception:  # pragma: no cover - conservative fallback
        vmem_cap = 64 << 20
    working = N * N * 2 + 16 * B_pad * N * 4 + (8 << 20)
    vmem_bytes = int(min(max(working, 16 << 20), max(vmem_cap - (16 << 20), 16 << 20)))

    cost = pl.CostEstimate(
        flops=2 * (max_iter + 1) * B_pad * N * N,
        transcendentals=0,
        bytes_accessed=N * N * 2 + 3 * B_pad * N * 4,
    )

    out_flat = pl.pallas_call(
        kernel,
        out_shape=jax.ShapeDtypeStruct((B_pad, N), jnp.float32),
        grid=(1,),
        in_specs=[
            pl.BlockSpec((B_pad, N), lambda i: (0, 0)),   # b
            pl.BlockSpec((B_pad, N), lambda i: (0, 0)),   # x0 (aliased to output)
            pl.BlockSpec(memory_space=pl.ANY),            # A: raw HBM ref, manual copy
        ],
        out_specs=pl.BlockSpec((B_pad, N), lambda i: (0, 0)),
        scratch_shapes=[pltpu.VMEM((N, N), jnp.bfloat16),
                        pltpu.SemaphoreType.DMA],
        input_output_aliases={1: 0},
        compiler_params=pltpu.CompilerParams(
            dimension_semantics=("arbitrary",),
            vmem_limit_bytes=vmem_bytes,
        ),
        cost_estimate=cost,
    )(b_flat, x_flat, A_bf16)

    return out_flat[:B].reshape(B, C, H, W)


class ConjGrad:
    """JAX/Pallas port of the torch ConjGrad module (A given as an SPD matrix)."""

    def __init__(self, b, A, max_iter=20, l2lam=0.0, eps=1e-6, verbose=False):
        self.b = jnp.asarray(b)
        self.A_bf16 = jnp.asarray(A, dtype=jnp.bfloat16)  # cast once, not per call
        self.max_iter = max_iter
        self.l2lam = float(l2lam)
        self.eps = float(eps)
        self.verbose = verbose  # TODO(synk): per-iteration verbose printing not ported

    def __call__(self, x):
        return conjgrad_pallas(x, self.b, self.A_bf16,
                               max_iter=self.max_iter,
                               l2lam=self.l2lam,
                               eps=self.eps)


# ---------------- pure-JAX reference (mirrors the torch code) ----------------
def _conjgrad_ref(x, b, A_bf16, max_iter, l2lam, eps):
    """Reference CG applying the same bf16 operator (f32 accumulation)."""
    B = x.shape[0]
    N = A_bf16.shape[0]
    xf = x.reshape(B, N).astype(jnp.float32)
    bf = b.reshape(B, N).astype(jnp.float32)

    def Aop(v):
        out = jnp.dot(v.astype(jnp.bfloat16), A_bf16,
                      preferred_element_type=jnp.float32)
        if l2lam > 0:
            out = out + l2lam * v
        return out

    r = bf - Aop(xf)
    p = r
    rsold = jnp.sum(r * r, axis=1)
    rsnew = rsold
    for _ in range(max_iter):
        if float(jnp.max(rsnew)) < eps:   # torch: rsnew.max() < eps
            break
        Ap = Aop(p)
        pAp = jnp.sum(p * Ap, axis=1)
        alpha = (rsold / pAp)[:, None]
        xf = xf + alpha * p
        r = r - alpha * Ap
        rsnew = jnp.sum(r * r, axis=1)
        beta = (rsnew / rsold)[:, None]
        rsold = rsnew
        p = beta * p + r
    return xf.reshape(x.shape)


if __name__ == "__main__":
    Bsz, C, H, W = 2, 4, 16, 16
    N = C * H * W

    key = jax.random.PRNGKey(0)
    k_x, k_b, k_m = jax.random.split(key, 3)

    x0 = jax.random.normal(k_x, (Bsz, C, H, W), dtype=jnp.float32)
    b = jax.random.normal(k_b, (Bsz, C, H, W), dtype=jnp.float32)

    # Deterministic SPD operator: A = M M^T / N + I  (well conditioned)
    M = jax.random.normal(k_m, (N, N), dtype=jnp.float32)
    A = (M @ M.T) / jnp.float32(N) + jnp.eye(N, dtype=jnp.float32)

    cg = ConjGrad(b, A, max_iter=20, l2lam=0.0, eps=1e-6, verbose=False)
    out = cg(x0)
    out = jax.block_until_ready(out)

    # Reference solves the identical bf16-quantized system (torch-style loop).
    ref = _conjgrad_ref(x0, b, A.astype(jnp.bfloat16), max_iter=20, l2lam=0.0, eps=1e-6)
    assert out.shape == x0.shape and out.dtype == jnp.float32
    err = float(jnp.max(jnp.abs(out - ref)) / (jnp.max(jnp.abs(ref)) + 1e-8))
    assert err < 1e-3, f"mismatch vs reference: rel err {err}"

    print("KERNEL_OK")
</pallas_src>

<mosaic_0001>
module attributes {stable_mosaic.version = 11 : i64} {
  func.func @_cg_kernel(%arg0: i32, %arg1: memref<8x1024xf32, #tpu.memory_space<vmem>>, %arg2: memref<8x1024xf32, #tpu.memory_space<vmem>>, %arg3: memref<1024x1024xbf16, #tpu.memory_space<any>>, %arg4: memref<8x1024xf32, #tpu.memory_space<vmem>>, %arg5: memref<1024x1024xbf16, #tpu.memory_space<vmem>>, %arg6: memref<!tpu.dma_semaphore, #tpu.memory_space<semaphore_mem>>) attributes {dimension_semantics = [#tpu.dimension_semantics<arbitrary>], iteration_bounds = array<i64: 1>, scalar_prefetch = 0 : i64, scratch_operands = 2 : i64, tpu.core_type = #tpu.core_type<tc>, window_params = [{pipeline_mode = #tpu.pipeline_mode<synchronous>, transform_indices = @transform_0, window_bounds = array<i64: 8, 1024>}, {pipeline_mode = #tpu.pipeline_mode<synchronous>, transform_indices = @transform_1, window_bounds = array<i64: 8, 1024>}, {}, {pipeline_mode = #tpu.pipeline_mode<synchronous>, transform_indices = @transform_3, window_bounds = array<i64: 8, 1024>}]} {
    tpu.enqueue_dma source(%arg3 : memref<1024x1024xbf16, #tpu.memory_space<any>>) target(%arg5 : memref<1024x1024xbf16, #tpu.memory_space<vmem>>) target_semaphore(%arg6 : memref<!tpu.dma_semaphore, #tpu.memory_space<semaphore_mem>>)
    %c0 = arith.constant 0 : index
    %c0_0 = arith.constant 0 : index
    %0 = vector.load %arg1[%c0, %c0_0] : memref<8x1024xf32, #tpu.memory_space<vmem>>, vector<8x1024xf32>
    %c0_1 = arith.constant 0 : index
    %c0_2 = arith.constant 0 : index
    %1 = vector.load %arg2[%c0_1, %c0_2] : memref<8x1024xf32, #tpu.memory_space<vmem>>, vector<8x1024xf32>
    tpu.wait_dma2 semaphore(%arg6 : memref<!tpu.dma_semaphore, #tpu.memory_space<semaphore_mem>>) src(%arg3 : memref<1024x1024xbf16, #tpu.memory_space<any>>) dst(%arg5 : memref<1024x1024xbf16, #tpu.memory_space<vmem>>)
    %2 = arith.truncf %1 : vector<8x1024xf32> to vector<8x1024xbf16>
    %c0_3 = arith.constant 0 : index
    %c0_4 = arith.constant 0 : index
    %3 = vector.load %arg5[%c0_3, %c0_4] : memref<1024x1024xbf16, #tpu.memory_space<vmem>>, vector<1024x1024xbf16>
    %cst = arith.constant dense<0.000000e+00> : vector<8x1024xf32>
    %4 = tpu.matmul %2, %3, %cst {dimension_numbers = #tpu.dot_dimension_numbers<[1], [0], [0], [1], [0, 0, 1, 1], [], []>} : vector<8x1024xbf16>, vector<1024x1024xbf16>, vector<8x1024xf32> -> vector<8x1024xf32>
    %5 = arith.subf %0, %4 : vector<8x1024xf32>
    %6 = arith.mulf %5, %5 : vector<8x1024xf32>
    %cst_5 = arith.constant dense<0.000000e+00> : vector<8xf32>
    %7 = vector.multi_reduction <add>, %6, %cst_5 [1] : vector<8x1024xf32> to vector<8xf32>
    %8 = vector.shape_cast %7 : vector<8xf32> to vector<8x1xf32>
    %9 = vector.shape_cast %8 : vector<8x1xf32> to vector<1x8x1xf32>
    %cst_6 = arith.constant dense<0xFF800000> : vector<1xf32>
    %10 = vector.multi_reduction <maximumf>, %9, %cst_6 [1, 2] : vector<1x8x1xf32> to vector<1xf32>
    %11 = vector.shape_cast %10 : vector<1xf32> to vector<1x1x1xf32>
    %12 = vector.extract %11[0, 0, 0] : f32 from vector<1x1x1xf32>
    %cst_7 = arith.constant 9.99999997E-7 : f32
    %c0_i32 = arith.constant 0 : i32
    %13:6 = scf.while (%arg7 = %c0_i32, %arg8 = %1, %arg9 = %5, %arg10 = %5, %arg11 = %8, %arg12 = %12) : (i32, vector<8x1024xf32>, vector<8x1024xf32>, vector<8x1024xf32>, vector<8x1xf32>, f32) -> (i32, vector<8x1024xf32>, vector<8x1024xf32>, vector<8x1024xf32>, vector<8x1xf32>, f32) {
      %c10_i32 = arith.constant 10 : i32
      %15 = arith.cmpi slt, %arg7, %c10_i32 : i32
      %16 = arith.cmpf oge, %arg12, %cst_7 : f32
      %17 = arith.andi %15, %16 : i1
      scf.condition(%17) %arg7, %arg8, %arg9, %arg10, %arg11, %arg12 : i32, vector<8x1024xf32>, vector<8x1024xf32>, vector<8x1024xf32>, vector<8x1xf32>, f32
    } do {
    ^bb0(%arg7: i32, %arg8: vector<8x1024xf32>, %arg9: vector<8x1024xf32>, %arg10: vector<8x1024xf32>, %arg11: vector<8x1xf32>, %arg12: f32):
      %15 = arith.truncf %arg10 : vector<8x1024xf32> to vector<8x1024xbf16>
      %c0_10 = arith.constant 0 : index
      %c0_11 = arith.constant 0 : index
      %16 = vector.load %arg5[%c0_10, %c0_11] : memref<1024x1024xbf16, #tpu.memory_space<vmem>>, vector<1024x1024xbf16>
      %cst_12 = arith.constant dense<0.000000e+00> : vector<8x1024xf32>
      %17 = tpu.matmul %15, %16, %cst_12 {dimension_numbers = #tpu.dot_dimension_numbers<[1], [0], [0], [1], [0, 0, 1, 1], [], []>} : vector<8x1024xbf16>, vector<1024x1024xbf16>, vector<8x1024xf32> -> vector<8x1024xf32>
      %18 = arith.mulf %arg10, %17 : vector<8x1024xf32>
      %cst_13 = arith.constant dense<0.000000e+00> : vector<8xf32>
      %19 = vector.multi_reduction <add>, %18, %cst_13 [1] : vector<8x1024xf32> to vector<8xf32>
      %20 = vector.shape_cast %19 : vector<8xf32> to vector<8x1xf32>
      %cst_14 = arith.constant 0.000000e+00 : f32
      %21 = vector.broadcast %cst_14 : f32 to vector<8x1xf32>
      %22 = arith.cmpf ogt, %20, %21 : vector<8x1xf32>
      %23 = arith.divf %arg11, %20 : vector<8x1xf32>
      %cst_15 = arith.constant 0.000000e+00 : f32
      %24 = vector.broadcast %cst_15 : f32 to vector<8x1xf32>
      %25 = arith.select %22, %23, %24 : vector<8x1xi1>, vector<8x1xf32>
      %26 = vector.broadcast %25 : vector<8x1xf32> to vector<8x1024xf32>
      %27 = arith.mulf %26, %arg10 : vector<8x1024xf32>
      %28 = arith.addf %arg8, %27 : vector<8x1024xf32>
      %29 = vector.broadcast %25 : vector<8x1xf32> to vector<8x1024xf32>
      %30 = arith.mulf %29, %17 : vector<8x1024xf32>
      %31 = arith.subf %arg9, %30 : vector<8x1024xf32>
      %32 = arith.mulf %31, %31 : vector<8x1024xf32>
      %cst_16 = arith.constant dense<0.000000e+00> : vector<8xf32>
      %33 = vector.multi_reduction <add>, %32, %cst_16 [1] : vector<8x1024xf32> to vector<8xf32>
      %34 = vector.shape_cast %33 : vector<8xf32> to vector<8x1xf32>
      %cst_17 = arith.constant 0.000000e+00 : f32
      %35 = vector.broadcast %cst_17 : f32 to vector<8x1xf32>
      %36 = arith.cmpf ogt, %arg11, %35 : vector<8x1xf32>
      %37 = arith.divf %34, %arg11 : vector<8x1xf32>
      %cst_18 = arith.constant 0.000000e+00 : f32
      %38 = vector.broadcast %cst_18 : f32 to vector<8x1xf32>
      %39 = arith.select %36, %37, %38 : vector<8x1xi1>, vector<8x1xf32>
      %40 = vector.broadcast %39 : vector<8x1xf32> to vector<8x1024xf32>
      %41 = arith.mulf %40, %arg10 : vector<8x1024xf32>
      %42 = arith.addf %41, %31 : vector<8x1024xf32>
      %43 = arith.truncf %42 : vector<8x1024xf32> to vector<8x1024xbf16>
      %c0_19 = arith.constant 0 : index
      %c0_20 = arith.constant 0 : index
      %44 = vector.load %arg5[%c0_19, %c0_20] : memref<1024x1024xbf16, #tpu.memory_space<vmem>>, vector<1024x1024xbf16>
      %cst_21 = arith.constant dense<0.000000e+00> : vector<8x1024xf32>
      %45 = tpu.matmul %43, %44, %cst_21 {dimension_numbers = #tpu.dot_dimension_numbers<[1], [0], [0], [1], [0, 0, 1, 1], [], []>} : vector<8x1024xbf16>, vector<1024x1024xbf16>, vector<8x1024xf32> -> vector<8x1024xf32>
      %46 = arith.mulf %42, %45 : vector<8x1024xf32>
      %cst_22 = arith.constant dense<0.000000e+00> : vector<8xf32>
      %47 = vector.multi_reduction <add>, %46, %cst_22 [1] : vector<8x1024xf32> to vector<8xf32>
      %48 = vector.shape_cast %47 : vector<8xf32> to vector<8x1xf32>
      %cst_23 = arith.constant 0.000000e+00 : f32
      %49 = vector.broadcast %cst_23 : f32 to vector<8x1xf32>
      %50 = arith.cmpf ogt, %48, %49 : vector<8x1xf32>
      %51 = arith.divf %34, %48 : vector<8x1xf32>
      %cst_24 = arith.constant 0.000000e+00 : f32
      %52 = vector.broadcast %cst_24 : f32 to vector<8x1xf32>
      %53 = arith.select %50, %51, %52 : vector<8x1xi1>, vector<8x1xf32>
      %54 = vector.broadcast %53 : vector<8x1xf32> to vector<8x1024xf32>
      %55 = arith.mulf %54, %42 : vector<8x1024xf32>
      %56 = arith.addf %28, %55 : vector<8x1024xf32>
      %57 = vector.broadcast %53 : vector<8x1xf32> to vector<8x1024xf32>
      %58 = arith.mulf %57, %45 : vector<8x1024xf32>
      %59 = arith.subf %31, %58 : vector<8x1024xf32>
      %60 = arith.mulf %59, %59 : vector<8x1024xf32>
      %cst_25 = arith.constant dense<0.000000e+00> : vector<8xf32>
      %61 = vector.multi_reduction <add>, %60, %cst_25 [1] : vector<8x1024xf32> to vector<8xf32>
      %62 = vector.shape_cast %61 : vector<8xf32> to vector<8x1xf32>
      %cst_26 = arith.constant 0.000000e+00 : f32
      %63 = vector.broadcast %cst_26 : f32 to vector<8x1xf32>
      %64 = arith.cmpf ogt, %34, %63 : vector<8x1xf32>
      %65 = arith.divf %62, %34 : vector<8x1xf32>
      %cst_27 = arith.constant 0.000000e+00 : f32
      %66 = vector.broadcast %cst_27 : f32 to vector<8x1xf32>
      %67 = arith.select %64, %65, %66 : vector<8x1xi1>, vector<8x1xf32>
      %68 = vector.broadcast %67 : vector<8x1xf32> to vector<8x1024xf32>
      %69 = arith.mulf %68, %42 : vector<8x1024xf32>
      %70 = arith.addf %69, %59 : vector<8x1024xf32>
      %c1_i32 = arith.constant 1 : i32
      %71 = arith.addi %arg7, %c1_i32 : i32
      %72 = vector.shape_cast %62 : vector<8x1xf32> to vector<1x8x1xf32>
      %cst_28 = arith.constant dense<0xFF800000> : vector<1xf32>
      %73 = vector.multi_reduction <maximumf>, %72, %cst_28 [1, 2] : vector<1x8x1xf32> to vector<1xf32>
      %74 = vector.shape_cast %73 : vector<1xf32> to vector<1x1x1xf32>
      %75 = vector.extract %74[0, 0, 0] : f32 from vector<1x1x1xf32>
      scf.yield %71, %56, %59, %70, %62, %75 : i32, vector<8x1024xf32>, vector<8x1024xf32>, vector<8x1024xf32>, vector<8x1xf32>, f32
    }
    %c0_8 = arith.constant 0 : index
    %c0_9 = arith.constant 0 : index
    %14 = vector.load %arg4[%c0_8, %c0_9] : memref<8x1024xf32, #tpu.memory_space<vmem>>, vector<8x1024xf32>
    tpu.vector_store %arg4[%c0_8, %c0_9], %13#1 {strides = array<i32>} : memref<8x1024xf32, #tpu.memory_space<vmem>>, vector<8x1024xf32>,
    return
  }
  func.func @transform_0(%arg0: i32) -> (i32, i32) {
    %c0_i32 = arith.constant 0 : i32
    %c0_i32_0 = arith.constant 0 : i32
    %c0_i32_1 = arith.constant 0 : i32
    return %c0_i32, %c0_i32_0 : i32, i32
  }
  func.func @transform_1(%arg0: i32) -> (i32, i32) {
    %c0_i32 = arith.constant 0 : i32
    %c0_i32_0 = arith.constant 0 : i32
    %c0_i32_1 = arith.constant 0 : i32
    return %c0_i32, %c0_i32_0 : i32, i32
  }
  func.func @transform_3(%arg0: i32) -> (i32, i32) {
    %c0_i32 = arith.constant 0 : i32
    %c0_i32_0 = arith.constant 0 : i32
    %c0_i32_1 = arith.constant 0 : i32
    return %c0_i32, %c0_i32_0 : i32, i32
  }
}

</mosaic_0001>

<bundles_post_ra>
// kernel: conjgrad_pallas.1
= control target key start
LH: loop header
LB: loop body
LE: loop exit
PB: predicated region body
PF: predicated region fallthrough
CT: control target
= control target key end

     0   :  { %s16_s12 = sld [smem:[#allocation0]]   ;;  %s4666_s13 = smov [#allocation2]   ;;  %s5552_s0 = inlined_call_operand.vmem [shape: f32[8,1024], index: 0, kind: input, shape index: {}]   ;;  %s5553_s1 = inlined_call_operand.vmem [shape: f32[8,1024], index: 1, kind: input, shape index: {}, may-alias: {1,3}]   ;;  %s5554_s2 = inlined_call_operand.hbm [shape: bf16[1024,1024], index: 2, kind: input, shape index: {}]   ;;  %s5555_s3 = inlined_call_operand.vmem [shape: f32[8,1024], index: 3, kind: output, shape index: {}, may-alias: {1,3}]  }
   0x1   :  { %s24_s14 = sshll.u32 %s4666_s13, 4  ;;  %s4667_s15 = smov 1024   ;;  %s25_s14 = int_to_ptr.vmem [resolvable:$true] %s24_s14 }
   0x2   :  { %28 = sst [smem:[#allocation5]] %s4667_s15  ;;  %s4668_s16 = smov 8  }
   0x3   :  { %30 = sst [smem:[#allocation5 + $0x1]] %s4667_s15  ;;  %s4669_s17 = smov 64  }
   0x4   :  { %32 = sst [smem:[#allocation5 + $0x2]] %s4668_s16  ;;  %s4670_s19 = smov 128  }
   0x5   :  { %34 = sst [smem:[#allocation5 + $0x3]] %s4669_s17  ;;  %s4671_s21 = smov 2  }
   0x6   :  { %s3438_s18 = sshll.u32 %s16_s12, 26  ;;  %36 = sst [smem:[#allocation5 + $0x4]] %s4670_s19 }
   0x7   :  { %s3439_s20 = sadd.s32 134217728, %s3438_s18  ;;  %38 = sst [smem:[#allocation5 + $0x5]] %s4671_s21 }
   0x8   :  { %s4672_s22 = smov 512   ;;  %42 = sst [smem:[#allocation5 + $0x7]] %s4669_s17 }
   0x9   :  { %40 = sst [smem:[#allocation5 + $0x6]] %s4672_s22  ;;  %s4673_s23 = smov 4  }
   0xa   :  { %44 = sst [smem:[#allocation5 + $0x8]] %s4673_s23  ;;  %s4674_s24 = smov [#allocation3]  }
   0xb   :  { %s4675_s25 = smov [#allocation4]  }
   0xc   :  { %46 = dma.general %s5554_s2, 65536, %s25_s14, %s4674_s24, %s4675_s25, [#allocation5], %s3439_s20, 0  }
   0xd   :  { %v4702_v0 = vld [vmem:[%s5552_s0] sm:$0xff]  ;;  %v4707_v1 = vld [vmem:[%s5552_s0 + $0x8] sm:$0xff]  ;;  %v4712_v2 = vld [vmem:[%s5552_s0 + $0x10] sm:$0xff] }
   0xe   :  { %v4717_v3 = vld [vmem:[%s5552_s0 + $0x18] sm:$0xff]  ;;  %v4722_v4 = vld [vmem:[%s5552_s0 + $0x20] sm:$0xff]  ;;  %v4727_v5 = vld [vmem:[%s5552_s0 + $0x28] sm:$0xff] }
   0xf   :  { %v4732_v6 = vld [vmem:[%s5552_s0 + $0x30] sm:$0xff]  ;;  %v4737_v7 = vld [vmem:[%s5552_s0 + $0x38] sm:$0xff]  ;;  %v4742_v8 = vld [vmem:[%s5553_s1] sm:$0xff]  }
  0x10   :  { %v4747_v9 = vld [vmem:[%s5553_s1 + $0x8] sm:$0xff]   ;;  %v4752_v10 = vld [vmem:[%s5553_s1 + $0x10] sm:$0xff]   ;;  %v4757_v11 = vld [vmem:[%s5553_s1 + $0x18] sm:$0xff]  }
  0x11   :  { %v4762_v12 = vld [vmem:[%s5553_s1 + $0x20] sm:$0xff]   ;;  %v4767_v13 = vld [vmem:[%s5553_s1 + $0x28] sm:$0xff]   ;;  %v4772_v14 = vld [vmem:[%s5553_s1 + $0x30] sm:$0xff]  }
  0x12   :  { %v4777_v15 = vld [vmem:[%s5553_s1 + $0x38] sm:$0xff]  }
  0x13   :  { %4528 = dma.done.wait [#allocation3], 65536 }
  0x14   :  { %4529 = vsyncadd [#allocation3], 4294901760  ;;  %v4781_v16 = vpack.c.bf16 %v4747_v9, %v4747_v9  ;;  %v76_v17 = vld [vmem:[#allocation2 + $0x8] sm:$0xff]  ;;  %v78_v18 = vld [vmem:[#allocation2 + $0x18] sm:$0xff] }
  0x15   :  { %v75_v19 = vld [vmem:[#allocation2] sm:$0xff]  ;;  %587 = vmatprep.subr.bf16.mxu0 %v76_v17  ;;  %751 = vmatprep.subr.bf16.mxu1 %v78_v18  ;;  %v77_v20 = vld [vmem:[#allocation2 + $0x10] sm:$0xff]  ;;  %v84_v21 = vld [vmem:[#allocation2 + $0x48] sm:$0xff] }
  0x16   :  { %619 = vmatprep.mubr.bf16.mxu0 %v4781_v16  ;;  %783 = vmatprep.mubr.bf16.mxu1 %v4781_v16  ;;  %v86_v22 = vld [vmem:[#allocation2 + $0x58] sm:$0xff]  ;;  %v83_v23 = vld [vmem:[#allocation2 + $0x40] sm:$0xff]  ;;  %v85_v24 = vld [vmem:[#allocation2 + $0x50] sm:$0xff] }
  0x17   :  { %588 = vmatpush1.bf16.msra.mxu0 %v75_v19  ;;  %752 = vmatpush1.bf16.msra.mxu1 %v77_v20  ;;  %v92_v25 = vld [vmem:[#allocation2 + $0x88] sm:$0xff]  ;;  %v94_v26 = vld [vmem:[#allocation2 + $0x98] sm:$0xff]  ;;  %v91_v27 = vld [vmem:[#allocation2 + $0x80] sm:$0xff] }
  0x18   :  { %589 = vmatprep.subr.bf16.mxu0 %v84_v21  ;;  %753 = vmatprep.subr.bf16.mxu1 %v86_v22  ;;  %v93_v28 = vld [vmem:[#allocation2 + $0x90] sm:$0xff]  ;;  %v100_v29 = vld [vmem:[#allocation2 + $0xc8] sm:$0xff]  ;;  %v102_v30 = vld [vmem:[#allocation2 + $0xd8] sm:$0xff] }
  0x19   :  { %v99_v31 = vld [vmem:[#allocation2 + $0xc0] sm:$0xff]  ;;  %v101_v32 = vld [vmem:[#allocation2 + $0xd0] sm:$0xff]  ;;  %v108_v33 = vld [vmem:[#allocation2 + $0x108] sm:$0xff] }
  0x1a   :  { %v110_v34 = vld [vmem:[#allocation2 + $0x118] sm:$0xff]  ;;  %v107_v35 = vld [vmem:[#allocation2 + $0x100] sm:$0xff]  ;;  %v109_v36 = vld [vmem:[#allocation2 + $0x110] sm:$0xff] }
  0x1b   :  { %590 = vmatpush1.bf16.msra.mxu0 %v83_v23  ;;  %754 = vmatpush1.bf16.msra.mxu1 %v85_v24  ;;  %v116_v37 = vld [vmem:[#allocation2 + $0x148] sm:$0xff]  ;;  %v118_v38 = vld [vmem:[#allocation2 + $0x158] sm:$0xff]  ;;  %v115_v39 = vld [vmem:[#allocation2 + $0x140] sm:$0xff] }
  0x1c   :  { %591 = vmatprep.subr.bf16.mxu0 %v92_v25  ;;  %755 = vmatprep.subr.bf16.mxu1 %v94_v26  ;;  %v117_v40 = vld [vmem:[#allocation2 + $0x150] sm:$0xff]  ;;  %v124_v41 = vld [vmem:[#allocation2 + $0x188] sm:$0xff]  ;;  %v126_v42 = vld [vmem:[#allocation2 + $0x198] sm:$0xff] }
  0x1d   :  { %v123_v43 = vld [vmem:[#allocation2 + $0x180] sm:$0xff]  ;;  %v125_v44 = vld [vmem:[#allocation2 + $0x190] sm:$0xff]  ;;  %v132_v45 = vld [vmem:[#allocation2 + $0x1c8] sm:$0xff] }
  0x1e   :  { %v134_v46 = vld [vmem:[#allocation2 + $0x1d8] sm:$0xff]  ;;  %v131_v47 = vld [vmem:[#allocation2 + $0x1c0] sm:$0xff]  ;;  %v133_v48 = vld [vmem:[#allocation2 + $0x1d0] sm:$0xff] }
  0x1f   :  { %592 = vmatpush1.bf16.msra.mxu0 %v91_v27  ;;  %756 = vmatpush1.bf16.msra.mxu1 %v93_v28  ;;  %v140_v49 = vld [vmem:[#allocation2 + $0x208] sm:$0xff]  ;;  %v142_v50 = vld [vmem:[#allocation2 + $0x218] sm:$0xff]  ;;  %v139_v51 = vld [vmem:[#allocation2 + $0x200] sm:$0xff] }
  0x20   :  { %593 = vmatprep.subr.bf16.mxu0 %v100_v29  ;;  %757 = vmatprep.subr.bf16.mxu1 %v102_v30  ;;  %v141_v52 = vld [vmem:[#allocation2 + $0x210] sm:$0xff]  ;;  %v148_v53 = vld [vmem:[#allocation2 + $0x248] sm:$0xff]  ;;  %v150_v54 = vld [vmem:[#allocation2 + $0x258] sm:$0xff] }
  0x21   :  { %v147_v55 = vld [vmem:[#allocation2 + $0x240] sm:$0xff]  ;;  %v149_v56 = vld [vmem:[#allocation2 + $0x250] sm:$0xff]  ;;  %v156_v57 = vld [vmem:[#allocation2 + $0x288] sm:$0xff] }
  0x22   :  { %v158_v58 = vld [vmem:[#allocation2 + $0x298] sm:$0xff]  ;;  %v155_v59 = vld [vmem:[#allocation2 + $0x280] sm:$0xff]  ;;  %v157_v60 = vld [vmem:[#allocation2 + $0x290] sm:$0xff] }
  0x23   :  { %594 = vmatpush1.bf16.msra.mxu0 %v99_v31  ;;  %758 = vmatpush1.bf16.msra.mxu1 %v101_v32  ;;  %v164_v61 = vld [vmem:[#allocation2 + $0x2c8] sm:$0xff]  ;;  %v166_v62 = vld [vmem:[#allocation2 + $0x2d8] sm:$0xff]  ;;  %v163_v63 = vld [vmem:[#allocation2 + $0x2c0] sm:$0xff] }
  0x24   :  { %595 = vmatprep.subr.bf16.mxu0 %v108_v33  ;;  %759 = vmatprep.subr.bf16.mxu1 %v110_v34  ;;  %v165_v17 = vld [vmem:[#allocation2 + $0x2d0] sm:$0xff]  ;;  %v172_v18 = vld [vmem:[#allocation2 + $0x308] sm:$0xff]  ;;  %v174_v19 = vld [vmem:[#allocation2 + $0x318] sm:$0xff] }
  0x25   :  { %v171_v20 = vld [vmem:[#allocation2 + $0x300] sm:$0xff]  ;;  %v173_v21 = vld [vmem:[#allocation2 + $0x310] sm:$0xff]  ;;  %v180_v22 = vld [vmem:[#allocation2 + $0x348] sm:$0xff] }
  0x26   :  { %v182_v23 = vld [vmem:[#allocation2 + $0x358] sm:$0xff]  ;;  %v179_v24 = vld [vmem:[#allocation2 + $0x340] sm:$0xff]  ;;  %v181_v25 = vld [vmem:[#allocation2 + $0x350] sm:$0xff] }
  0x27   :  { %596 = vmatpush1.bf16.msra.mxu0 %v107_v35  ;;  %760 = vmatpush1.bf16.msra.mxu1 %v109_v36  ;;  %v188_v26 = vld [vmem:[#allocation2 + $0x388] sm:$0xff]  ;;  %v190_v27 = vld [vmem:[#allocation2 + $0x398] sm:$0xff]  ;;  %v187_v28 = vld [vmem:[#allocation2 + $0x380] sm:$0xff]  ;;  %v4787_v36 = vpack.c.bf16 %v4742_v8, %v4742_v8 }
  0x28   :  { %597 = vmatprep.subr.bf16.mxu0 %v116_v37  ;;  %761 = vmatprep.subr.bf16.mxu1 %v118_v38  ;;  %v189_v29 = vld [vmem:[#allocation2 + $0x390] sm:$0xff]  ;;  %v196_v30 = vld [vmem:[#allocation2 + $0x3c8] sm:$0xff]  ;;  %v198_v31 = vld [vmem:[#allocation2 + $0x3d8] sm:$0xff] }
  0x29   :  { %v195_v32 = vld [vmem:[#allocation2 + $0x3c0] sm:$0xff]  ;;  %v197_v33 = vld [vmem:[#allocation2 + $0x3d0] sm:$0xff]  ;;  %v204_v34 = vld [vmem:[#allocation2 + $0x408] sm:$0xff] }
  0x2a   :  { %v206_v35 = vld [vmem:[#allocation2 + $0x418] sm:$0xff]  ;;  %v203_v37 = vld [vmem:[#allocation2 + $0x400] sm:$0xff]  ;;  %v205_v38 = vld [vmem:[#allocation2 + $0x410] sm:$0xff] }
  0x2b   :  { %598 = vmatpush1.bf16.msra.mxu0 %v115_v39  ;;  %762 = vmatpush1.bf16.msra.mxu1 %v117_v40  ;;  %v212_v39 = vld [vmem:[#allocation2 + $0x448] sm:$0xff]  ;;  %v214_v40 = vld [vmem:[#allocation2 + $0x458] sm:$0xff] }
  0x2c   :  { %599 = vmatprep.subr.bf16.mxu0 %v124_v41  ;;  %763 = vmatprep.subr.bf16.mxu1 %v126_v42  ;;  %v4791_v41 = vpack.c.bf16 %v4757_v11, %v4757_v11  ;;  %v211_v42 = vld [vmem:[#allocation2 + $0x440] sm:$0xff] }
  0x2f   :  { %600 = vmatpush1.bf16.msra.mxu0 %v123_v43  ;;  %764 = vmatpush1.bf16.msra.mxu1 %v125_v44  ;;  %v213_v43 = vld [vmem:[#allocation2 + $0x450] sm:$0xff]  ;;  %v220_v44 = vld [vmem:[#allocation2 + $0x488] sm:$0xff] }
  0x30   :  { %601 = vmatprep.subr.bf16.mxu0 %v132_v45  ;;  %765 = vmatprep.subr.bf16.mxu1 %v134_v46  ;;  %v222_v45 = vld [vmem:[#allocation2 + $0x498] sm:$0xff]  ;;  %v219_v46 = vld [vmem:[#allocation2 + $0x480] sm:$0xff] }
  0x33   :  { %602 = vmatpush1.bf16.msra.mxu0 %v131_v47  ;;  %766 = vmatpush1.bf16.msra.mxu1 %v133_v48  ;;  %v221_v47 = vld [vmem:[#allocation2 + $0x490] sm:$0xff]  ;;  %v228_v48 = vld [vmem:[#allocation2 + $0x4c8] sm:$0xff] }
  0x34   :  { %603 = vmatprep.subr.bf16.mxu0 %v140_v49  ;;  %767 = vmatprep.subr.bf16.mxu1 %v142_v50  ;;  %v230_v49 = vld [vmem:[#allocation2 + $0x4d8] sm:$0xff]  ;;  %v227_v50 = vld [vmem:[#allocation2 + $0x4c0] sm:$0xff] }
  0x37   :  { %604 = vmatpush1.bf16.msra.mxu0 %v139_v51  ;;  %768 = vmatpush1.bf16.msra.mxu1 %v141_v52  ;;  %v229_v51 = vld [vmem:[#allocation2 + $0x4d0] sm:$0xff]  ;;  %v236_v52 = vld [vmem:[#allocation2 + $0x508] sm:$0xff] }
  0x38   :  { %605 = vmatprep.subr.bf16.mxu0 %v148_v53  ;;  %769 = vmatprep.subr.bf16.mxu1 %v150_v54  ;;  %v238_v53 = vld [vmem:[#allocation2 + $0x518] sm:$0xff]  ;;  %v235_v54 = vld [vmem:[#allocation2 + $0x500] sm:$0xff] }
  0x3b   :  { %606 = vmatpush1.bf16.msra.mxu0 %v147_v55  ;;  %770 = vmatpush1.bf16.msra.mxu1 %v149_v56  ;;  %v237_v55 = vld [vmem:[#allocation2 + $0x510] sm:$0xff]  ;;  %v244_v56 = vld [vmem:[#allocation2 + $0x548] sm:$0xff] }
  0x3c   :  { %607 = vmatprep.subr.bf16.mxu0 %v156_v57  ;;  %771 = vmatprep.subr.bf16.mxu1 %v158_v58  ;;  %v246_v57 = vld [vmem:[#allocation2 + $0x558] sm:$0xff]  ;;  %v243_v58 = vld [vmem:[#allocation2 + $0x540] sm:$0xff] }
  0x3f   :  { %608 = vmatpush1.bf16.msra.mxu0 %v155_v59  ;;  %772 = vmatpush1.bf16.msra.mxu1 %v157_v60  ;;  %v245_v59 = vld [vmem:[#allocation2 + $0x550] sm:$0xff]  ;;  %v252_v60 = vld [vmem:[#allocation2 + $0x588] sm:$0xff] }
  0x40   :  { %609 = vmatprep.subr.bf16.mxu0 %v164_v61  ;;  %773 = vmatprep.subr.bf16.mxu1 %v166_v62  ;;  %v254_v61 = vld [vmem:[#allocation2 + $0x598] sm:$0xff]  ;;  %v251_v62 = vld [vmem:[#allocation2 + $0x580] sm:$0xff] }
  0x43   :  { %610 = vmatpush1.bf16.msra.mxu0 %v163_v63  ;;  %774 = vmatpush1.bf16.msra.mxu1 %v165_v17  ;;  %v253_v63 = vld [vmem:[#allocation2 + $0x590] sm:$0xff]  ;;  %v260_v17 = vld [vmem:[#allocation2 + $0x5c8] sm:$0xff] }
  0x44   :  { %611 = vmatprep.subr.bf16.mxu0 %v172_v18  ;;  %775 = vmatprep.subr.bf16.mxu1 %v174_v19  ;;  %v262_v18 = vld [vmem:[#allocation2 + $0x5d8] sm:$0xff]  ;;  %v259_v19 = vld [vmem:[#allocation2 + $0x5c0] sm:$0xff] }
  0x47   :  { %612 = vmatpush1.bf16.msra.mxu0 %v171_v20  ;;  %776 = vmatpush1.bf16.msra.mxu1 %v173_v21  ;;  %v261_v20 = vld [vmem:[#allocation2 + $0x5d0] sm:$0xff]  ;;  %v268_v21 = vld [vmem:[#allocation2 + $0x608] sm:$0xff] }
  0x48   :  { %613 = vmatprep.subr.bf16.mxu0 %v180_v22  ;;  %777 = vmatprep.subr.bf16.mxu1 %v182_v23  ;;  %v270_v22 = vld [vmem:[#allocation2 + $0x618] sm:$0xff]  ;;  %v267_v23 = vld [vmem:[#allocation2 + $0x600] sm:$0xff] }
  0x4b   :  { %614 = vmatpush1.bf16.msra.mxu0 %v179_v24  ;;  %778 = vmatpush1.bf16.msra.mxu1 %v181_v25  ;;  %v269_v24 = vld [vmem:[#allocation2 + $0x610] sm:$0xff]  ;;  %v276_v25 = vld [vmem:[#allocation2 + $0x648] sm:$0xff] }
  0x4c   :  { %615 = vmatprep.subr.bf16.mxu0 %v188_v26  ;;  %779 = vmatprep.subr.bf16.mxu1 %v190_v27  ;;  %v278_v26 = vld [vmem:[#allocation2 + $0x658] sm:$0xff]  ;;  %v275_v27 = vld [vmem:[#allocation2 + $0x640] sm:$0xff] }
  0x4f   :  { %616 = vmatpush1.bf16.msra.mxu0 %v187_v28  ;;  %780 = vmatpush1.bf16.msra.mxu1 %v189_v29  ;;  %v277_v28 = vld [vmem:[#allocation2 + $0x650] sm:$0xff]  ;;  %v284_v29 = vld [vmem:[#allocation2 + $0x688] sm:$0xff] }
  0x50   :  { %617 = vmatprep.subr.bf16.mxu0 %v196_v30  ;;  %781 = vmatprep.subr.bf16.mxu1 %v198_v31  ;;  %v286_v30 = vld [vmem:[#allocation2 + $0x698] sm:$0xff]  ;;  %v283_v31 = vld [vmem:[#allocation2 + $0x680] sm:$0xff] }
  0x53   :  { %618 = vmatpush1.bf16.msra.mxu0 %v195_v32  ;;  %782 = vmatpush1.bf16.msra.mxu1 %v197_v33  ;;  %v285_v32 = vld [vmem:[#allocation2 + $0x690] sm:$0xff]  ;;  %v292_v33 = vld [vmem:[#allocation2 + $0x6c8] sm:$0xff] }
  0x54   :  { %628 = vmatprep.subr.bf16.mxu0 %v204_v34  ;;  %792 = vmatprep.subr.bf16.mxu1 %v206_v35  ;;  %v294_v34 = vld [vmem:[#allocation2 + $0x6d8] sm:$0xff]  ;;  %v291_v35 = vld [vmem:[#allocation2 + $0x6c0] sm:$0xff] }
  0x56   :  { %620 = vmatmul.mubr.bf16.vlgmr.msra.gmra.mrb[0].mxu0 %v4787_v36  ;;  %784 = vmatmul.mubr.bf16.vlgmr.msra.gmra.mrb[0].mxu1 %v4787_v36 }
  0x57   :  { %629 = vmatpush1.bf16.msra.mxu0 %v203_v37  ;;  %793 = vmatpush1.bf16.msra.mxu1 %v205_v38  ;;  %v293_v37 = vld [vmem:[#allocation2 + $0x6d0] sm:$0xff]  ;;  %v300_v38 = vld [vmem:[#allocation2 + $0x708] sm:$0xff] }
  0x58   :  { %630 = vmatprep.subr.bf16.mxu0 %v212_v39  ;;  %794 = vmatprep.subr.bf16.mxu1 %v214_v40  ;;  %v302_v39 = vld [vmem:[#allocation2 + $0x718] sm:$0xff]  ;;  %v299_v40 = vld [vmem:[#allocation2 + $0x700] sm:$0xff] }
  0x59   :  { %660 = vmatprep.mubr.bf16.mxu0 %v4791_v41  ;;  %824 = vmatprep.mubr.bf16.mxu1 %v4791_v41 }
  0x5b   :  { %631 = vmatpush1.bf16.msra.mxu0 %v211_v42  ;;  %795 = vmatpush1.bf16.msra.mxu1 %v213_v43  ;;  %v301_v42 = vld [vmem:[#allocation2 + $0x710] sm:$0xff]  ;;  %v308_v43 = vld [vmem:[#allocation2 + $0x748] sm:$0xff] }
  0x5c   :  { %632 = vmatprep.subr.bf16.mxu0 %v220_v44  ;;  %796 = vmatprep.subr.bf16.mxu1 %v222_v45  ;;  %v310_v44 = vld [vmem:[#allocation2 + $0x758] sm:$0xff]  ;;  %v307_v45 = vld [vmem:[#allocation2 + $0x740] sm:$0xff] }
  0x5f   :  { %633 = vmatpush1.bf16.msra.mxu0 %v219_v46  ;;  %797 = vmatpush1.bf16.msra.mxu1 %v221_v47  ;;  %v309_v46 = vld [vmem:[#allocation2 + $0x750] sm:$0xff]  ;;  %v316_v47 = vld [vmem:[#allocation2 + $0x788] sm:$0xff] }
  0x60   :  { %634 = vmatprep.subr.bf16.mxu0 %v228_v48  ;;  %798 = vmatprep.subr.bf16.mxu1 %v230_v49  ;;  %v318_v48 = vld [vmem:[#allocation2 + $0x798] sm:$0xff]  ;;  %v315_v49 = vld [vmem:[#allocation2 + $0x780] sm:$0xff] }
  0x63   :  { %635 = vmatpush1.bf16.msra.mxu0 %v227_v50  ;;  %799 = vmatpush1.bf16.msra.mxu1 %v229_v51  ;;  %v317_v50 = vld [vmem:[#allocation2 + $0x790] sm:$0xff]  ;;  %v324_v51 = vld [vmem:[#allocation2 + $0x7c8] sm:$0xff] }
  0x64   :  { %636 = vmatprep.subr.bf16.mxu0 %v236_v52  ;;  %800 = vmatprep.subr.bf16.mxu1 %v238_v53  ;;  %v326_v52 = vld [vmem:[#allocation2 + $0x7d8] sm:$0xff]  ;;  %v323_v53 = vld [vmem:[#allocation2 + $0x7c0] sm:$0xff] }
  0x67   :  { %637 = vmatpush1.bf16.msra.mxu0 %v235_v54  ;;  %801 = vmatpush1.bf16.msra.mxu1 %v237_v55  ;;  %v325_v54 = vld [vmem:[#allocation2 + $0x7d0] sm:$0xff]  ;;  %v332_v55 = vld [vmem:[#allocation2 + $0x808] sm:$0xff] }
  0x68   :  { %638 = vmatprep.subr.bf16.mxu0 %v244_v56  ;;  %802 = vmatprep.subr.bf16.mxu1 %v246_v57  ;;  %v334_v56 = vld [vmem:[#allocation2 + $0x818] sm:$0xff]  ;;  %v4799_v57 = vpack.c.bf16 %v4752_v10, %v4752_v10 }
  0x6b   :  { %639 = vmatpush1.bf16.msra.mxu0 %v243_v58  ;;  %803 = vmatpush1.bf16.msra.mxu1 %v245_v59  ;;  %v331_v58 = vld [vmem:[#allocation2 + $0x800] sm:$0xff]  ;;  %v333_v59 = vld [vmem:[#allocation2 + $0x810] sm:$0xff] }
  0x6c   :  { %640 = vmatprep.subr.bf16.mxu0 %v252_v60  ;;  %804 = vmatprep.subr.bf16.mxu1 %v254_v61  ;;  %v340_v60 = vld [vmem:[#allocation2 + $0x848] sm:$0xff]  ;;  %v342_v61 = vld [vmem:[#allocation2 + $0x858] sm:$0xff] }
  0x6f   :  { %641 = vmatpush1.bf16.msra.mxu0 %v251_v62  ;;  %805 = vmatpush1.bf16.msra.mxu1 %v253_v63  ;;  %v4803_v62 = vpack.c.bf16 %v4767_v13, %v4767_v13  ;;  %v339_v63 = vld [vmem:[#allocation2 + $0x840] sm:$0xff] }
  0x70   :  { %642 = vmatprep.subr.bf16.mxu0 %v260_v17  ;;  %806 = vmatprep.subr.bf16.mxu1 %v262_v18  ;;  %v341_v17 = vld [vmem:[#allocation2 + $0x850] sm:$0xff]  ;;  %v348_v18 = vld [vmem:[#allocation2 + $0x888] sm:$0xff] }
  0x73   :  { %643 = vmatpush1.bf16.msra.mxu0 %v259_v19  ;;  %807 = vmatpush1.bf16.msra.mxu1 %v261_v20  ;;  %v350_v19 = vld [vmem:[#allocation2 + $0x898] sm:$0xff]  ;;  %v347_v20 = vld [vmem:[#allocation2 + $0x880] sm:$0xff] }
  0x74   :  { %644 = vmatprep.subr.bf16.mxu0 %v268_v21  ;;  %808 = vmatprep.subr.bf16.mxu1 %v270_v22  ;;  %v349_v21 = vld [vmem:[#allocation2 + $0x890] sm:$0xff]  ;;  %v356_v22 = vld [vmem:[#allocation2 + $0x8c8] sm:$0xff] }
  0x77   :  { %645 = vmatpush1.bf16.msra.mxu0 %v267_v23  ;;  %809 = vmatpush1.bf16.msra.mxu1 %v269_v24  ;;  %v358_v23 = vld [vmem:[#allocation2 + $0x8d8] sm:$0xff]  ;;  %v355_v24 = vld [vmem:[#allocation2 + $0x8c0] sm:$0xff] }
  0x78   :  { %646 = vmatprep.subr.bf16.mxu0 %v276_v25  ;;  %810 = vmatprep.subr.bf16.mxu1 %v278_v26  ;;  %v357_v25 = vld [vmem:[#allocation2 + $0x8d0] sm:$0xff]  ;;  %v364_v26 = vld [vmem:[#allocation2 + $0x908] sm:$0xff] }
  0x7b   :  { %647 = vmatpush1.bf16.msra.mxu0 %v275_v27  ;;  %811 = vmatpush1.bf16.msra.mxu1 %v277_v28  ;;  %v366_v27 = vld [vmem:[#allocation2 + $0x918] sm:$0xff]  ;;  %v363_v28 = vld [vmem:[#allocation2 + $0x900] sm:$0xff] }
  0x7c   :  { %648 = vmatprep.subr.bf16.mxu0 %v284_v29  ;;  %812 = vmatprep.subr.bf16.mxu1 %v286_v30  ;;  %v365_v29 = vld [vmem:[#allocation2 + $0x910] sm:$0xff]  ;;  %v372_v30 = vld [vmem:[#allocation2 + $0x948] sm:$0xff] }
  0x7f   :  { %649 = vmatpush1.bf16.msra.mxu0 %v283_v31  ;;  %813 = vmatpush1.bf16.msra.mxu1 %v285_v32  ;;  %v374_v31 = vld [vmem:[#allocation2 + $0x958] sm:$0xff]  ;;  %v371_v32 = vld [vmem:[#allocation2 + $0x940] sm:$0xff] }
  0x80   :  { %650 = vmatprep.subr.bf16.mxu0 %v292_v33  ;;  %814 = vmatprep.subr.bf16.mxu1 %v294_v34  ;;  %v373_v33 = vld [vmem:[#allocation2 + $0x950] sm:$0xff]  ;;  %v380_v34 = vld [vmem:[#allocation2 + $0x988] sm:$0xff] }
  0x83   :  { %651 = vmatpush1.bf16.msra.mxu0 %v291_v35  ;;  %815 = vmatpush1.bf16.msra.mxu1 %v293_v37  ;;  %v382_v35 = vld [vmem:[#allocation2 + $0x998] sm:$0xff]  ;;  %v379_v37 = vld [vmem:[#allocation2 + $0x980] sm:$0xff] }
  0x84   :  { %652 = vmatprep.subr.bf16.mxu0 %v300_v38  ;;  %816 = vmatprep.subr.bf16.mxu1 %v302_v39  ;;  %v381_v38 = vld [vmem:[#allocation2 + $0x990] sm:$0xff]  ;;  %v388_v39 = vld [vmem:[#allocation2 + $0x9c8] sm:$0xff] }
  0x87   :  { %653 = vmatpush1.bf16.msra.mxu0 %v299_v40  ;;  %817 = vmatpush1.bf16.msra.mxu1 %v301_v42  ;;  %v390_v40 = vld [vmem:[#allocation2 + $0x9d8] sm:$0xff]  ;;  %v387_v42 = vld [vmem:[#allocation2 + $0x9c0] sm:$0xff] }
  0x88   :  { %654 = vmatprep.subr.bf16.mxu0 %v308_v43  ;;  %818 = vmatprep.subr.bf16.mxu1 %v310_v44  ;;  %v389_v43 = vld [vmem:[#allocation2 + $0x9d0] sm:$0xff]  ;;  %v396_v44 = vld [vmem:[#allocation2 + $0xa08] sm:$0xff] }
  0x8b   :  { %655 = vmatpush1.bf16.msra.mxu0 %v307_v45  ;;  %819 = vmatpush1.bf16.msra.mxu1 %v309_v46  ;;  %v398_v45 = vld [vmem:[#allocation2 + $0xa18] sm:$0xff]  ;;  %v395_v46 = vld [vmem:[#allocation2 + $0xa00] sm:$0xff] }
  0x8c   :  { %656 = vmatprep.subr.bf16.mxu0 %v316_v47  ;;  %820 = vmatprep.subr.bf16.mxu1 %v318_v48  ;;  %v397_v47 = vld [vmem:[#allocation2 + $0xa10] sm:$0xff]  ;;  %v404_v48 = vld [vmem:[#allocation2 + $0xa48] sm:$0xff] }
  0x8f   :  { %657 = vmatpush1.bf16.msra.mxu0 %v315_v49  ;;  %821 = vmatpush1.bf16.msra.mxu1 %v317_v50  ;;  %v406_v49 = vld [vmem:[#allocation2 + $0xa58] sm:$0xff]  ;;  %v403_v50 = vld [vmem:[#allocation2 + $0xa40] sm:$0xff] }
  0x90   :  { %658 = vmatprep.subr.bf16.mxu0 %v324_v51  ;;  %822 = vmatprep.subr.bf16.mxu1 %v326_v52  ;;  %v405_v51 = vld [vmem:[#allocation2 + $0xa50] sm:$0xff]  ;;  %v412_v52 = vld [vmem:[#allocation2 + $0xa88] sm:$0xff] }
  0x93   :  { %659 = vmatpush1.bf16.msra.mxu0 %v323_v53  ;;  %823 = vmatpush1.bf16.msra.mxu1 %v325_v54  ;;  %v414_v53 = vld [vmem:[#allocation2 + $0xa98] sm:$0xff]  ;;  %v411_v54 = vld [vmem:[#allocation2 + $0xa80] sm:$0xff] }
  0x94   :  { %669 = vmatprep.subr.bf16.mxu0 %v332_v55  ;;  %833 = vmatprep.subr.bf16.mxu1 %v334_v56  ;;  %v413_v55 = vld [vmem:[#allocation2 + $0xa90] sm:$0xff]  ;;  %v420_v56 = vld [vmem:[#allocation2 + $0xac8] sm:$0xff] }
  0x96   :  { %661 = vmatmul.mubr.bf16.vlgmr.msra.gmra.mrb[0].mxu0 %v4799_v57  ;;  %825 = vmatmul.mubr.bf16.vlgmr.msra.gmra.mrb[0].mxu1 %v4799_v57 }
  0x97   :  { %670 = vmatpush1.bf16.msra.mxu0 %v331_v58  ;;  %834 = vmatpush1.bf16.msra.mxu1 %v333_v59  ;;  %v422_v58 = vld [vmem:[#allocation2 + $0xad8] sm:$0xff]  ;;  %v419_v59 = vld [vmem:[#allocation2 + $0xac0] sm:$0xff] }
  0x98   :  { %671 = vmatprep.subr.bf16.mxu0 %v340_v60  ;;  %835 = vmatprep.subr.bf16.mxu1 %v342_v61  ;;  %v421_v60 = vld [vmem:[#allocation2 + $0xad0] sm:$0xff]  ;;  %v428_v61 = vld [vmem:[#allocation2 + $0xb08] sm:$0xff] }
  0x99   :  { %701 = vmatprep.mubr.bf16.mxu0 %v4803_v62  ;;  %865 = vmatprep.mubr.bf16.mxu1 %v4803_v62 }
  0x9b   :  { %672 = vmatpush1.bf16.msra.mxu0 %v339_v63  ;;  %836 = vmatpush1.bf16.msra.mxu1 %v341_v17  ;;  %v430_v63 = vld [vmem:[#allocation2 + $0xb18] sm:$0xff]  ;;  %v427_v17 = vld [vmem:[#allocation2 + $0xb00] sm:$0xff] }
  0x9c   :  { %673 = vmatprep.subr.bf16.mxu0 %v348_v18  ;;  %837 = vmatprep.subr.bf16.mxu1 %v350_v19  ;;  %v429_v18 = vld [vmem:[#allocation2 + $0xb10] sm:$0xff]  ;;  %v436_v19 = vld [vmem:[#allocation2 + $0xb48] sm:$0xff] }
  0x9f   :  { %674 = vmatpush1.bf16.msra.mxu0 %v347_v20  ;;  %838 = vmatpush1.bf16.msra.mxu1 %v349_v21  ;;  %v438_v20 = vld [vmem:[#allocation2 + $0xb58] sm:$0xff]  ;;  %v435_v21 = vld [vmem:[#allocation2 + $0xb40] sm:$0xff] }
  0xa0   :  { %675 = vmatprep.subr.bf16.mxu0 %v356_v22  ;;  %839 = vmatprep.subr.bf16.mxu1 %v358_v23  ;;  %v437_v22 = vld [vmem:[#allocation2 + $0xb50] sm:$0xff]  ;;  %v444_v23 = vld [vmem:[#allocation2 + $0xb88] sm:$0xff] }
  0xa3   :  { %676 = vmatpush1.bf16.msra.mxu0 %v355_v24  ;;  %840 = vmatpush1.bf16.msra.mxu1 %v357_v25  ;;  %v446_v24 = vld [vmem:[#allocation2 + $0xb98] sm:$0xff]  ;;  %v443_v25 = vld [vmem:[#allocation2 + $0xb80] sm:$0xff] }
  0xa4   :  { %677 = vmatprep.subr.bf16.mxu0 %v364_v26  ;;  %841 = vmatprep.subr.bf16.mxu1 %v366_v27  ;;  %v445_v26 = vld [vmem:[#allocation2 + $0xb90] sm:$0xff]  ;;  %v452_v27 = vld [vmem:[#allocation2 + $0xbc8] sm:$0xff] }
  0xa7   :  { %678 = vmatpush1.bf16.msra.mxu0 %v363_v28  ;;  %842 = vmatpush1.bf16.msra.mxu1 %v365_v29  ;;  %v454_v28 = vld [vmem:[#allocation2 + $0xbd8] sm:$0xff]  ;;  %v451_v29 = vld [vmem:[#allocation2 + $0xbc0] sm:$0xff] }
  0xa8   :  { %679 = vmatprep.subr.bf16.mxu0 %v372_v30  ;;  %843 = vmatprep.subr.bf16.mxu1 %v374_v31  ;;  %v453_v30 = vld [vmem:[#allocation2 + $0xbd0] sm:$0xff]  ;;  %v460_v31 = vld [vmem:[#allocation2 + $0xc08] sm:$0xff] }
  0xab   :  { %680 = vmatpush1.bf16.msra.mxu0 %v371_v32  ;;  %844 = vmatpush1.bf16.msra.mxu1 %v373_v33  ;;  %v462_v32 = vld [vmem:[#allocation2 + $0xc18] sm:$0xff]  ;;  %v4811_v33 = vpack.c.bf16 %v4762_v12, %v4762_v12 }
  0xac   :  { %681 = vmatprep.subr.bf16.mxu0 %v380_v34  ;;  %845 = vmatprep.subr.bf16.mxu1 %v382_v35  ;;  %v459_v34 = vld [vmem:[#allocation2 + $0xc00] sm:$0xff]  ;;  %v461_v35 = vld [vmem:[#allocation2 + $0xc10] sm:$0xff] }
  0xaf   :  { %682 = vmatpush1.bf16.msra.mxu0 %v379_v37  ;;  %846 = vmatpush1.bf16.msra.mxu1 %v381_v38  ;;  %v468_v37 = vld [vmem:[#allocation2 + $0xc48] sm:$0xff]  ;;  %v470_v38 = vld [vmem:[#allocation2 + $0xc58] sm:$0xff] }
  0xb0   :  { %683 = vmatprep.subr.bf16.mxu0 %v388_v39  ;;  %847 = vmatprep.subr.bf16.mxu1 %v390_v40  ;;  %v4815_v39 = vpack.c.bf16 %v4777_v15, %v4777_v15  ;;  %v467_v40 = vld [vmem:[#allocation2 + $0xc40] sm:$0xff] }
  0xb3   :  { %684 = vmatpush1.bf16.msra.mxu0 %v387_v42  ;;  %848 = vmatpush1.bf16.msra.mxu1 %v389_v43  ;;  %v469_v42 = vld [vmem:[#allocation2 + $0xc50] sm:$0xff]  ;;  %v476_v43 = vld [vmem:[#allocation2 + $0xc88] sm:$0xff] }
  0xb4   :  { %685 = vmatprep.subr.bf16.mxu0 %v396_v44  ;;  %849 = vmatprep.subr.bf16.mxu1 %v398_v45  ;;  %v478_v44 = vld [vmem:[#allocation2 + $0xc98] sm:$0xff]  ;;  %v475_v45 = vld [vmem:[#allocation2 + $0xc80] sm:$0xff] }
  0xb7   :  { %686 = vmatpush1.bf16.msra.mxu0 %v395_v46  ;;  %850 = vmatpush1.bf16.msra.mxu1 %v397_v47  ;;  %v477_v46 = vld [vmem:[#allocation2 + $0xc90] sm:$0xff]  ;;  %v484_v47 = vld [vmem:[#allocation2 + $0xcc8] sm:$0xff] }
  0xb8   :  { %687 = vmatprep.subr.bf16.mxu0 %v404_v48  ;;  %851 = vmatprep.subr.bf16.mxu1 %v406_v49  ;;  %v486_v48 = vld [vmem:[#allocation2 + $0xcd8] sm:$0xff]  ;;  %v483_v49 = vld [vmem:[#allocation2 + $0xcc0] sm:$0xff] }
  0xbb   :  { %688 = vmatpush1.bf16.msra.mxu0 %v403_v50  ;;  %852 = vmatpush1.bf16.msra.mxu1 %v405_v51  ;;  %v485_v50 = vld [vmem:[#allocation2 + $0xcd0] sm:$0xff]  ;;  %v492_v51 = vld [vmem:[#allocation2 + $0xd08] sm:$0xff] }
  0xbc   :  { %689 = vmatprep.subr.bf16.mxu0 %v412_v52  ;;  %853 = vmatprep.subr.bf16.mxu1 %v414_v53  ;;  %v494_v52 = vld [vmem:[#allocation2 + $0xd18] sm:$0xff]  ;;  %v491_v53 = vld [vmem:[#allocation2 + $0xd00] sm:$0xff] }
  0xbf   :  { %690 = vmatpush1.bf16.msra.mxu0 %v411_v54  ;;  %854 = vmatpush1.bf16.msra.mxu1 %v413_v55  ;;  %v493_v54 = vld [vmem:[#allocation2 + $0xd10] sm:$0xff]  ;;  %v500_v55 = vld [vmem:[#allocation2 + $0xd48] sm:$0xff] }
  0xc0   :  { %691 = vmatprep.subr.bf16.mxu0 %v420_v56  ;;  %855 = vmatprep.subr.bf16.mxu1 %v422_v58  ;;  %v502_v56 = vld [vmem:[#allocation2 + $0xd58] sm:$0xff]  ;;  %v499_v58 = vld [vmem:[#allocation2 + $0xd40] sm:$0xff] }
  0xc3   :  { %692 = vmatpush1.bf16.msra.mxu0 %v419_v59  ;;  %856 = vmatpush1.bf16.msra.mxu1 %v421_v60  ;;  %v501_v59 = vld [vmem:[#allocation2 + $0xd50] sm:$0xff]  ;;  %v508_v60 = vld [vmem:[#allocation2 + $0xd88] sm:$0xff] }
  0xc4   :  { %693 = vmatprep.subr.bf16.mxu0 %v428_v61  ;;  %857 = vmatprep.subr.bf16.mxu1 %v430_v63  ;;  %v510_v61 = vld [vmem:[#allocation2 + $0xd98] sm:$0xff]  ;;  %v507_v63 = vld [vmem:[#allocation2 + $0xd80] sm:$0xff] }
  0xc7   :  { %694 = vmatpush1.bf16.msra.mxu0 %v427_v17  ;;  %858 = vmatpush1.bf16.msra.mxu1 %v429_v18  ;;  %v509_v17 = vld [vmem:[#allocation2 + $0xd90] sm:$0xff]  ;;  %v516_v18 = vld [vmem:[#allocation2 + $0xdc8] sm:$0xff] }
  0xc8   :  { %695 = vmatprep.subr.bf16.mxu0 %v436_v19  ;;  %859 = vmatprep.subr.bf16.mxu1 %v438_v20  ;;  %v518_v19 = vld [vmem:[#allocation2 + $0xdd8] sm:$0xff]  ;;  %v515_v20 = vld [vmem:[#allocation2 + $0xdc0] sm:$0xff] }
  0xcb   :  { %696 = vmatpush1.bf16.msra.mxu0 %v435_v21  ;;  %860 = vmatpush1.bf16.msra.mxu1 %v437_v22  ;;  %v517_v21 = vld [vmem:[#allocation2 + $0xdd0] sm:$0xff]  ;;  %v524_v22 = vld [vmem:[#allocation2 + $0xe08] sm:$0xff] }
  0xcc   :  { %697 = vmatprep.subr.bf16.mxu0 %v444_v23  ;;  %861 = vmatprep.subr.bf16.mxu1 %v446_v24  ;;  %v526_v23 = vld [vmem:[#allocation2 + $0xe18] sm:$0xff]  ;;  %v523_v24 = vld [vmem:[#allocation2 + $0xe00] sm:$0xff] }
  0xcf   :  { %698 = vmatpush1.bf16.msra.mxu0 %v443_v25  ;;  %862 = vmatpush1.bf16.msra.mxu1 %v445_v26  ;;  %v525_v25 = vld [vmem:[#allocation2 + $0xe10] sm:$0xff]  ;;  %v532_v26 = vld [vmem:[#allocation2 + $0xe48] sm:$0xff] }
  0xd0   :  { %699 = vmatprep.subr.bf16.mxu0 %v452_v27  ;;  %863 = vmatprep.subr.bf16.mxu1 %v454_v28  ;;  %v534_v27 = vld [vmem:[#allocation2 + $0xe58] sm:$0xff]  ;;  %v531_v28 = vld [vmem:[#allocation2 + $0xe40] sm:$0xff] }
  0xd3   :  { %700 = vmatpush1.bf16.msra.mxu0 %v451_v29  ;;  %864 = vmatpush1.bf16.msra.mxu1 %v453_v30  ;;  %v533_v29 = vld [vmem:[#allocation2 + $0xe50] sm:$0xff]  ;;  %v540_v30 = vld [vmem:[#allocation2 + $0xe88] sm:$0xff] }
  0xd4   :  { %710 = vmatprep.subr.bf16.mxu0 %v460_v31  ;;  %874 = vmatprep.subr.bf16.mxu1 %v462_v32  ;;  %v542_v31 = vld [vmem:[#allocation2 + $0xe98] sm:$0xff]  ;;  %v539_v32 = vld [vmem:[#allocation2 + $0xe80] sm:$0xff] }
  0xd6   :  { %702 = vmatmul.mubr.bf16.vlgmr.msra.gmra.mrb[0].mxu0 %v4811_v33  ;;  %866 = vmatmul.mubr.bf16.vlgmr.msra.gmra.mrb[0].mxu1 %v4811_v33 }
  0xd7   :  { %711 = vmatpush1.bf16.msra.mxu0 %v459_v34  ;;  %875 = vmatpush1.bf16.msra.mxu1 %v461_v35  ;;  %v541_v34 = vld [vmem:[#allocation2 + $0xe90] sm:$0xff]  ;;  %v548_v35 = vld [vmem:[#allocation2 + $0xec8] sm:$0xff] }
  0xd8   :  { %712 = vmatprep.subr.bf16.mxu0 %v468_v37  ;;  %876 = vmatprep.subr.bf16.mxu1 %v470_v38  ;;  %v550_v37 = vld [vmem:[#allocation2 + $0xed8] sm:$0xff]  ;;  %v547_v38 = vld [vmem:[#allocation2 + $0xec0] sm:$0xff] }
  0xd9   :  { %742 = vmatprep.mubr.bf16.mxu0 %v4815_v39  ;;  %906 = vmatprep.mubr.bf16.mxu1 %v4815_v39 }
  0xdb   :  { %713 = vmatpush1.bf16.msra.mxu0 %v467_v40  ;;  %877 = vmatpush1.bf16.msra.mxu1 %v469_v42  ;;  %v549_v40 = vld [vmem:[#allocation2 + $0xed0] sm:$0xff]  ;;  %v556_v42 = vld [vmem:[#allocation2 + $0xf08] sm:$0xff] }
  0xdc   :  { %714 = vmatprep.subr.bf16.mxu0 %v476_v43  ;;  %878 = vmatprep.subr.bf16.mxu1 %v478_v44  ;;  %v558_v43 = vld [vmem:[#allocation2 + $0xf18] sm:$0xff]  ;;  %v555_v44 = vld [vmem:[#allocation2 + $0xf00] sm:$0xff] }
  0xdf   :  { %715 = vmatpush1.bf16.msra.mxu0 %v475_v45  ;;  %879 = vmatpush1.bf16.msra.mxu1 %v477_v46  ;;  %v557_v45 = vld [vmem:[#allocation2 + $0xf10] sm:$0xff]  ;;  %v564_v46 = vld [vmem:[#allocation2 + $0xf48] sm:$0xff] }
  0xe0   :  { %716 = vmatprep.subr.bf16.mxu0 %v484_v47  ;;  %880 = vmatprep.subr.bf16.mxu1 %v486_v48  ;;  %v566_v47 = vld [vmem:[#allocation2 + $0xf58] sm:$0xff]  ;;  %v563_v48 = vld [vmem:[#allocation2 + $0xf40] sm:$0xff] }
  0xe3   :  { %717 = vmatpush1.bf16.msra.mxu0 %v483_v49  ;;  %881 = vmatpush1.bf16.msra.mxu1 %v485_v50  ;;  %v565_v49 = vld [vmem:[#allocation2 + $0xf50] sm:$0xff]  ;;  %v572_v50 = vld [vmem:[#allocation2 + $0xf88] sm:$0xff] }
  0xe4   :  { %718 = vmatprep.subr.bf16.mxu0 %v492_v51  ;;  %882 = vmatprep.subr.bf16.mxu1 %v494_v52  ;;  %v574_v51 = vld [vmem:[#allocation2 + $0xf98] sm:$0xff]  ;;  %v571_v52 = vld [vmem:[#allocation2 + $0xf80] sm:$0xff] }
  0xe7   :  { %719 = vmatpush1.bf16.msra.mxu0 %v491_v53  ;;  %883 = vmatpush1.bf16.msra.mxu1 %v493_v54  ;;  %v573_v53 = vld [vmem:[#allocation2 + $0xf90] sm:$0xff]  ;;  %v580_v54 = vld [vmem:[#allocation2 + $0xfc8] sm:$0xff] }
  0xe8   :  { %720 = vmatprep.subr.bf16.mxu0 %v500_v55  ;;  %884 = vmatprep.subr.bf16.mxu1 %v502_v56  ;;  %v582_v55 = vld [vmem:[#allocation2 + $0xfd8] sm:$0xff]  ;;  %v579_v56 = vld [vmem:[#allocation2 + $0xfc0] sm:$0xff] }
  0xeb   :  { %721 = vmatpush1.bf16.msra.mxu0 %v499_v58  ;;  %885 = vmatpush1.bf16.msra.mxu1 %v501_v59  ;;  %v581_v58 = vld [vmem:[#allocation2 + $0xfd0] sm:$0xff]  ;;  %v80_v59 = vld [vmem:[#allocation2 + $0x28] sm:$0xff] }
  0xec   :  { %722 = vmatprep.subr.bf16.mxu0 %v508_v60  ;;  %886 = vmatprep.subr.bf16.mxu1 %v510_v61  ;;  %v82_v60 = vld [vmem:[#allocation2 + $0x38] sm:$0xff]  ;;  %v4823_v61 = vpack.c.bf16 %v4772_v14, %v4772_v14 }
  0xef   :  { %723 = vmatpush1.bf16.msra.mxu0 %v507_v63  ;;  %887 = vmatpush1.bf16.msra.mxu1 %v509_v17  ;;  %v79_v63 = vld [vmem:[#allocation2 + $0x20] sm:$0xff]  ;;  %v81_v17 = vld [vmem:[#allocation2 + $0x30] sm:$0xff] }
  0xf0   :  { %724 = vmatprep.subr.bf16.mxu0 %v516_v18  ;;  %888 = vmatprep.subr.bf16.mxu1 %v518_v19  ;;  %v88_v18 = vld [vmem:[#allocation2 + $0x68] sm:$0xff]  ;;  %v90_v19 = vld [vmem:[#allocation2 + $0x78] sm:$0xff] }
  0xf3   :  { %725 = vmatpush1.bf16.msra.mxu0 %v515_v20  ;;  %889 = vmatpush1.bf16.msra.mxu1 %v517_v21  ;;  %v87_v20 = vld [vmem:[#allocation2 + $0x60] sm:$0xff]  ;;  %v89_v21 = vld [vmem:[#allocation2 + $0x70] sm:$0xff] }
  0xf4   :  { %726 = vmatprep.subr.bf16.mxu0 %v524_v22  ;;  %890 = vmatprep.subr.bf16.mxu1 %v526_v23  ;;  %v96_v22 = vld [vmem:[#allocation2 + $0xa8] sm:$0xff]  ;;  %v98_v23 = vld [vmem:[#allocation2 + $0xb8] sm:$0xff] }
  0xf7   :  { %727 = vmatpush1.bf16.msra.mxu0 %v523_v24  ;;  %891 = vmatpush1.bf16.msra.mxu1 %v525_v25  ;;  %v95_v24 = vld [vmem:[#allocation2 + $0xa0] sm:$0xff]  ;;  %v97_v25 = vld [vmem:[#allocation2 + $0xb0] sm:$0xff] }
  0xf8   :  { %728 = vmatprep.subr.bf16.mxu0 %v532_v26  ;;  %892 = vmatprep.subr.bf16.mxu1 %v534_v27  ;;  %v104_v26 = vld [vmem:[#allocation2 + $0xe8] sm:$0xff]  ;;  %v106_v27 = vld [vmem:[#allocation2 + $0xf8] sm:$0xff] }
  0xfb   :  { %729 = vmatpush1.bf16.msra.mxu0 %v531_v28  ;;  %893 = vmatpush1.bf16.msra.mxu1 %v533_v29  ;;  %v103_v28 = vld [vmem:[#allocation2 + $0xe0] sm:$0xff]  ;;  %v105_v29 = vld [vmem:[#allocation2 + $0xf0] sm:$0xff] }
  0xfc   :  { %730 = vmatprep.subr.bf16.mxu0 %v540_v30  ;;  %894 = vmatprep.subr.bf16.mxu1 %v542_v31  ;;  %v112_v30 = vld [vmem:[#allocation2 + $0x128] sm:$0xff]  ;;  %v114_v31 = vld [vmem:[#allocation2 + $0x138] sm:$0xff] }
  0xff   :  { %731 = vmatpush1.bf16.msra.mxu0 %v539_v32  ;;  %895 = vmatpush1.bf16.msra.mxu1 %v541_v34  ;;  %v113_v32 = vld [vmem:[#allocation2 + $0x130] sm:$0xff]  ;;  %v120_v34 = vld [vmem:[#allocation2 + $0x168] sm:$0xff] }
 0x100   :  { %732 = vmatprep.subr.bf16.mxu0 %v548_v35  ;;  %896 = vmatprep.subr.bf16.mxu1 %v550_v37  ;;  %v122_v35 = vld [vmem:[#allocation2 + $0x178] sm:$0xff]  ;;  %v119_v37 = vld [vmem:[#allocation2 + $0x160] sm:$0xff] }
 0x103   :  { %733 = vmatpush1.bf16.msra.mxu0 %v547_v38  ;;  %897 = vmatpush1.bf16.msra.mxu1 %v549_v40  ;;  %v121_v38 = vld [vmem:[#allocation2 + $0x170] sm:$0xff]  ;;  %v128_v40 = vld [vmem:[#allocation2 + $0x1a8] sm:$0xff] }
 0x104   :  { %734 = vmatprep.subr.bf16.mxu0 %v556_v42  ;;  %898 = vmatprep.subr.bf16.mxu1 %v558_v43  ;;  %v130_v42 = vld [vmem:[#allocation2 + $0x1b8] sm:$0xff]  ;;  %v127_v43 = vld [vmem:[#allocation2 + $0x1a0] sm:$0xff] }
 0x107   :  { %735 = vmatpush1.bf16.msra.mxu0 %v555_v44  ;;  %899 = vmatpush1.bf16.msra.mxu1 %v557_v45  ;;  %v129_v44 = vld [vmem:[#allocation2 + $0x1b0] sm:$0xff]  ;;  %v136_v45 = vld [vmem:[#allocation2 + $0x1e8] sm:$0xff] }
 0x108   :  { %736 = vmatprep.subr.bf16.mxu0 %v564_v46  ;;  %900 = vmatprep.subr.bf16.mxu1 %v566_v47  ;;  %v138_v46 = vld [vmem:[#allocation2 + $0x1f8] sm:$0xff]  ;;  %v135_v47 = vld [vmem:[#allocation2 + $0x1e0] sm:$0xff] }
 0x10b   :  { %737 = vmatpush1.bf16.msra.mxu0 %v563_v48  ;;  %901 = vmatpush1.bf16.msra.mxu1 %v565_v49  ;;  %v137_v48 = vld [vmem:[#allocation2 + $0x1f0] sm:$0xff]  ;;  %v144_v49 = vld [vmem:[#allocation2 + $0x228] sm:$0xff] }
 0x10c   :  { %738 = vmatprep.subr.bf16.mxu0 %v572_v50  ;;  %902 = vmatprep.subr.bf16.mxu1 %v574_v51  ;;  %v146_v50 = vld [vmem:[#allocation2 + $0x238] sm:$0xff]  ;;  %v143_v51 = vld [vmem:[#allocation2 + $0x220] sm:$0xff] }
 0x10f   :  { %739 = vmatpush1.bf16.msra.mxu0 %v571_v52  ;;  %903 = vmatpush1.bf16.msra.mxu1 %v573_v53  ;;  %v145_v52 = vld [vmem:[#allocation2 + $0x230] sm:$0xff]  ;;  %v152_v53 = vld [vmem:[#allocation2 + $0x268] sm:$0xff] }
 0x110   :  { %740 = vmatprep.subr.bf16.mxu0 %v580_v54  ;;  %904 = vmatprep.subr.bf16.mxu1 %v582_v55  ;;  %v154_v54 = vld [vmem:[#allocation2 + $0x278] sm:$0xff]  ;;  %v151_v55 = vld [vmem:[#allocation2 + $0x260] sm:$0xff] }
 0x113   :  { %741 = vmatpush1.bf16.msra.mxu0 %v579_v56  ;;  %905 = vmatpush1.bf16.msra.mxu1 %v581_v58  ;;  %v153_v56 = vld [vmem:[#allocation2 + $0x270] sm:$0xff]  ;;  %v160_v58 = vld [vmem:[#allocation2 + $0x2a8] sm:$0xff] }
 0x114   :  { %915 = vmatprep.subr.bf16.mxu0 %v80_v59  ;;  %1079 = vmatprep.subr.bf16.mxu1 %v82_v60  ;;  %v162_v59 = vld [vmem:[#allocation2 + $0x2b8] sm:$0xff]  ;;  %v159_v60 = vld [vmem:[#allocation2 + $0x2a0] sm:$0xff] }
 0x116   :  { %743 = vmatmul.mubr.bf16.vlgmr.msra.gmra.mrb[0].mxu0 %v4823_v61  ;;  %907 = vmatmul.mubr.bf16.vlgmr.msra.gmra.mrb[0].mxu1 %v4823_v61 }
 0x117   :  { %916 = vmatpush1.bf16.msra.mxu0 %v79_v63  ;;  %1080 = vmatpush1.bf16.msra.mxu1 %v81_v17  ;;  %v161_v63 = vld [vmem:[#allocation2 + $0x2b0] sm:$0xff]  ;;  %v168_v17 = vld [vmem:[#allocation2 + $0x2e8] sm:$0xff] }
 0x118   :  { %917 = vmatprep.subr.bf16.mxu0 %v88_v18  ;;  %1081 = vmatprep.subr.bf16.mxu1 %v90_v19  ;;  %v170_v18 = vld [vmem:[#allocation2 + $0x2f8] sm:$0xff]  ;;  %v167_v19 = vld [vmem:[#allocation2 + $0x2e0] sm:$0xff] }
 0x119   :  { %947 = vmatprep.mubr.bf16.mxu0 %v4781_v16  ;;  %1111 = vmatprep.mubr.bf16.mxu1 %v4781_v16  ;;  %v111_v16 = vld [vmem:[#allocation2 + $0x120] sm:$0xff] }
 0x11b   :  { %918 = vmatpush1.bf16.msra.mxu0 %v87_v20  ;;  %1082 = vmatpush1.bf16.msra.mxu1 %v89_v21  ;;  %v169_v20 = vld [vmem:[#allocation2 + $0x2f0] sm:$0xff]  ;;  %v176_v21 = vld [vmem:[#allocation2 + $0x328] sm:$0xff] }
 0x11c   :  { %919 = vmatprep.subr.bf16.mxu0 %v96_v22  ;;  %1083 = vmatprep.subr.bf16.mxu1 %v98_v23  ;;  %v178_v22 = vld [vmem:[#allocation2 + $0x338] sm:$0xff]  ;;  %v175_v23 = vld [vmem:[#allocation2 + $0x320] sm:$0xff] }
 0x11f   :  { %920 = vmatpush1.bf16.msra.mxu0 %v95_v24  ;;  %1084 = vmatpush1.bf16.msra.mxu1 %v97_v25  ;;  %v177_v24 = vld [vmem:[#allocation2 + $0x330] sm:$0xff]  ;;  %v184_v25 = vld [vmem:[#allocation2 + $0x368] sm:$0xff] }
 0x120   :  { %921 = vmatprep.subr.bf16.mxu0 %v104_v26  ;;  %1085 = vmatprep.subr.bf16.mxu1 %v106_v27  ;;  %v186_v26 = vld [vmem:[#allocation2 + $0x378] sm:$0xff]  ;;  %v183_v27 = vld [vmem:[#allocation2 + $0x360] sm:$0xff] }
 0x123   :  { %922 = vmatpush1.bf16.msra.mxu0 %v103_v28  ;;  %1086 = vmatpush1.bf16.msra.mxu1 %v105_v29  ;;  %v185_v28 = vld [vmem:[#allocation2 + $0x370] sm:$0xff]  ;;  %v192_v29 = vld [vmem:[#allocation2 + $0x3a8] sm:$0xff] }
 0x124   :  { %923 = vmatprep.subr.bf16.mxu0 %v112_v30  ;;  %1087 = vmatprep.subr.bf16.mxu1 %v114_v31  ;;  %v194_v30 = vld [vmem:[#allocation2 + $0x3b8] sm:$0xff]  ;;  %v191_v31 = vld [vmem:[#allocation2 + $0x3a0] sm:$0xff] }
 0x127   :  { %924 = vmatpush1.bf16.msra.mxu0 %v111_v16  ;;  %1088 = vmatpush1.bf16.msra.mxu1 %v113_v32  ;;  %v193_v16 = vld [vmem:[#allocation2 + $0x3b0] sm:$0xff]  ;;  %v200_v32 = vld [vmem:[#allocation2 + $0x3e8] sm:$0xff] }
 0x128   :  { %925 = vmatprep.subr.bf16.mxu0 %v120_v34  ;;  %1089 = vmatprep.subr.bf16.mxu1 %v122_v35  ;;  %v202_v34 = vld [vmem:[#allocation2 + $0x3f8] sm:$0xff]  ;;  %v199_v35 = vld [vmem:[#allocation2 + $0x3e0] sm:$0xff] }
 0x12b   :  { %926 = vmatpush1.bf16.msra.mxu0 %v119_v37  ;;  %1090 = vmatpush1.bf16.msra.mxu1 %v121_v38  ;;  %v201_v37 = vld [vmem:[#allocation2 + $0x3f0] sm:$0xff]  ;;  %v208_v38 = vld [vmem:[#allocation2 + $0x428] sm:$0xff] }
 0x12c   :  { %927 = vmatprep.subr.bf16.mxu0 %v128_v40  ;;  %1091 = vmatprep.subr.bf16.mxu1 %v130_v42  ;;  %v210_v40 = vld [vmem:[#allocation2 + $0x438] sm:$0xff]  ;;  %v207_v42 = vld [vmem:[#allocation2 + $0x420] sm:$0xff] }
 0x12f   :  { %928 = vmatpush1.bf16.msra.mxu0 %v127_v43  ;;  %1092 = vmatpush1.bf16.msra.mxu1 %v129_v44  ;;  %v209_v43 = vld [vmem:[#allocation2 + $0x430] sm:$0xff]  ;;  %v216_v44 = vld [vmem:[#allocation2 + $0x468] sm:$0xff] }
 0x130   :  { %929 = vmatprep.subr.bf16.mxu0 %v136_v45  ;;  %1093 = vmatprep.subr.bf16.mxu1 %v138_v46  ;;  %v218_v45 = vld [vmem:[#allocation2 + $0x478] sm:$0xff]  ;;  %v215_v46 = vld [vmem:[#allocation2 + $0x460] sm:$0xff] }
 0x133   :  { %930 = vmatpush1.bf16.msra.mxu0 %v135_v47  ;;  %1094 = vmatpush1.bf16.msra.mxu1 %v137_v48  ;;  %v217_v47 = vld [vmem:[#allocation2 + $0x470] sm:$0xff]  ;;  %v224_v48 = vld [vmem:[#allocation2 + $0x4a8] sm:$0xff] }
 0x134   :  { %931 = vmatprep.subr.bf16.mxu0 %v144_v49  ;;  %1095 = vmatprep.subr.bf16.mxu1 %v146_v50  ;;  %v226_v49 = vld [vmem:[#allocation2 + $0x4b8] sm:$0xff]  ;;  %v223_v50 = vld [vmem:[#allocation2 + $0x4a0] sm:$0xff] }
 0x137   :  { %932 = vmatpush1.bf16.msra.mxu0 %v143_v51  ;;  %1096 = vmatpush1.bf16.msra.mxu1 %v145_v52  ;;  %v225_v51 = vld [vmem:[#allocation2 + $0x4b0] sm:$0xff]  ;;  %v232_v52 = vld [vmem:[#allocation2 + $0x4e8] sm:$0xff] }
 0x138   :  { %933 = vmatprep.subr.bf16.mxu0 %v152_v53  ;;  %1097 = vmatprep.subr.bf16.mxu1 %v154_v54  ;;  %v231_v53 = vld [vmem:[#allocation2 + $0x4e0] sm:$0xff]  ;;  %v233_v54 = vld [vmem:[#allocation2 + $0x4f0] sm:$0xff] }
 0x13b   :  { %934 = vmatpush1.bf16.msra.mxu0 %v151_v55  ;;  %1098 = vmatpush1.bf16.msra.mxu1 %v153_v56  ;;  %v240_v55 = vld [vmem:[#allocation2 + $0x528] sm:$0xff]  ;;  %v242_v56 = vld [vmem:[#allocation2 + $0x538] sm:$0xff] }
 0x13c   :  { %935 = vmatprep.subr.bf16.mxu0 %v160_v58  ;;  %1099 = vmatprep.subr.bf16.mxu1 %v162_v59  ;;  %v241_v58 = vld [vmem:[#allocation2 + $0x530] sm:$0xff]  ;;  %v248_v59 = vld [vmem:[#allocation2 + $0x568] sm:$0xff] }
 0x13f   :  { %936 = vmatpush1.bf16.msra.mxu0 %v159_v60  ;;  %1100 = vmatpush1.bf16.msra.mxu1 %v161_v63  ;;  %v250_v60 = vld [vmem:[#allocation2 + $0x578] sm:$0xff]  ;;  %v247_v63 = vld [vmem:[#allocation2 + $0x560] sm:$0xff] }
 0x140   :  { %937 = vmatprep.subr.bf16.mxu0 %v168_v17  ;;  %1101 = vmatprep.subr.bf16.mxu1 %v170_v18  ;;  %v249_v17 = vld [vmem:[#allocation2 + $0x570] sm:$0xff]  ;;  %v256_v18 = vld [vmem:[#allocation2 + $0x5a8] sm:$0xff] }
 0x143   :  { %938 = vmatpush1.bf16.msra.mxu0 %v167_v19  ;;  %1102 = vmatpush1.bf16.msra.mxu1 %v169_v20  ;;  %v258_v19 = vld [vmem:[#allocation2 + $0x5b8] sm:$0xff]  ;;  %v255_v20 = vld [vmem:[#allocation2 + $0x5a0] sm:$0xff] }
 0x144   :  { %939 = vmatprep.subr.bf16.mxu0 %v176_v21  ;;  %1103 = vmatprep.subr.bf16.mxu1 %v178_v22  ;;  %v257_v21 = vld [vmem:[#allocation2 + $0x5b0] sm:$0xff]  ;;  %v264_v22 = vld [vmem:[#allocation2 + $0x5e8] sm:$0xff] }
 0x147   :  { %940 = vmatpush1.bf16.msra.mxu0 %v175_v23  ;;  %1104 = vmatpush1.bf16.msra.mxu1 %v177_v24  ;;  %v266_v23 = vld [vmem:[#allocation2 + $0x5f8] sm:$0xff]  ;;  %v263_v24 = vld [vmem:[#allocation2 + $0x5e0] sm:$0xff] }
 0x148   :  { %941 = vmatprep.subr.bf16.mxu0 %v184_v25  ;;  %1105 = vmatprep.subr.bf16.mxu1 %v186_v26  ;;  %v265_v25 = vld [vmem:[#allocation2 + $0x5f0] sm:$0xff]  ;;  %v272_v26 = vld [vmem:[#allocation2 + $0x628] sm:$0xff] }
 0x14b   :  { %942 = vmatpush1.bf16.msra.mxu0 %v183_v27  ;;  %1106 = vmatpush1.bf16.msra.mxu1 %v185_v28  ;;  %v274_v27 = vld [vmem:[#allocation2 + $0x638] sm:$0xff]  ;;  %v271_v28 = vld [vmem:[#allocation2 + $0x620] sm:$0xff] }
 0x14c   :  { %943 = vmatprep.subr.bf16.mxu0 %v192_v29  ;;  %1107 = vmatprep.subr.bf16.mxu1 %v194_v30  ;;  %v273_v29 = vld [vmem:[#allocation2 + $0x630] sm:$0xff]  ;;  %v280_v30 = vld [vmem:[#allocation2 + $0x668] sm:$0xff] }
 0x14f   :  { %944 = vmatpush1.bf16.msra.mxu0 %v191_v31  ;;  %1108 = vmatpush1.bf16.msra.mxu1 %v193_v16  ;;  %v282_v31 = vld [vmem:[#allocation2 + $0x678] sm:$0xff]  ;;  %v279_v16 = vld [vmem:[#allocation2 + $0x660] sm:$0xff] }
 0x150   :  { %945 = vmatprep.subr.bf16.mxu0 %v200_v32  ;;  %1109 = vmatprep.subr.bf16.mxu1 %v202_v34  ;;  %v281_v32 = vld [vmem:[#allocation2 + $0x670] sm:$0xff]  ;;  %v288_v34 = vld [vmem:[#allocation2 + $0x6a8] sm:$0xff] }
 0x153   :  { %946 = vmatpush1.bf16.msra.mxu0 %v199_v35  ;;  %1110 = vmatpush1.bf16.msra.mxu1 %v201_v37  ;;  %v290_v35 = vld [vmem:[#allocation2 + $0x6b8] sm:$0xff]  ;;  %v287_v37 = vld [vmem:[#allocation2 + $0x6a0] sm:$0xff] }
 0x154   :  { %956 = vmatprep.subr.bf16.mxu0 %v208_v38  ;;  %1120 = vmatprep.subr.bf16.mxu1 %v210_v40  ;;  %v289_v38 = vld [vmem:[#allocation2 + $0x6b0] sm:$0xff]  ;;  %v296_v40 = vld [vmem:[#allocation2 + $0x6e8] sm:$0xff] }
 0x156   :  { %948 = vmatmul.mubr.bf16.vlgmr.msra.gmra.mrb[4].mxu0 %v4787_v36  ;;  %1112 = vmatmul.mubr.bf16.vlgmr.msra.gmra.mrb[4].mxu1 %v4787_v36  ;;  %v234_v36 = vld [vmem:[#allocation2 + $0x4f8] sm:$0xff] }
 0x157   :  { %957 = vmatpush1.bf16.msra.mxu0 %v207_v42  ;;  %1121 = vmatpush1.bf16.msra.mxu1 %v209_v43  ;;  %v298_v42 = vld [vmem:[#allocation2 + $0x6f8] sm:$0xff]  ;;  %v295_v43 = vld [vmem:[#allocation2 + $0x6e0] sm:$0xff] }
 0x158   :  { %958 = vmatprep.subr.bf16.mxu0 %v216_v44  ;;  %1122 = vmatprep.subr.bf16.mxu1 %v218_v45  ;;  %v297_v44 = vld [vmem:[#allocation2 + $0x6f0] sm:$0xff]  ;;  %v304_v45 = vld [vmem:[#allocation2 + $0x728] sm:$0xff] }
 0x159   :  { %988 = vmatprep.mubr.bf16.mxu0 %v4791_v41  ;;  %1152 = vmatprep.mubr.bf16.mxu1 %v4791_v41  ;;  %v239_v41 = vld [vmem:[#allocation2 + $0x520] sm:$0xff] }
 0x15b   :  { %959 = vmatpush1.bf16.msra.mxu0 %v215_v46  ;;  %1123 = vmatpush1.bf16.msra.mxu1 %v217_v47  ;;  %v306_v46 = vld [vmem:[#allocation2 + $0x738] sm:$0xff]  ;;  %v303_v47 = vld [vmem:[#allocation2 + $0x720] sm:$0xff] }
 0x15c   :  { %960 = vmatprep.subr.bf16.mxu0 %v224_v48  ;;  %1124 = vmatprep.subr.bf16.mxu1 %v226_v49  ;;  %v305_v48 = vld [vmem:[#allocation2 + $0x730] sm:$0xff]  ;;  %v312_v49 = vld [vmem:[#allocation2 + $0x768] sm:$0xff] }
 0x15f   :  { %961 = vmatpush1.bf16.msra.mxu0 %v223_v50  ;;  %1125 = vmatpush1.bf16.msra.mxu1 %v225_v51  ;;  %v314_v50 = vld [vmem:[#allocation2 + $0x778] sm:$0xff]  ;;  %v311_v51 = vld [vmem:[#allocation2 + $0x760] sm:$0xff] }
 0x160   :  { %962 = vmatprep.subr.bf16.mxu0 %v232_v52  ;;  %1126 = vmatprep.subr.bf16.mxu1 %v234_v36  ;;  %v313_v52 = vld [vmem:[#allocation2 + $0x770] sm:$0xff]  ;;  %v320_v36 = vld [vmem:[#allocation2 + $0x7a8] sm:$0xff] }
 0x163   :  { %963 = vmatpush1.bf16.msra.mxu0 %v231_v53  ;;  %1127 = vmatpush1.bf16.msra.mxu1 %v233_v54  ;;  %v322_v53 = vld [vmem:[#allocation2 + $0x7b8] sm:$0xff]  ;;  %v319_v54 = vld [vmem:[#allocation2 + $0x7a0] sm:$0xff] }
 0x164   :  { %964 = vmatprep.subr.bf16.mxu0 %v240_v55  ;;  %1128 = vmatprep.subr.bf16.mxu1 %v242_v56  ;;  %v321_v55 = vld [vmem:[#allocation2 + $0x7b0] sm:$0xff]  ;;  %v328_v56 = vld [vmem:[#allocation2 + $0x7e8] sm:$0xff] }
 0x167   :  { %965 = vmatpush1.bf16.msra.mxu0 %v239_v41  ;;  %1129 = vmatpush1.bf16.msra.mxu1 %v241_v58  ;;  %v330_v41 = vld [vmem:[#allocation2 + $0x7f8] sm:$0xff]  ;;  %v327_v58 = vld [vmem:[#allocation2 + $0x7e0] sm:$0xff] }
 0x168   :  { %966 = vmatprep.subr.bf16.mxu0 %v248_v59  ;;  %1130 = vmatprep.subr.bf16.mxu1 %v250_v60  ;;  %v329_v59 = vld [vmem:[#allocation2 + $0x7f0] sm:$0xff]  ;;  %v336_v60 = vld [vmem:[#allocation2 + $0x828] sm:$0xff] }
 0x16b   :  { %967 = vmatpush1.bf16.msra.mxu0 %v247_v63  ;;  %1131 = vmatpush1.bf16.msra.mxu1 %v249_v17  ;;  %v338_v63 = vld [vmem:[#allocation2 + $0x838] sm:$0xff]  ;;  %v335_v17 = vld [vmem:[#allocation2 + $0x820] sm:$0xff] }
 0x16c   :  { %968 = vmatprep.subr.bf16.mxu0 %v256_v18  ;;  %1132 = vmatprep.subr.bf16.mxu1 %v258_v19  ;;  %v337_v18 = vld [vmem:[#allocation2 + $0x830] sm:$0xff]  ;;  %v344_v19 = vld [vmem:[#allocation2 + $0x868] sm:$0xff] }
 0x16f   :  { %969 = vmatpush1.bf16.msra.mxu0 %v255_v20  ;;  %1133 = vmatpush1.bf16.msra.mxu1 %v257_v21  ;;  %v346_v20 = vld [vmem:[#allocation2 + $0x878] sm:$0xff]  ;;  %v343_v21 = vld [vmem:[#allocation2 + $0x860] sm:$0xff] }
 0x170   :  { %970 = vmatprep.subr.bf16.mxu0 %v264_v22  ;;  %1134 = vmatprep.subr.bf16.mxu1 %v266_v23  ;;  %v345_v22 = vld [vmem:[#allocation2 + $0x870] sm:$0xff]  ;;  %v352_v23 = vld [vmem:[#allocation2 + $0x8a8] sm:$0xff] }
 0x173   :  { %971 = vmatpush1.bf16.msra.mxu0 %v263_v24  ;;  %1135 = vmatpush1.bf16.msra.mxu1 %v265_v25  ;;  %v354_v24 = vld [vmem:[#allocation2 + $0x8b8] sm:$0xff]  ;;  %v351_v25 = vld [vmem:[#allocation2 + $0x8a0] sm:$0xff] }
 0x174   :  { %972 = vmatprep.subr.bf16.mxu0 %v272_v26  ;;  %1136 = vmatprep.subr.bf16.mxu1 %v274_v27  ;;  %v353_v26 = vld [vmem:[#allocation2 + $0x8b0] sm:$0xff]  ;;  %v360_v27 = vld [vmem:[#allocation2 + $0x8e8] sm:$0xff] }
 0x177   :  { %973 = vmatpush1.bf16.msra.mxu0 %v271_v28  ;;  %1137 = vmatpush1.bf16.msra.mxu1 %v273_v29  ;;  %v359_v28 = vld [vmem:[#allocation2 + $0x8e0] sm:$0xff]  ;;  %v361_v29 = vld [vmem:[#allocation2 + $0x8f0] sm:$0xff] }
 0x178   :  { %974 = vmatprep.subr.bf16.mxu0 %v280_v30  ;;  %1138 = vmatprep.subr.bf16.mxu1 %v282_v31  ;;  %v368_v30 = vld [vmem:[#allocation2 + $0x928] sm:$0xff]  ;;  %v370_v31 = vld [vmem:[#allocation2 + $0x938] sm:$0xff] }
 0x17b   :  { %975 = vmatpush1.bf16.msra.mxu0 %v279_v16  ;;  %1139 = vmatpush1.bf16.msra.mxu1 %v281_v32  ;;  %v369_v16 = vld [vmem:[#allocation2 + $0x930] sm:$0xff]  ;;  %v376_v32 = vld [vmem:[#allocation2 + $0x968] sm:$0xff] }
 0x17c   :  { %976 = vmatprep.subr.bf16.mxu0 %v288_v34  ;;  %1140 = vmatprep.subr.bf16.mxu1 %v290_v35  ;;  %v378_v34 = vld [vmem:[#allocation2 + $0x978] sm:$0xff]  ;;  %v375_v35 = vld [vmem:[#allocation2 + $0x960] sm:$0xff] }
 0x17f   :  { %977 = vmatpush1.bf16.msra.mxu0 %v287_v37  ;;  %1141 = vmatpush1.bf16.msra.mxu1 %v289_v38  ;;  %v377_v37 = vld [vmem:[#allocation2 + $0x970] sm:$0xff]  ;;  %v384_v38 = vld [vmem:[#allocation2 + $0x9a8] sm:$0xff] }
 0x180   :  { %978 = vmatprep.subr.bf16.mxu0 %v296_v40  ;;  %1142 = vmatprep.subr.bf16.mxu1 %v298_v42  ;;  %v386_v40 = vld [vmem:[#allocation2 + $0x9b8] sm:$0xff]  ;;  %v383_v42 = vld [vmem:[#allocation2 + $0x9a0] sm:$0xff] }
 0x183   :  { %979 = vmatpush1.bf16.msra.mxu0 %v295_v43  ;;  %1143 = vmatpush1.bf16.msra.mxu1 %v297_v44  ;;  %v385_v43 = vld [vmem:[#allocation2 + $0x9b0] sm:$0xff]  ;;  %v392_v44 = vld [vmem:[#allocation2 + $0x9e8] sm:$0xff] }
 0x184   :  { %980 = vmatprep.subr.bf16.mxu0 %v304_v45  ;;  %1144 = vmatprep.subr.bf16.mxu1 %v306_v46  ;;  %v394_v45 = vld [vmem:[#allocation2 + $0x9f8] sm:$0xff]  ;;  %v391_v46 = vld [vmem:[#allocation2 + $0x9e0] sm:$0xff] }
 0x187   :  { %981 = vmatpush1.bf16.msra.mxu0 %v303_v47  ;;  %1145 = vmatpush1.bf16.msra.mxu1 %v305_v48  ;;  %v393_v47 = vld [vmem:[#allocation2 + $0x9f0] sm:$0xff]  ;;  %v400_v48 = vld [vmem:[#allocation2 + $0xa28] sm:$0xff] }
 0x188   :  { %982 = vmatprep.subr.bf16.mxu0 %v312_v49  ;;  %1146 = vmatprep.subr.bf16.mxu1 %v314_v50  ;;  %v402_v49 = vld [vmem:[#allocation2 + $0xa38] sm:$0xff]  ;;  %v399_v50 = vld [vmem:[#allocation2 + $0xa20] sm:$0xff] }
 0x18b   :  { %983 = vmatpush1.bf16.msra.mxu0 %v311_v51  ;;  %1147 = vmatpush1.bf16.msra.mxu1 %v313_v52  ;;  %v401_v51 = vld [vmem:[#allocation2 + $0xa30] sm:$0xff]  ;;  %v408_v52 = vld [vmem:[#allocation2 + $0xa68] sm:$0xff] }
 0x18c   :  { %984 = vmatprep.subr.bf16.mxu0 %v320_v36  ;;  %1148 = vmatprep.subr.bf16.mxu1 %v322_v53  ;;  %v410_v36 = vld [vmem:[#allocation2 + $0xa78] sm:$0xff]  ;;  %v407_v53 = vld [vmem:[#allocation2 + $0xa60] sm:$0xff] }
 0x18f   :  { %985 = vmatpush1.bf16.msra.mxu0 %v319_v54  ;;  %1149 = vmatpush1.bf16.msra.mxu1 %v321_v55  ;;  %v409_v54 = vld [vmem:[#allocation2 + $0xa70] sm:$0xff]  ;;  %v416_v55 = vld [vmem:[#allocation2 + $0xaa8] sm:$0xff] }
 0x190   :  { %986 = vmatprep.subr.bf16.mxu0 %v328_v56  ;;  %1150 = vmatprep.subr.bf16.mxu1 %v330_v41  ;;  %v418_v56 = vld [vmem:[#allocation2 + $0xab8] sm:$0xff]  ;;  %v415_v41 = vld [vmem:[#allocation2 + $0xaa0] sm:$0xff] }
 0x193   :  { %987 = vmatpush1.bf16.msra.mxu0 %v327_v58  ;;  %1151 = vmatpush1.bf16.msra.mxu1 %v329_v59  ;;  %v417_v58 = vld [vmem:[#allocation2 + $0xab0] sm:$0xff]  ;;  %v424_v59 = vld [vmem:[#allocation2 + $0xae8] sm:$0xff] }
 0x194   :  { %997 = vmatprep.subr.bf16.mxu0 %v336_v60  ;;  %1161 = vmatprep.subr.bf16.mxu1 %v338_v63  ;;  %v426_v60 = vld [vmem:[#allocation2 + $0xaf8] sm:$0xff]  ;;  %v423_v63 = vld [vmem:[#allocation2 + $0xae0] sm:$0xff] }
 0x196   :  { %989 = vmatmul.mubr.bf16.vlgmr.msra.gmra.mrb[4].mxu0 %v4799_v57  ;;  %1153 = vmatmul.mubr.bf16.vlgmr.msra.gmra.mrb[4].mxu1 %v4799_v57  ;;  %v362_v57 = vld [vmem:[#allocation2 + $0x8f8] sm:$0xff] }
 0x197   :  { %998 = vmatpush1.bf16.msra.mxu0 %v335_v17  ;;  %1162 = vmatpush1.bf16.msra.mxu1 %v337_v18  ;;  %v425_v17 = vld [vmem:[#allocation2 + $0xaf0] sm:$0xff]  ;;  %v432_v18 = vld [vmem:[#allocation2 + $0xb28] sm:$0xff] }
 0x198   :  { %999 = vmatprep.subr.bf16.mxu0 %v344_v19  ;;  %1163 = vmatprep.subr.bf16.mxu1 %v346_v20  ;;  %v434_v19 = vld [vmem:[#allocation2 + $0xb38] sm:$0xff]  ;;  %v431_v20 = vld [vmem:[#allocation2 + $0xb20] sm:$0xff] }
 0x199   :  { %1029 = vmatprep.mubr.bf16.mxu0 %v4803_v62  ;;  %1193 = vmatprep.mubr.bf16.mxu1 %v4803_v62  ;;  %v367_v62 = vld [vmem:[#allocation2 + $0x920] sm:$0xff] }
 0x19b   :  { %1000 = vmatpush1.bf16.msra.mxu0 %v343_v21  ;;  %1164 = vmatpush1.bf16.msra.mxu1 %v345_v22  ;;  %v433_v21 = vld [vmem:[#allocation2 + $0xb30] sm:$0xff]  ;;  %v440_v22 = vld [vmem:[#allocation2 + $0xb68] sm:$0xff] }
 0x19c   :  { %1001 = vmatprep.subr.bf16.mxu0 %v352_v23  ;;  %1165 = vmatprep.subr.bf16.mxu1 %v354_v24  ;;  %v442_v23 = vld [vmem:[#allocation2 + $0xb78] sm:$0xff]  ;;  %v439_v24 = vld [vmem:[#allocation2 + $0xb60] sm:$0xff] }
 0x19f   :  { %1002 = vmatpush1.bf16.msra.mxu0 %v351_v25  ;;  %1166 = vmatpush1.bf16.msra.mxu1 %v353_v26  ;;  %v441_v25 = vld [vmem:[#allocation2 + $0xb70] sm:$0xff]  ;;  %v448_v26 = vld [vmem:[#allocation2 + $0xba8] sm:$0xff] }
 0x1a0   :  { %1003 = vmatprep.subr.bf16.mxu0 %v360_v27  ;;  %1167 = vmatprep.subr.bf16.mxu1 %v362_v57  ;;  %v450_v27 = vld [vmem:[#allocation2 + $0xbb8] sm:$0xff]  ;;  %v447_v57 = vld [vmem:[#allocation2 + $0xba0] sm:$0xff] }
 0x1a3   :  { %1004 = vmatpush1.bf16.msra.mxu0 %v359_v28  ;;  %1168 = vmatpush1.bf16.msra.mxu1 %v361_v29  ;;  %v449_v28 = vld [vmem:[#allocation2 + $0xbb0] sm:$0xff]  ;;  %v456_v29 = vld [vmem:[#allocation2 + $0xbe8] sm:$0xff] }
 0x1a4   :  { %1005 = vmatprep.subr.bf16.mxu0 %v368_v30  ;;  %1169 = vmatprep.subr.bf16.mxu1 %v370_v31  ;;  %v458_v30 = vld [vmem:[#allocation2 + $0xbf8] sm:$0xff]  ;;  %v455_v31 = vld [vmem:[#allocation2 + $0xbe0] sm:$0xff] }
 0x1a7   :  { %1006 = vmatpush1.bf16.msra.mxu0 %v367_v62  ;;  %1170 = vmatpush1.bf16.msra.mxu1 %v369_v16  ;;  %v457_v62 = vld [vmem:[#allocation2 + $0xbf0] sm:$0xff]  ;;  %v464_v16 = vld [vmem:[#allocation2 + $0xc28] sm:$0xff] }
 0x1a8   :  { %1007 = vmatprep.subr.bf16.mxu0 %v376_v32  ;;  %1171 = vmatprep.subr.bf16.mxu1 %v378_v34  ;;  %v466_v32 = vld [vmem:[#allocation2 + $0xc38] sm:$0xff]  ;;  %v463_v34 = vld [vmem:[#allocation2 + $0xc20] sm:$0xff] }
 0x1ab   :  { %1008 = vmatpush1.bf16.msra.mxu0 %v375_v35  ;;  %1172 = vmatpush1.bf16.msra.mxu1 %v377_v37  ;;  %v465_v35 = vld [vmem:[#allocation2 + $0xc30] sm:$0xff]  ;;  %v472_v37 = vld [vmem:[#allocation2 + $0xc68] sm:$0xff] }
 0x1ac   :  { %1009 = vmatprep.subr.bf16.mxu0 %v384_v38  ;;  %1173 = vmatprep.subr.bf16.mxu1 %v386_v40  ;;  %v474_v38 = vld [vmem:[#allocation2 + $0xc78] sm:$0xff]  ;;  %v471_v40 = vld [vmem:[#allocation2 + $0xc60] sm:$0xff] }
 0x1af   :  { %1010 = vmatpush1.bf16.msra.mxu0 %v383_v42  ;;  %1174 = vmatpush1.bf16.msra.mxu1 %v385_v43  ;;  %v473_v42 = vld [vmem:[#allocation2 + $0xc70] sm:$0xff]  ;;  %v480_v43 = vld [vmem:[#allocation2 + $0xca8] sm:$0xff] }
 0x1b0   :  { %1011 = vmatprep.subr.bf16.mxu0 %v392_v44  ;;  %1175 = vmatprep.subr.bf16.mxu1 %v394_v45  ;;  %v482_v44 = vld [vmem:[#allocation2 + $0xcb8] sm:$0xff]  ;;  %v479_v45 = vld [vmem:[#allocation2 + $0xca0] sm:$0xff] }
 0x1b3   :  { %1012 = vmatpush1.bf16.msra.mxu0 %v391_v46  ;;  %1176 = vmatpush1.bf16.msra.mxu1 %v393_v47  ;;  %v481_v46 = vld [vmem:[#allocation2 + $0xcb0] sm:$0xff]  ;;  %v488_v47 = vld [vmem:[#allocation2 + $0xce8] sm:$0xff] }
 0x1b4   :  { %1013 = vmatprep.subr.bf16.mxu0 %v400_v48  ;;  %1177 = vmatprep.subr.bf16.mxu1 %v402_v49  ;;  %v487_v48 = vld [vmem:[#allocation2 + $0xce0] sm:$0xff]  ;;  %v489_v49 = vld [vmem:[#allocation2 + $0xcf0] sm:$0xff] }
 0x1b7   :  { %1014 = vmatpush1.bf16.msra.mxu0 %v399_v50  ;;  %1178 = vmatpush1.bf16.msra.mxu1 %v401_v51  ;;  %v496_v50 = vld [vmem:[#allocation2 + $0xd28] sm:$0xff]  ;;  %v498_v51 = vld [vmem:[#allocation2 + $0xd38] sm:$0xff] }
 0x1b8   :  { %1015 = vmatprep.subr.bf16.mxu0 %v408_v52  ;;  %1179 = vmatprep.subr.bf16.mxu1 %v410_v36  ;;  %v497_v52 = vld [vmem:[#allocation2 + $0xd30] sm:$0xff]  ;;  %v504_v36 = vld [vmem:[#allocation2 + $0xd68] sm:$0xff] }
 0x1bb   :  { %1016 = vmatpush1.bf16.msra.mxu0 %v407_v53  ;;  %1180 = vmatpush1.bf16.msra.mxu1 %v409_v54  ;;  %v506_v53 = vld [vmem:[#allocation2 + $0xd78] sm:$0xff]  ;;  %v503_v54 = vld [vmem:[#allocation2 + $0xd60] sm:$0xff] }
 0x1bc   :  { %1017 = vmatprep.subr.bf16.mxu0 %v416_v55  ;;  %1181 = vmatprep.subr.bf16.mxu1 %v418_v56  ;;  %v505_v55 = vld [vmem:[#allocation2 + $0xd70] sm:$0xff] }
 0x1bf   :  { %1018 = vmatpush1.bf16.msra.mxu0 %v415_v41  ;;  %1182 = vmatpush1.bf16.msra.mxu1 %v417_v58  ;;  %v512_v58 = vld [vmem:[#allocation2 + $0xda8] sm:$0xff] }
 0x1c0   :  { %1019 = vmatprep.subr.bf16.mxu0 %v424_v59  ;;  %1183 = vmatprep.subr.bf16.mxu1 %v426_v60  ;;  %v514_v59 = vld [vmem:[#allocation2 + $0xdb8] sm:$0xff] }
 0x1c3   :  { %1020 = vmatpush1.bf16.msra.mxu0 %v423_v63  ;;  %1184 = vmatpush1.bf16.msra.mxu1 %v425_v17 }
 0x1c4   :  { %1021 = vmatprep.subr.bf16.mxu0 %v432_v18  ;;  %1185 = vmatprep.subr.bf16.mxu1 %v434_v19 }
 0x1c7   :  { %1022 = vmatpush1.bf16.msra.mxu0 %v431_v20  ;;  %1186 = vmatpush1.bf16.msra.mxu1 %v433_v21 }
 0x1c8   :  { %1023 = vmatprep.subr.bf16.mxu0 %v440_v22  ;;  %1187 = vmatprep.subr.bf16.mxu1 %v442_v23 }
 0x1cb   :  { %1024 = vmatpush1.bf16.msra.mxu0 %v439_v24  ;;  %1188 = vmatpush1.bf16.msra.mxu1 %v441_v25  ;;  %v513_v25 = vld [vmem:[#allocation2 + $0xdb0] sm:$0xff] }
 0x1cc   :  { %1025 = vmatprep.subr.bf16.mxu0 %v448_v26  ;;  %1189 = vmatprep.subr.bf16.mxu1 %v450_v27  ;;  %v522_v27 = vld [vmem:[#allocation2 + $0xdf8] sm:$0xff] }
 0x1cf   :  { %1026 = vmatpush1.bf16.msra.mxu0 %v447_v57  ;;  %1190 = vmatpush1.bf16.msra.mxu1 %v449_v28 }
 0x1d0   :  { %1027 = vmatprep.subr.bf16.mxu0 %v456_v29  ;;  %1191 = vmatprep.subr.bf16.mxu1 %v458_v30  ;;  %v519_v29 = vld [vmem:[#allocation2 + $0xde0] sm:$0xff]  ;;  %v521_v30 = vld [vmem:[#allocation2 + $0xdf0] sm:$0xff] }
 0x1d3   :  { %1028 = vmatpush1.bf16.msra.mxu0 %v455_v31  ;;  %1192 = vmatpush1.bf16.msra.mxu1 %v457_v62 }
 0x1d4   :  { %1038 = vmatprep.subr.bf16.mxu0 %v464_v16  ;;  %1202 = vmatprep.subr.bf16.mxu1 %v466_v32  ;;  %v528_v16 = vld [vmem:[#allocation2 + $0xe28] sm:$0xff]  ;;  %v530_v32 = vld [vmem:[#allocation2 + $0xe38] sm:$0xff] }
 0x1d6   :  { %1030 = vmatmul.mubr.bf16.vlgmr.msra.gmra.mrb[4].mxu0 %v4811_v33  ;;  %1194 = vmatmul.mubr.bf16.vlgmr.msra.gmra.mrb[4].mxu1 %v4811_v33  ;;  %v490_v33 = vld [vmem:[#allocation2 + $0xcf8] sm:$0xff] }
 0x1d7   :  { %1039 = vmatpush1.bf16.msra.mxu0 %v463_v34  ;;  %1203 = vmatpush1.bf16.msra.mxu1 %v465_v35  ;;  %v527_v34 = vld [vmem:[#allocation2 + $0xe20] sm:$0xff]  ;;  %v529_v35 = vld [vmem:[#allocation2 + $0xe30] sm:$0xff] }
 0x1d8   :  { %1040 = vmatprep.subr.bf16.mxu0 %v472_v37  ;;  %1204 = vmatprep.subr.bf16.mxu1 %v474_v38  ;;  %v536_v37 = vld [vmem:[#allocation2 + $0xe68] sm:$0xff]  ;;  %v538_v38 = vld [vmem:[#allocation2 + $0xe78] sm:$0xff] }
 0x1d9   :  { %1070 = vmatprep.mubr.bf16.mxu0 %v4815_v39  ;;  %1234 = vmatprep.mubr.bf16.mxu1 %v4815_v39  ;;  %v495_v39 = vld [vmem:[#allocation2 + $0xd20] sm:$0xff] }
 0x1db   :  { %1041 = vmatpush1.bf16.msra.mxu0 %v471_v40  ;;  %1205 = vmatpush1.bf16.msra.mxu1 %v473_v42  ;;  %v535_v40 = vld [vmem:[#allocation2 + $0xe60] sm:$0xff]  ;;  %v537_v42 = vld [vmem:[#allocation2 + $0xe70] sm:$0xff] }
 0x1dc   :  { %1042 = vmatprep.subr.bf16.mxu0 %v480_v43  ;;  %1206 = vmatprep.subr.bf16.mxu1 %v482_v44  ;;  %v544_v43 = vld [vmem:[#allocation2 + $0xea8] sm:$0xff]  ;;  %v546_v44 = vld [vmem:[#allocation2 + $0xeb8] sm:$0xff] }
 0x1df   :  { %1043 = vmatpush1.bf16.msra.mxu0 %v479_v45  ;;  %1207 = vmatpush1.bf16.msra.mxu1 %v481_v46  ;;  %v543_v45 = vld [vmem:[#allocation2 + $0xea0] sm:$0xff]  ;;  %v545_v46 = vld [vmem:[#allocation2 + $0xeb0] sm:$0xff] }
 0x1e0   :  { %1044 = vmatprep.subr.bf16.mxu0 %v488_v47  ;;  %1208 = vmatprep.subr.bf16.mxu1 %v490_v33  ;;  %v552_v47 = vld [vmem:[#allocation2 + $0xee8] sm:$0xff]  ;;  %v554_v33 = vld [vmem:[#allocation2 + $0xef8] sm:$0xff] }
 0x1e3   :  { %1045 = vmatpush1.bf16.msra.mxu0 %v487_v48  ;;  %1209 = vmatpush1.bf16.msra.mxu1 %v489_v49  ;;  %v551_v48 = vld [vmem:[#allocation2 + $0xee0] sm:$0xff]  ;;  %v553_v49 = vld [vmem:[#allocation2 + $0xef0] sm:$0xff] }
 0x1e4   :  { %1046 = vmatprep.subr.bf16.mxu0 %v496_v50  ;;  %1210 = vmatprep.subr.bf16.mxu1 %v498_v51  ;;  %v560_v50 = vld [vmem:[#allocation2 + $0xf28] sm:$0xff]  ;;  %v562_v51 = vld [vmem:[#allocation2 + $0xf38] sm:$0xff] }
 0x1e7   :  { %1047 = vmatpush1.bf16.msra.mxu0 %v495_v39  ;;  %1211 = vmatpush1.bf16.msra.mxu1 %v497_v52  ;;  %v559_v39 = vld [vmem:[#allocation2 + $0xf20] sm:$0xff]  ;;  %v561_v52 = vld [vmem:[#allocation2 + $0xf30] sm:$0xff] }
 0x1e8   :  { %1048 = vmatprep.subr.bf16.mxu0 %v504_v36  ;;  %1212 = vmatprep.subr.bf16.mxu1 %v506_v53  ;;  %v568_v36 = vld [vmem:[#allocation2 + $0xf68] sm:$0xff]  ;;  %v570_v53 = vld [vmem:[#allocation2 + $0xf78] sm:$0xff] }
 0x1e9   :  { %v744_v56 = vpop.f32.mrb[0].mxu0  ;;  %v908_v41 = vpop.f32.mrb[0].mxu1 }
 0x1ea   :  { %v4842_v60 = vsub.f32 %v4702_v0, %v744_v56   ;;  %v746_v63 = vpop.f32.mrb[1].mxu0  ;;  %v910_v17 = vpop.f32.mrb[1].mxu1  ;;  %v4845_v18 = vsub.f32 %v4712_v2, %v908_v41   ;;  %v511_v0 = vld [vmem:[#allocation2 + $0xda0] sm:$0xff]  ;;  %v576_v56 = vld [vmem:[#allocation2 + $0xfa8] sm:$0xff]  ;;  %v578_v41 = vld [vmem:[#allocation2 + $0xfb8] sm:$0xff] }
 0x1eb   :  { %v4848_v19 = vsub.f32 %v4707_v1, %v746_v63   ;;  %v748_v20 = vpop.f32.mrb[2].mxu0  ;;  %v912_v21 = vpop.f32.mrb[2].mxu1  ;;  %1049 = vmatpush1.bf16.msra.mxu0 %v503_v54  ;;  %1213 = vmatpush1.bf16.msra.mxu1 %v505_v55  ;;  %v4855_v26 = vsub.f32 %v4717_v3, %v910_v17   ;;  %v520_v1 = vld [vmem:[#allocation2 + $0xde8] sm:$0xff]  ;;  %v567_v54 = vld [vmem:[#allocation2 + $0xf60] sm:$0xff]  ;;  %v569_v55 = vld [vmem:[#allocation2 + $0xf70] sm:$0xff] }
 0x1ec   :  { %v1251_v22 = vmul.f32 %v4842_v60, %v4842_v60  ;;  %v749_v23 = vpop.f32.mrb[3].mxu0  ;;  %v913_v24 = vpop.f32.mrb[3].mxu1  ;;  %1050 = vmatprep.subr.bf16.mxu0 %v512_v58  ;;  %1214 = vmatprep.subr.bf16.mxu1 %v514_v59  ;;  %v1253_v57 = vmul.f32 %v4845_v18, %v4845_v18  ;;  %v575_v58 = vld [vmem:[#allocation2 + $0xfa0] sm:$0xff]  ;;  %v577_v59 = vld [vmem:[#allocation2 + $0xfb0] sm:$0xff]  ;;  %v584_v63 = vld [vmem:[#allocation2 + $0xfe8] sm:$0xff] }
 0x1ed   :  { %v1252_v2 = vmul.f32 %v4848_v19, %v4848_v19  ;;  %v1254_v31 = vmul.f32 %v4855_v26, %v4855_v26  ;;  %v586_v17 = vld [vmem:[#allocation2 + $0xff8] sm:$0xff]  ;;  %v583_v20 = vld [vmem:[#allocation2 + $0xfe0] sm:$0xff]  ;;  %v585_v21 = vld [vmem:[#allocation2 + $0xff0] sm:$0xff] }
 0x1ef   :  { %v1259_v28 = vadd.f32 %v1252_v2, %v1251_v22  ;;  %1051 = vmatpush1.bf16.msra.mxu0 %v511_v0  ;;  %1215 = vmatpush1.bf16.msra.mxu1 %v513_v25 }
 0x1f0   :  { %1052 = vmatprep.subr.bf16.mxu0 %v520_v1  ;;  %1216 = vmatprep.subr.bf16.mxu1 %v522_v27 }
 0x1f1   :  { %v1260_v62 = vadd.f32 %v1259_v28, %v1253_v57 }
 0x1f3   :  { %v4861_v3 = vadd.f32 %v1260_v62, %v1254_v31  ;;  %1053 = vmatpush1.bf16.msra.mxu0 %v519_v29  ;;  %1217 = vmatpush1.bf16.msra.mxu1 %v521_v30 }
 0x1f4   :  { %1054 = vmatprep.subr.bf16.mxu0 %v528_v16  ;;  %1218 = vmatprep.subr.bf16.mxu1 %v530_v32 }
 0x1f7   :  { %1055 = vmatpush1.bf16.msra.mxu0 %v527_v34  ;;  %1219 = vmatpush1.bf16.msra.mxu1 %v529_v35 }
 0x1f8   :  { %1056 = vmatprep.subr.bf16.mxu0 %v536_v37  ;;  %1220 = vmatprep.subr.bf16.mxu1 %v538_v38 }
 0x1fb   :  { %1057 = vmatpush1.bf16.msra.mxu0 %v535_v40  ;;  %1221 = vmatpush1.bf16.msra.mxu1 %v537_v42 }
 0x1fc   :  { %1058 = vmatprep.subr.bf16.mxu0 %v544_v43  ;;  %1222 = vmatprep.subr.bf16.mxu1 %v546_v44  ;;  %v5558_v44 = vmov %v4767_v13 }
 0x1ff   :  { %1059 = vmatpush1.bf16.msra.mxu0 %v543_v45  ;;  %1223 = vmatpush1.bf16.msra.mxu1 %v545_v46  ;;  %v5559_v45 = vmov %v4762_v12  ;;  %v5560_v46 = vmov %v4757_v11 }
 0x200   :  { %1060 = vmatprep.subr.bf16.mxu0 %v552_v47  ;;  %1224 = vmatprep.subr.bf16.mxu1 %v554_v33  ;;  %v5561_v47 = vmov %v4752_v10  ;;  %v5562_v33 = vmov %v4747_v9 }
 0x203   :  { %1061 = vmatpush1.bf16.msra.mxu0 %v551_v48  ;;  %1225 = vmatpush1.bf16.msra.mxu1 %v553_v49  ;;  %v5563_v48 = vmov %v4742_v8 }
 0x204   :  { %1062 = vmatprep.subr.bf16.mxu0 %v560_v50  ;;  %1226 = vmatprep.subr.bf16.mxu1 %v562_v51 }
 0x207   :  { %1063 = vmatpush1.bf16.msra.mxu0 %v559_v39  ;;  %1227 = vmatpush1.bf16.msra.mxu1 %v561_v52 }
 0x208   :  { %1064 = vmatprep.subr.bf16.mxu0 %v568_v36  ;;  %1228 = vmatprep.subr.bf16.mxu1 %v570_v53 }
 0x20b   :  { %1065 = vmatpush1.bf16.msra.mxu0 %v567_v54  ;;  %1229 = vmatpush1.bf16.msra.mxu1 %v569_v55 }
 0x20c   :  { %1066 = vmatprep.subr.bf16.mxu0 %v576_v56  ;;  %1230 = vmatprep.subr.bf16.mxu1 %v578_v41 }
 0x20f   :  { %1067 = vmatpush1.bf16.msra.mxu0 %v575_v58  ;;  %1231 = vmatpush1.bf16.msra.mxu1 %v577_v59 }
 0x210   :  { %1068 = vmatprep.subr.bf16.mxu0 %v584_v63  ;;  %1232 = vmatprep.subr.bf16.mxu1 %v586_v17 }
 0x213   :  { %1069 = vmatpush1.bf16.msra.mxu0 %v583_v20  ;;  %1233 = vmatpush1.bf16.msra.mxu1 %v585_v21 }
 0x216   :  { %1071 = vmatmul.mubr.bf16.vlgmr.msra.gmra.mrb[4].mxu0 %v4823_v61  ;;  %1235 = vmatmul.mubr.bf16.vlgmr.msra.gmra.mrb[4].mxu1 %v4823_v61 }
 0x2e9   :  { %v1072_v22 = vpop.f32.mrb[4].mxu0  ;;  %v1236_v23 = vpop.f32.mrb[4].mxu1 }
 0x2ea   :  { %v1247_v24 = vsub.f32 %v4722_v4, %v1072_v22   ;;  %v1074_v0 = vpop.f32.mrb[5].mxu0  ;;  %v1238_v25 = vpop.f32.mrb[5].mxu1  ;;  %v1249_v28 = vsub.f32 %v4732_v6, %v1236_v23  }
 0x2eb   :  { %v1248_v2 = vsub.f32 %v4727_v5, %v1074_v0   ;;  %v1076_v1 = vpop.f32.mrb[6].mxu0  ;;  %v1240_v27 = vpop.f32.mrb[6].mxu1  ;;  %v1250_v61 = vsub.f32 %v4737_v7, %v1238_v25   ;;  %v5557_v7 = vmov %v4772_v14 }
 0x2ec   :  { %v1255_v57 = vmul.f32 %v1247_v24, %v1247_v24  ;;  %v1077_v29 = vpop.f32.mrb[7].mxu0  ;;  %v1241_v30 = vpop.f32.mrb[7].mxu1  ;;  %v1257_v16 = vmul.f32 %v1249_v28, %v1249_v28 }
 0x2ed   :  { %v1256_v31 = vmul.f32 %v1248_v2, %v1248_v2  ;;  %v1258_v34 = vmul.f32 %v1250_v61, %v1250_v61 }
 0x2ee   :  { %v1262_v62 = vadd.f32 %v4861_v3, %v1255_v57  ;;  %v5556_v3 = vmov %v4777_v15 }
 0x2f0   :  { %v1263_v32 = vadd.f32 %v1262_v62, %v1256_v31 }
 0x2f2   :  { %v1264_v4 = vadd.f32 %v1263_v32, %v1257_v16 }
 0x2f4   :  { %v1265_v35 = vadd.f32 %v1264_v4, %v1258_v34 }
 0x2f6   :  { %1266 = vadd.xlane.f32.xlu0 %v1265_v35 }
 0x383   :  { %v1267_v37 = vpop.xlane.xlu0 %1266  }
 0x384   :  { %v1268_v5 = vrot.slane %v1267_v37, 4 }
 0x386   :  { %v1269_v38 = vmax.f32 %v1267_v37, %v1268_v5 }
 0x388   :  { %v1270_v40 = vrot.slane %v1269_v38, 2 }
 0x38a   :  { %v1271_v42 = vmax.f32 %v1269_v38, %v1270_v40 }
 0x38c   :  { %v1272_v43 = vrot.slane %v1271_v42, 1 }
 0x38e   :  { %v1273_v6 = vmax.f32 %v1271_v42, %v1272_v43 }
 0x390   :  { %3586 = vpush %v1273_v6 }
 0x3c1   :  { %s3587_s1 = spop %3586 }
 0x3c2   :  { %p3383_p0 = scmp.ge.f32.partialorder %s3587_s1, 1e-06 }
 0x3c3   :  { %v5564_v49 = vmov (%p3383_p0), %v1250_v61  ;;  %v5565_v50 = vmov (%p3383_p0), %v1249_v28  ;;  %v5566_v51 = vmov (%p3383_p0), %v1248_v2  ;;  %v5567_v39 = vmov (%p3383_p0), %v1247_v24  ;;  %s4960_s4 = smov (%p3383_p0), 0  }
 0x3c4   :  { %3385 = sbr.rel (!%p3383_p0) target bundleno = 3102 (0xc1e), region = 37  ;;  %v5568_v52 = vmov (%p3383_p0), %v4855_v26  ;;  %v5569_v36 = vmov (%p3383_p0), %v4845_v18  ;;  %v5570_v53 = vmov (%p3383_p0), %v4848_v19  ;;  %v5571_v54 = vmov (%p3383_p0), %v4842_v60 }
 0x3cb LB: > { %v1318_v55 = vld [vmem:[#allocation2 + $0x8] sm:$0xff]  ;;  %v1320_v56 = vld [vmem:[#allocation2 + $0x18] sm:$0xff]  ;;  %v1317_v41 = vld [vmem:[#allocation2] sm:$0xff]  ;;  %v5042_v17 = vpack.c.bf16 %v4560_v53, %v4560_v53  ;;  %vm2555_vm1 = vcmp.gt.f32.partialorder %v4532_v37, 0.0  ;;  %s3329_s5 = sadd.s32 1, %s4632_s4   ;;  %s4632_s4 = sphi %s4960_s4, %s5596_s4   ;;  %v4628_v8 = vphi %v4742_v8, %v5595_v8   ;;  %v4624_v9 = vphi %v4747_v9, %v5594_v9   ;;  %v4620_v10 = vphi %v4752_v10, %v5593_v10   ;;  %v4616_v11 = vphi %v4757_v11, %v5592_v11   ;;  %v4612_v12 = vphi %v4762_v12, %v5591_v12   ;;  %v4608_v13 = vphi %v4767_v13, %v5590_v13   ;;  %v4604_v14 = vphi %v4772_v14, %v5589_v14   ;;  %v4600_v15 = vphi %v4777_v15, %v5588_v15   ;;  %v4596_v60 = vphi %v4842_v60, %v5587_v60   ;;  %v4592_v19 = vphi %v4848_v19, %v5586_v19   ;;  %v4588_v18 = vphi %v4845_v18, %v5382_v18   ;;  %v4584_v26 = vphi %v4855_v26, %v5585_v26   ;;  %v4580_v24 = vphi %v1247_v24, %v5584_v24   ;;  %v4576_v2 = vphi %v1248_v2, %v3289_v2   ;;  %v4572_v28 = vphi %v1249_v28, %v3290_v28   ;;  %v4568_v61 = vphi %v1250_v61, %v5583_v61   ;;  %v4564_v54 = vphi %v5571_v54, %v3321_v54   ;;  %v4560_v53 = vphi %v5570_v53, %v3322_v53   ;;  %v4556_v36 = vphi %v5569_v36, %v3323_v36   ;;  %v4552_v52 = vphi %v5568_v52, %v3324_v52   ;;  %v4548_v39 = vphi %v5567_v39, %v3325_v39   ;;  %v4544_v51 = vphi %v5566_v51, %v5582_v51   ;;  %v4540_v50 = vphi %v5565_v50, %v3327_v50   ;;  %v4536_v49 = vphi %v5564_v49, %v3328_v49   ;;  %v4532_v37 = vphi %v1267_v37, %v5581_v37  }
 0x3cc   : > { %1829 = vmatprep.subr.bf16.mxu0 %v1318_v55  ;;  %1993 = vmatprep.subr.bf16.mxu1 %v1320_v56  ;;  %v1319_v58 = vld [vmem:[#allocation2 + $0x10] sm:$0xff]  ;;  %v1326_v59 = vld [vmem:[#allocation2 + $0x48] sm:$0xff]  ;;  %v1328_v63 = vld [vmem:[#allocation2 + $0x58] sm:$0xff]  ;;  %p1303_p1 = scmp.lt.s32.totalorder %s3329_s5, 10  ;;  %s5596_s4 = smov %s3329_s5 }
 0x3cd   : > { %1830 = vmatpush1.bf16.msra.mxu0 %v1317_v41  ;;  %1994 = vmatpush1.bf16.msra.mxu1 %v1319_v58  ;;  %v1325_v20 = vld [vmem:[#allocation2 + $0x40] sm:$0xff]  ;;  %v1327_v21 = vld [vmem:[#allocation2 + $0x50] sm:$0xff]  ;;  %v1334_v22 = vld [vmem:[#allocation2 + $0x88] sm:$0xff] }
 0x3ce   : > { %1831 = vmatprep.subr.bf16.mxu0 %v1326_v59  ;;  %1995 = vmatprep.subr.bf16.mxu1 %v1328_v63  ;;  %v1336_v23 = vld [vmem:[#allocation2 + $0x98] sm:$0xff]  ;;  %v1333_v0 = vld [vmem:[#allocation2 + $0x80] sm:$0xff]  ;;  %v1335_v25 = vld [vmem:[#allocation2 + $0x90] sm:$0xff] }
 0x3cf   : > { %1861 = vmatprep.mubr.bf16.mxu0 %v5042_v17  ;;  %2025 = vmatprep.mubr.bf16.mxu1 %v5042_v17  ;;  %v1342_v1 = vld [vmem:[#allocation2 + $0xc8] sm:$0xff]  ;;  %v1344_v27 = vld [vmem:[#allocation2 + $0xd8] sm:$0xff]  ;;  %v1341_v57 = vld [vmem:[#allocation2 + $0xc0] sm:$0xff] }
 0x3d0   : > { %v1343_v29 = vld [vmem:[#allocation2 + $0xd0] sm:$0xff]  ;;  %v1350_v30 = vld [vmem:[#allocation2 + $0x108] sm:$0xff]  ;;  %v1352_v31 = vld [vmem:[#allocation2 + $0x118] sm:$0xff] }
 0x3d1   : > { %1832 = vmatpush1.bf16.msra.mxu0 %v1325_v20  ;;  %1996 = vmatpush1.bf16.msra.mxu1 %v1327_v21  ;;  %v1349_v62 = vld [vmem:[#allocation2 + $0x100] sm:$0xff]  ;;  %v1351_v16 = vld [vmem:[#allocation2 + $0x110] sm:$0xff]  ;;  %v1358_v32 = vld [vmem:[#allocation2 + $0x148] sm:$0xff] }
 0x3d2   : > { %1833 = vmatprep.subr.bf16.mxu0 %v1334_v22  ;;  %1997 = vmatprep.subr.bf16.mxu1 %v1336_v23  ;;  %v1360_v34 = vld [vmem:[#allocation2 + $0x158] sm:$0xff]  ;;  %v1357_v4 = vld [vmem:[#allocation2 + $0x140] sm:$0xff]  ;;  %v1359_v35 = vld [vmem:[#allocation2 + $0x150] sm:$0xff] }
 0x3d3   : > { %v1366_v5 = vld [vmem:[#allocation2 + $0x188] sm:$0xff]  ;;  %v1368_v38 = vld [vmem:[#allocation2 + $0x198] sm:$0xff]  ;;  %v1365_v40 = vld [vmem:[#allocation2 + $0x180] sm:$0xff] }
 0x3d4   : > { %v1367_v42 = vld [vmem:[#allocation2 + $0x190] sm:$0xff]  ;;  %v1374_v43 = vld [vmem:[#allocation2 + $0x1c8] sm:$0xff]  ;;  %v1376_v6 = vld [vmem:[#allocation2 + $0x1d8] sm:$0xff] }
 0x3d5   : > { %1834 = vmatpush1.bf16.msra.mxu0 %v1333_v0  ;;  %1998 = vmatpush1.bf16.msra.mxu1 %v1335_v25  ;;  %v1373_v3 = vld [vmem:[#allocation2 + $0x1c0] sm:$0xff]  ;;  %v1375_v7 = vld [vmem:[#allocation2 + $0x1d0] sm:$0xff]  ;;  %v1382_v44 = vld [vmem:[#allocation2 + $0x208] sm:$0xff] }
 0x3d6   : > { %1835 = vmatprep.subr.bf16.mxu0 %v1342_v1  ;;  %1999 = vmatprep.subr.bf16.mxu1 %v1344_v27  ;;  %v1384_v45 = vld [vmem:[#allocation2 + $0x218] sm:$0xff]  ;;  %v1381_v46 = vld [vmem:[#allocation2 + $0x200] sm:$0xff]  ;;  %v1383_v47 = vld [vmem:[#allocation2 + $0x210] sm:$0xff] }
 0x3d7   : > { %v1390_v33 = vld [vmem:[#allocation2 + $0x248] sm:$0xff]  ;;  %v1392_v48 = vld [vmem:[#allocation2 + $0x258] sm:$0xff]  ;;  %v1389_v55 = vld [vmem:[#allocation2 + $0x240] sm:$0xff] }
 0x3d8   : > { %v1391_v56 = vld [vmem:[#allocation2 + $0x250] sm:$0xff]  ;;  %v1398_v41 = vld [vmem:[#allocation2 + $0x288] sm:$0xff]  ;;  %v1400_v58 = vld [vmem:[#allocation2 + $0x298] sm:$0xff] }
 0x3d9   : > { %1836 = vmatpush1.bf16.msra.mxu0 %v1341_v57  ;;  %2000 = vmatpush1.bf16.msra.mxu1 %v1343_v29  ;;  %v1397_v59 = vld [vmem:[#allocation2 + $0x280] sm:$0xff]  ;;  %v1399_v63 = vld [vmem:[#allocation2 + $0x290] sm:$0xff]  ;;  %v1406_v20 = vld [vmem:[#allocation2 + $0x2c8] sm:$0xff] }
 0x3da   : > { %1837 = vmatprep.subr.bf16.mxu0 %v1350_v30  ;;  %2001 = vmatprep.subr.bf16.mxu1 %v1352_v31  ;;  %v1408_v21 = vld [vmem:[#allocation2 + $0x2d8] sm:$0xff]  ;;  %v1405_v22 = vld [vmem:[#allocation2 + $0x2c0] sm:$0xff]  ;;  %v1407_v23 = vld [vmem:[#allocation2 + $0x2d0] sm:$0xff] }
 0x3db   : > { %v1414_v0 = vld [vmem:[#allocation2 + $0x308] sm:$0xff]  ;;  %v1416_v25 = vld [vmem:[#allocation2 + $0x318] sm:$0xff]  ;;  %v1413_v1 = vld [vmem:[#allocation2 + $0x300] sm:$0xff] }
 0x3dc   : > { %v1415_v27 = vld [vmem:[#allocation2 + $0x310] sm:$0xff]  ;;  %v1422_v57 = vld [vmem:[#allocation2 + $0x348] sm:$0xff]  ;;  %v1424_v29 = vld [vmem:[#allocation2 + $0x358] sm:$0xff] }
 0x3dd   : > { %1838 = vmatpush1.bf16.msra.mxu0 %v1349_v62  ;;  %2002 = vmatpush1.bf16.msra.mxu1 %v1351_v16  ;;  %v1421_v30 = vld [vmem:[#allocation2 + $0x340] sm:$0xff]  ;;  %v1423_v31 = vld [vmem:[#allocation2 + $0x350] sm:$0xff]  ;;  %v1430_v62 = vld [vmem:[#allocation2 + $0x388] sm:$0xff] }
 0x3de   : > { %1839 = vmatprep.subr.bf16.mxu0 %v1358_v32  ;;  %2003 = vmatprep.subr.bf16.mxu1 %v1360_v34  ;;  %v1432_v16 = vld [vmem:[#allocation2 + $0x398] sm:$0xff]  ;;  %v1429_v32 = vld [vmem:[#allocation2 + $0x380] sm:$0xff]  ;;  %v1431_v34 = vld [vmem:[#allocation2 + $0x390] sm:$0xff] }
 0x3e1   : > { %1840 = vmatpush1.bf16.msra.mxu0 %v1357_v4  ;;  %2004 = vmatpush1.bf16.msra.mxu1 %v1359_v35  ;;  %v1438_v4 = vld [vmem:[#allocation2 + $0x3c8] sm:$0xff]  ;;  %v1440_v35 = vld [vmem:[#allocation2 + $0x3d8] sm:$0xff] }
 0x3e2   : > { %1841 = vmatprep.subr.bf16.mxu0 %v1366_v5  ;;  %2005 = vmatprep.subr.bf16.mxu1 %v1368_v38  ;;  %v1437_v5 = vld [vmem:[#allocation2 + $0x3c0] sm:$0xff]  ;;  %v1439_v38 = vld [vmem:[#allocation2 + $0x3d0] sm:$0xff] }
 0x3e5   : > { %1842 = vmatpush1.bf16.msra.mxu0 %v1365_v40  ;;  %2006 = vmatpush1.bf16.msra.mxu1 %v1367_v42  ;;  %v1446_v40 = vld [vmem:[#allocation2 + $0x408] sm:$0xff]  ;;  %v1448_v42 = vld [vmem:[#allocation2 + $0x418] sm:$0xff] }
 0x3e6   : > { %1843 = vmatprep.subr.bf16.mxu0 %v1374_v43  ;;  %2007 = vmatprep.subr.bf16.mxu1 %v1376_v6  ;;  %v5048_v43 = vpack.c.bf16 %v4564_v54, %v4564_v54  ;;  %v1445_v6 = vld [vmem:[#allocation2 + $0x400] sm:$0xff] }
 0x3e9   : > { %1844 = vmatpush1.bf16.msra.mxu0 %v1373_v3  ;;  %2008 = vmatpush1.bf16.msra.mxu1 %v1375_v7  ;;  %v1447_v3 = vld [vmem:[#allocation2 + $0x410] sm:$0xff]  ;;  %v1454_v7 = vld [vmem:[#allocation2 + $0x448] sm:$0xff] }
 0x3ea   : > { %1845 = vmatprep.subr.bf16.mxu0 %v1382_v44  ;;  %2009 = vmatprep.subr.bf16.mxu1 %v1384_v45  ;;  %v1456_v44 = vld [vmem:[#allocation2 + $0x458] sm:$0xff]  ;;  %v5052_v45 = vpack.c.bf16 %v4552_v52, %v4552_v52 }
 0x3ed   : > { %1846 = vmatpush1.bf16.msra.mxu0 %v1381_v46  ;;  %2010 = vmatpush1.bf16.msra.mxu1 %v1383_v47  ;;  %v1453_v46 = vld [vmem:[#allocation2 + $0x440] sm:$0xff]  ;;  %v1455_v47 = vld [vmem:[#allocation2 + $0x450] sm:$0xff] }
 0x3ee   : > { %1847 = vmatprep.subr.bf16.mxu0 %v1390_v33  ;;  %2011 = vmatprep.subr.bf16.mxu1 %v1392_v48  ;;  %v1462_v33 = vld [vmem:[#allocation2 + $0x488] sm:$0xff]  ;;  %v1464_v48 = vld [vmem:[#allocation2 + $0x498] sm:$0xff] }
 0x3f1   : > { %1848 = vmatpush1.bf16.msra.mxu0 %v1389_v55  ;;  %2012 = vmatpush1.bf16.msra.mxu1 %v1391_v56  ;;  %v1461_v55 = vld [vmem:[#allocation2 + $0x480] sm:$0xff]  ;;  %v1463_v56 = vld [vmem:[#allocation2 + $0x490] sm:$0xff] }
 0x3f2   : > { %1849 = vmatprep.subr.bf16.mxu0 %v1398_v41  ;;  %2013 = vmatprep.subr.bf16.mxu1 %v1400_v58  ;;  %v1470_v41 = vld [vmem:[#allocation2 + $0x4c8] sm:$0xff]  ;;  %v1472_v58 = vld [vmem:[#allocation2 + $0x4d8] sm:$0xff] }
 0x3f5   : > { %1850 = vmatpush1.bf16.msra.mxu0 %v1397_v59  ;;  %2014 = vmatpush1.bf16.msra.mxu1 %v1399_v63  ;;  %v1469_v59 = vld [vmem:[#allocation2 + $0x4c0] sm:$0xff]  ;;  %v1471_v63 = vld [vmem:[#allocation2 + $0x4d0] sm:$0xff] }
 0x3f6   : > { %1851 = vmatprep.subr.bf16.mxu0 %v1406_v20  ;;  %2015 = vmatprep.subr.bf16.mxu1 %v1408_v21  ;;  %v1478_v20 = vld [vmem:[#allocation2 + $0x508] sm:$0xff]  ;;  %v1480_v21 = vld [vmem:[#allocation2 + $0x518] sm:$0xff] }
 0x3f9   : > { %1852 = vmatpush1.bf16.msra.mxu0 %v1405_v22  ;;  %2016 = vmatpush1.bf16.msra.mxu1 %v1407_v23  ;;  %v1477_v22 = vld [vmem:[#allocation2 + $0x500] sm:$0xff]  ;;  %v1479_v23 = vld [vmem:[#allocation2 + $0x510] sm:$0xff] }
 0x3fa   : > { %1853 = vmatprep.subr.bf16.mxu0 %v1414_v0  ;;  %2017 = vmatprep.subr.bf16.mxu1 %v1416_v25  ;;  %v1486_v0 = vld [vmem:[#allocation2 + $0x548] sm:$0xff]  ;;  %v1488_v25 = vld [vmem:[#allocation2 + $0x558] sm:$0xff] }
 0x3fd   : > { %1854 = vmatpush1.bf16.msra.mxu0 %v1413_v1  ;;  %2018 = vmatpush1.bf16.msra.mxu1 %v1415_v27  ;;  %v1485_v1 = vld [vmem:[#allocation2 + $0x540] sm:$0xff]  ;;  %v1487_v27 = vld [vmem:[#allocation2 + $0x550] sm:$0xff] }
 0x3fe   : > { %1855 = vmatprep.subr.bf16.mxu0 %v1422_v57  ;;  %2019 = vmatprep.subr.bf16.mxu1 %v1424_v29  ;;  %v1494_v57 = vld [vmem:[#allocation2 + $0x588] sm:$0xff]  ;;  %v1496_v29 = vld [vmem:[#allocation2 + $0x598] sm:$0xff] }
 0x401   : > { %1856 = vmatpush1.bf16.msra.mxu0 %v1421_v30  ;;  %2020 = vmatpush1.bf16.msra.mxu1 %v1423_v31  ;;  %v1493_v30 = vld [vmem:[#allocation2 + $0x580] sm:$0xff]  ;;  %v1495_v31 = vld [vmem:[#allocation2 + $0x590] sm:$0xff] }
 0x402   : > { %1857 = vmatprep.subr.bf16.mxu0 %v1430_v62  ;;  %2021 = vmatprep.subr.bf16.mxu1 %v1432_v16  ;;  %v1502_v62 = vld [vmem:[#allocation2 + $0x5c8] sm:$0xff]  ;;  %v1504_v16 = vld [vmem:[#allocation2 + $0x5d8] sm:$0xff] }
 0x405   : > { %1858 = vmatpush1.bf16.msra.mxu0 %v1429_v32  ;;  %2022 = vmatpush1.bf16.msra.mxu1 %v1431_v34  ;;  %v1501_v32 = vld [vmem:[#allocation2 + $0x5c0] sm:$0xff]  ;;  %v1503_v34 = vld [vmem:[#allocation2 + $0x5d0] sm:$0xff] }
 0x406   : > { %1859 = vmatprep.subr.bf16.mxu0 %v1438_v4  ;;  %2023 = vmatprep.subr.bf16.mxu1 %v1440_v35  ;;  %v1510_v4 = vld [vmem:[#allocation2 + $0x608] sm:$0xff]  ;;  %v1512_v35 = vld [vmem:[#allocation2 + $0x618] sm:$0xff] }
 0x409   : > { %1860 = vmatpush1.bf16.msra.mxu0 %v1437_v5  ;;  %2024 = vmatpush1.bf16.msra.mxu1 %v1439_v38  ;;  %v1509_v5 = vld [vmem:[#allocation2 + $0x600] sm:$0xff]  ;;  %v1511_v38 = vld [vmem:[#allocation2 + $0x610] sm:$0xff] }
 0x40a   : > { %1870 = vmatprep.subr.bf16.mxu0 %v1446_v40  ;;  %2034 = vmatprep.subr.bf16.mxu1 %v1448_v42  ;;  %v1518_v40 = vld [vmem:[#allocation2 + $0x648] sm:$0xff]  ;;  %v1520_v42 = vld [vmem:[#allocation2 + $0x658] sm:$0xff] }
 0x40c   : > { %1862 = vmatmul.mubr.bf16.vlgmr.msra.gmra.mrb[0].mxu0 %v5048_v43  ;;  %2026 = vmatmul.mubr.bf16.vlgmr.msra.gmra.mrb[0].mxu1 %v5048_v43 }
 0x40d   : > { %1871 = vmatpush1.bf16.msra.mxu0 %v1445_v6  ;;  %2035 = vmatpush1.bf16.msra.mxu1 %v1447_v3  ;;  %v1517_v6 = vld [vmem:[#allocation2 + $0x640] sm:$0xff]  ;;  %v1519_v3 = vld [vmem:[#allocation2 + $0x650] sm:$0xff] }
 0x40e   : > { %1872 = vmatprep.subr.bf16.mxu0 %v1454_v7  ;;  %2036 = vmatprep.subr.bf16.mxu1 %v1456_v44  ;;  %v1526_v7 = vld [vmem:[#allocation2 + $0x688] sm:$0xff]  ;;  %v1528_v44 = vld [vmem:[#allocation2 + $0x698] sm:$0xff] }
 0x40f   : > { %1902 = vmatprep.mubr.bf16.mxu0 %v5052_v45  ;;  %2066 = vmatprep.mubr.bf16.mxu1 %v5052_v45 }
 0x411   : > { %1873 = vmatpush1.bf16.msra.mxu0 %v1453_v46  ;;  %2037 = vmatpush1.bf16.msra.mxu1 %v1455_v47  ;;  %v1525_v46 = vld [vmem:[#allocation2 + $0x680] sm:$0xff]  ;;  %v1527_v47 = vld [vmem:[#allocation2 + $0x690] sm:$0xff] }
 0x412   : > { %1874 = vmatprep.subr.bf16.mxu0 %v1462_v33  ;;  %2038 = vmatprep.subr.bf16.mxu1 %v1464_v48  ;;  %v1534_v33 = vld [vmem:[#allocation2 + $0x6c8] sm:$0xff]  ;;  %v1536_v48 = vld [vmem:[#allocation2 + $0x6d8] sm:$0xff] }
 0x415   : > { %1875 = vmatpush1.bf16.msra.mxu0 %v1461_v55  ;;  %2039 = vmatpush1.bf16.msra.mxu1 %v1463_v56  ;;  %v1533_v55 = vld [vmem:[#allocation2 + $0x6c0] sm:$0xff]  ;;  %v1535_v56 = vld [vmem:[#allocation2 + $0x6d0] sm:$0xff] }
 0x416   : > { %1876 = vmatprep.subr.bf16.mxu0 %v1470_v41  ;;  %2040 = vmatprep.subr.bf16.mxu1 %v1472_v58  ;;  %v1542_v41 = vld [vmem:[#allocation2 + $0x708] sm:$0xff]  ;;  %v1544_v58 = vld [vmem:[#allocation2 + $0x718] sm:$0xff] }
 0x419   : > { %1877 = vmatpush1.bf16.msra.mxu0 %v1469_v59  ;;  %2041 = vmatpush1.bf16.msra.mxu1 %v1471_v63  ;;  %v1541_v59 = vld [vmem:[#allocation2 + $0x700] sm:$0xff]  ;;  %v1543_v63 = vld [vmem:[#allocation2 + $0x710] sm:$0xff] }
 0x41a   : > { %1878 = vmatprep.subr.bf16.mxu0 %v1478_v20  ;;  %2042 = vmatprep.subr.bf16.mxu1 %v1480_v21  ;;  %v1550_v20 = vld [vmem:[#allocation2 + $0x748] sm:$0xff]  ;;  %v1552_v21 = vld [vmem:[#allocation2 + $0x758] sm:$0xff] }
 0x41d   : > { %1879 = vmatpush1.bf16.msra.mxu0 %v1477_v22  ;;  %2043 = vmatpush1.bf16.msra.mxu1 %v1479_v23  ;;  %v1549_v22 = vld [vmem:[#allocation2 + $0x740] sm:$0xff]  ;;  %v1551_v23 = vld [vmem:[#allocation2 + $0x750] sm:$0xff] }
 0x41e   : > { %1880 = vmatprep.subr.bf16.mxu0 %v1486_v0  ;;  %2044 = vmatprep.subr.bf16.mxu1 %v1488_v25  ;;  %v1558_v0 = vld [vmem:[#allocation2 + $0x788] sm:$0xff]  ;;  %v1560_v25 = vld [vmem:[#allocation2 + $0x798] sm:$0xff] }
 0x421   : > { %1881 = vmatpush1.bf16.msra.mxu0 %v1485_v1  ;;  %2045 = vmatpush1.bf16.msra.mxu1 %v1487_v27  ;;  %v1557_v1 = vld [vmem:[#allocation2 + $0x780] sm:$0xff]  ;;  %v1559_v27 = vld [vmem:[#allocation2 + $0x790] sm:$0xff] }
 0x422   : > { %1882 = vmatprep.subr.bf16.mxu0 %v1494_v57  ;;  %2046 = vmatprep.subr.bf16.mxu1 %v1496_v29  ;;  %v1566_v57 = vld [vmem:[#allocation2 + $0x7c8] sm:$0xff]  ;;  %v1568_v29 = vld [vmem:[#allocation2 + $0x7d8] sm:$0xff] }
 0x425   : > { %1883 = vmatpush1.bf16.msra.mxu0 %v1493_v30  ;;  %2047 = vmatpush1.bf16.msra.mxu1 %v1495_v31  ;;  %v1565_v30 = vld [vmem:[#allocation2 + $0x7c0] sm:$0xff]  ;;  %v1567_v31 = vld [vmem:[#allocation2 + $0x7d0] sm:$0xff] }
 0x426   : > { %1884 = vmatprep.subr.bf16.mxu0 %v1502_v62  ;;  %2048 = vmatprep.subr.bf16.mxu1 %v1504_v16  ;;  %v1574_v62 = vld [vmem:[#allocation2 + $0x808] sm:$0xff]  ;;  %v1576_v16 = vld [vmem:[#allocation2 + $0x818] sm:$0xff] }
 0x429   : > { %1885 = vmatpush1.bf16.msra.mxu0 %v1501_v32  ;;  %2049 = vmatpush1.bf16.msra.mxu1 %v1503_v34  ;;  %v5060_v32 = vpack.c.bf16 %v4556_v36, %v4556_v36  ;;  %v1573_v34 = vld [vmem:[#allocation2 + $0x800] sm:$0xff] }
 0x42a   : > { %1886 = vmatprep.subr.bf16.mxu0 %v1510_v4  ;;  %2050 = vmatprep.subr.bf16.mxu1 %v1512_v35  ;;  %v1575_v4 = vld [vmem:[#allocation2 + $0x810] sm:$0xff]  ;;  %v1582_v35 = vld [vmem:[#allocation2 + $0x848] sm:$0xff] }
 0x42d   : > { %1887 = vmatpush1.bf16.msra.mxu0 %v1509_v5  ;;  %2051 = vmatpush1.bf16.msra.mxu1 %v1511_v38  ;;  %v1584_v5 = vld [vmem:[#allocation2 + $0x858] sm:$0xff]  ;;  %v5064_v38 = vpack.c.bf16 %v4544_v51, %v4544_v51 }
 0x42e   : > { %1888 = vmatprep.subr.bf16.mxu0 %v1518_v40  ;;  %2052 = vmatprep.subr.bf16.mxu1 %v1520_v42  ;;  %v1581_v40 = vld [vmem:[#allocation2 + $0x840] sm:$0xff]  ;;  %v1583_v42 = vld [vmem:[#allocation2 + $0x850] sm:$0xff] }
 0x431   : > { %1889 = vmatpush1.bf16.msra.mxu0 %v1517_v6  ;;  %2053 = vmatpush1.bf16.msra.mxu1 %v1519_v3  ;;  %v1590_v6 = vld [vmem:[#allocation2 + $0x888] sm:$0xff]  ;;  %v1592_v3 = vld [vmem:[#allocation2 + $0x898] sm:$0xff] }
 0x432   : > { %1890 = vmatprep.subr.bf16.mxu0 %v1526_v7  ;;  %2054 = vmatprep.subr.bf16.mxu1 %v1528_v44  ;;  %v1589_v7 = vld [vmem:[#allocation2 + $0x880] sm:$0xff]  ;;  %v1591_v44 = vld [vmem:[#allocation2 + $0x890] sm:$0xff] }
 0x435   : > { %1891 = vmatpush1.bf16.msra.mxu0 %v1525_v46  ;;  %2055 = vmatpush1.bf16.msra.mxu1 %v1527_v47  ;;  %v1598_v46 = vld [vmem:[#allocation2 + $0x8c8] sm:$0xff]  ;;  %v1600_v47 = vld [vmem:[#allocation2 + $0x8d8] sm:$0xff] }
 0x436   : > { %1892 = vmatprep.subr.bf16.mxu0 %v1534_v33  ;;  %2056 = vmatprep.subr.bf16.mxu1 %v1536_v48  ;;  %v1597_v33 = vld [vmem:[#allocation2 + $0x8c0] sm:$0xff]  ;;  %v1599_v48 = vld [vmem:[#allocation2 + $0x8d0] sm:$0xff] }
 0x439   : > { %1893 = vmatpush1.bf16.msra.mxu0 %v1533_v55  ;;  %2057 = vmatpush1.bf16.msra.mxu1 %v1535_v56  ;;  %v1606_v55 = vld [vmem:[#allocation2 + $0x908] sm:$0xff]  ;;  %v1608_v56 = vld [vmem:[#allocation2 + $0x918] sm:$0xff] }
 0x43a   : > { %1894 = vmatprep.subr.bf16.mxu0 %v1542_v41  ;;  %2058 = vmatprep.subr.bf16.mxu1 %v1544_v58  ;;  %v1605_v41 = vld [vmem:[#allocation2 + $0x900] sm:$0xff]  ;;  %v1607_v58 = vld [vmem:[#allocation2 + $0x910] sm:$0xff] }
 0x43d   : > { %1895 = vmatpush1.bf16.msra.mxu0 %v1541_v59  ;;  %2059 = vmatpush1.bf16.msra.mxu1 %v1543_v63  ;;  %v1614_v59 = vld [vmem:[#allocation2 + $0x948] sm:$0xff]  ;;  %v1616_v63 = vld [vmem:[#allocation2 + $0x958] sm:$0xff] }
 0x43e   : > { %1896 = vmatprep.subr.bf16.mxu0 %v1550_v20  ;;  %2060 = vmatprep.subr.bf16.mxu1 %v1552_v21  ;;  %v1613_v20 = vld [vmem:[#allocation2 + $0x940] sm:$0xff]  ;;  %v1615_v21 = vld [vmem:[#allocation2 + $0x950] sm:$0xff] }
 0x441   : > { %1897 = vmatpush1.bf16.msra.mxu0 %v1549_v22  ;;  %2061 = vmatpush1.bf16.msra.mxu1 %v1551_v23  ;;  %v1622_v22 = vld [vmem:[#allocation2 + $0x988] sm:$0xff]  ;;  %v1624_v23 = vld [vmem:[#allocation2 + $0x998] sm:$0xff] }
 0x442   : > { %1898 = vmatprep.subr.bf16.mxu0 %v1558_v0  ;;  %2062 = vmatprep.subr.bf16.mxu1 %v1560_v25  ;;  %v1621_v0 = vld [vmem:[#allocation2 + $0x980] sm:$0xff]  ;;  %v1623_v25 = vld [vmem:[#allocation2 + $0x990] sm:$0xff] }
 0x445   : > { %1899 = vmatpush1.bf16.msra.mxu0 %v1557_v1  ;;  %2063 = vmatpush1.bf16.msra.mxu1 %v1559_v27  ;;  %v1630_v1 = vld [vmem:[#allocation2 + $0x9c8] sm:$0xff]  ;;  %v1632_v27 = vld [vmem:[#allocation2 + $0x9d8] sm:$0xff] }
 0x446   : > { %1900 = vmatprep.subr.bf16.mxu0 %v1566_v57  ;;  %2064 = vmatprep.subr.bf16.mxu1 %v1568_v29  ;;  %v1629_v57 = vld [vmem:[#allocation2 + $0x9c0] sm:$0xff]  ;;  %v1631_v29 = vld [vmem:[#allocation2 + $0x9d0] sm:$0xff] }
 0x449   : > { %1901 = vmatpush1.bf16.msra.mxu0 %v1565_v30  ;;  %2065 = vmatpush1.bf16.msra.mxu1 %v1567_v31  ;;  %v1638_v30 = vld [vmem:[#allocation2 + $0xa08] sm:$0xff]  ;;  %v1640_v31 = vld [vmem:[#allocation2 + $0xa18] sm:$0xff] }
 0x44a   : > { %1911 = vmatprep.subr.bf16.mxu0 %v1574_v62  ;;  %2075 = vmatprep.subr.bf16.mxu1 %v1576_v16  ;;  %v1637_v62 = vld [vmem:[#allocation2 + $0xa00] sm:$0xff]  ;;  %v1639_v16 = vld [vmem:[#allocation2 + $0xa10] sm:$0xff] }
 0x44c   : > { %1903 = vmatmul.mubr.bf16.vlgmr.msra.gmra.mrb[0].mxu0 %v5060_v32  ;;  %2067 = vmatmul.mubr.bf16.vlgmr.msra.gmra.mrb[0].mxu1 %v5060_v32 }
 0x44d   : > { %1912 = vmatpush1.bf16.msra.mxu0 %v1573_v34  ;;  %2076 = vmatpush1.bf16.msra.mxu1 %v1575_v4  ;;  %v1646_v34 = vld [vmem:[#allocation2 + $0xa48] sm:$0xff]  ;;  %v1648_v4 = vld [vmem:[#allocation2 + $0xa58] sm:$0xff] }
 0x44e   : > { %1913 = vmatprep.subr.bf16.mxu0 %v1582_v35  ;;  %2077 = vmatprep.subr.bf16.mxu1 %v1584_v5  ;;  %v1645_v35 = vld [vmem:[#allocation2 + $0xa40] sm:$0xff]  ;;  %v1647_v5 = vld [vmem:[#allocation2 + $0xa50] sm:$0xff] }
 0x44f   : > { %1943 = vmatprep.mubr.bf16.mxu0 %v5064_v38  ;;  %2107 = vmatprep.mubr.bf16.mxu1 %v5064_v38 }
 0x451   : > { %1914 = vmatpush1.bf16.msra.mxu0 %v1581_v40  ;;  %2078 = vmatpush1.bf16.msra.mxu1 %v1583_v42  ;;  %v1654_v40 = vld [vmem:[#allocation2 + $0xa88] sm:$0xff]  ;;  %v1656_v42 = vld [vmem:[#allocation2 + $0xa98] sm:$0xff] }
 0x452   : > { %1915 = vmatprep.subr.bf16.mxu0 %v1590_v6  ;;  %2079 = vmatprep.subr.bf16.mxu1 %v1592_v3  ;;  %v1653_v6 = vld [vmem:[#allocation2 + $0xa80] sm:$0xff]  ;;  %v1655_v3 = vld [vmem:[#allocation2 + $0xa90] sm:$0xff] }
 0x455   : > { %1916 = vmatpush1.bf16.msra.mxu0 %v1589_v7  ;;  %2080 = vmatpush1.bf16.msra.mxu1 %v1591_v44  ;;  %v1662_v7 = vld [vmem:[#allocation2 + $0xac8] sm:$0xff]  ;;  %v1664_v44 = vld [vmem:[#allocation2 + $0xad8] sm:$0xff] }
 0x456   : > { %1917 = vmatprep.subr.bf16.mxu0 %v1598_v46  ;;  %2081 = vmatprep.subr.bf16.mxu1 %v1600_v47  ;;  %v1661_v46 = vld [vmem:[#allocation2 + $0xac0] sm:$0xff]  ;;  %v1663_v47 = vld [vmem:[#allocation2 + $0xad0] sm:$0xff] }
 0x459   : > { %1918 = vmatpush1.bf16.msra.mxu0 %v1597_v33  ;;  %2082 = vmatpush1.bf16.msra.mxu1 %v1599_v48  ;;  %v1670_v33 = vld [vmem:[#allocation2 + $0xb08] sm:$0xff]  ;;  %v1672_v48 = vld [vmem:[#allocation2 + $0xb18] sm:$0xff] }
 0x45a   : > { %1919 = vmatprep.subr.bf16.mxu0 %v1606_v55  ;;  %2083 = vmatprep.subr.bf16.mxu1 %v1608_v56  ;;  %v1669_v55 = vld [vmem:[#allocation2 + $0xb00] sm:$0xff]  ;;  %v1671_v56 = vld [vmem:[#allocation2 + $0xb10] sm:$0xff] }
 0x45d   : > { %1920 = vmatpush1.bf16.msra.mxu0 %v1605_v41  ;;  %2084 = vmatpush1.bf16.msra.mxu1 %v1607_v58  ;;  %v1678_v41 = vld [vmem:[#allocation2 + $0xb48] sm:$0xff]  ;;  %v1680_v58 = vld [vmem:[#allocation2 + $0xb58] sm:$0xff] }
 0x45e   : > { %1921 = vmatprep.subr.bf16.mxu0 %v1614_v59  ;;  %2085 = vmatprep.subr.bf16.mxu1 %v1616_v63  ;;  %v1677_v59 = vld [vmem:[#allocation2 + $0xb40] sm:$0xff]  ;;  %v1679_v63 = vld [vmem:[#allocation2 + $0xb50] sm:$0xff] }
 0x461   : > { %1922 = vmatpush1.bf16.msra.mxu0 %v1613_v20  ;;  %2086 = vmatpush1.bf16.msra.mxu1 %v1615_v21  ;;  %v1686_v20 = vld [vmem:[#allocation2 + $0xb88] sm:$0xff]  ;;  %v1688_v21 = vld [vmem:[#allocation2 + $0xb98] sm:$0xff] }
 0x462   : > { %1923 = vmatprep.subr.bf16.mxu0 %v1622_v22  ;;  %2087 = vmatprep.subr.bf16.mxu1 %v1624_v23  ;;  %v1685_v22 = vld [vmem:[#allocation2 + $0xb80] sm:$0xff]  ;;  %v1687_v23 = vld [vmem:[#allocation2 + $0xb90] sm:$0xff] }
 0x465   : > { %1924 = vmatpush1.bf16.msra.mxu0 %v1621_v0  ;;  %2088 = vmatpush1.bf16.msra.mxu1 %v1623_v25  ;;  %v1694_v0 = vld [vmem:[#allocation2 + $0xbc8] sm:$0xff]  ;;  %v1696_v25 = vld [vmem:[#allocation2 + $0xbd8] sm:$0xff] }
 0x466   : > { %1925 = vmatprep.subr.bf16.mxu0 %v1630_v1  ;;  %2089 = vmatprep.subr.bf16.mxu1 %v1632_v27  ;;  %v1693_v1 = vld [vmem:[#allocation2 + $0xbc0] sm:$0xff]  ;;  %v1695_v27 = vld [vmem:[#allocation2 + $0xbd0] sm:$0xff] }
 0x469   : > { %1926 = vmatpush1.bf16.msra.mxu0 %v1629_v57  ;;  %2090 = vmatpush1.bf16.msra.mxu1 %v1631_v29  ;;  %v1702_v57 = vld [vmem:[#allocation2 + $0xc08] sm:$0xff]  ;;  %v1704_v29 = vld [vmem:[#allocation2 + $0xc18] sm:$0xff] }
 0x46a   : > { %1927 = vmatprep.subr.bf16.mxu0 %v1638_v30  ;;  %2091 = vmatprep.subr.bf16.mxu1 %v1640_v31  ;;  %v5072_v30 = vpack.c.bf16 %v4548_v39, %v4548_v39  ;;  %v1701_v31 = vld [vmem:[#allocation2 + $0xc00] sm:$0xff] }
 0x46d   : > { %1928 = vmatpush1.bf16.msra.mxu0 %v1637_v62  ;;  %2092 = vmatpush1.bf16.msra.mxu1 %v1639_v16  ;;  %v1703_v62 = vld [vmem:[#allocation2 + $0xc10] sm:$0xff]  ;;  %v1710_v16 = vld [vmem:[#allocation2 + $0xc48] sm:$0xff] }
 0x46e   : > { %1929 = vmatprep.subr.bf16.mxu0 %v1646_v34  ;;  %2093 = vmatprep.subr.bf16.mxu1 %v1648_v4  ;;  %v1712_v34 = vld [vmem:[#allocation2 + $0xc58] sm:$0xff]  ;;  %v5076_v4 = vpack.c.bf16 %v4536_v49, %v4536_v49 }
 0x471   : > { %1930 = vmatpush1.bf16.msra.mxu0 %v1645_v35  ;;  %2094 = vmatpush1.bf16.msra.mxu1 %v1647_v5  ;;  %v1709_v35 = vld [vmem:[#allocation2 + $0xc40] sm:$0xff]  ;;  %v1711_v5 = vld [vmem:[#allocation2 + $0xc50] sm:$0xff] }
 0x472   : > { %1931 = vmatprep.subr.bf16.mxu0 %v1654_v40  ;;  %2095 = vmatprep.subr.bf16.mxu1 %v1656_v42  ;;  %v1718_v40 = vld [vmem:[#allocation2 + $0xc88] sm:$0xff]  ;;  %v1720_v42 = vld [vmem:[#allocation2 + $0xc98] sm:$0xff] }
 0x475   : > { %1932 = vmatpush1.bf16.msra.mxu0 %v1653_v6  ;;  %2096 = vmatpush1.bf16.msra.mxu1 %v1655_v3  ;;  %v1717_v6 = vld [vmem:[#allocation2 + $0xc80] sm:$0xff]  ;;  %v1719_v3 = vld [vmem:[#allocation2 + $0xc90] sm:$0xff] }
 0x476   : > { %1933 = vmatprep.subr.bf16.mxu0 %v1662_v7  ;;  %2097 = vmatprep.subr.bf16.mxu1 %v1664_v44  ;;  %v1726_v7 = vld [vmem:[#allocation2 + $0xcc8] sm:$0xff]  ;;  %v1728_v44 = vld [vmem:[#allocation2 + $0xcd8] sm:$0xff] }
 0x479   : > { %1934 = vmatpush1.bf16.msra.mxu0 %v1661_v46  ;;  %2098 = vmatpush1.bf16.msra.mxu1 %v1663_v47  ;;  %v1725_v46 = vld [vmem:[#allocation2 + $0xcc0] sm:$0xff]  ;;  %v1727_v47 = vld [vmem:[#allocation2 + $0xcd0] sm:$0xff] }
 0x47a   : > { %1935 = vmatprep.subr.bf16.mxu0 %v1670_v33  ;;  %2099 = vmatprep.subr.bf16.mxu1 %v1672_v48  ;;  %v1734_v33 = vld [vmem:[#allocation2 + $0xd08] sm:$0xff]  ;;  %v1736_v48 = vld [vmem:[#allocation2 + $0xd18] sm:$0xff] }
 0x47d   : > { %1936 = vmatpush1.bf16.msra.mxu0 %v1669_v55  ;;  %2100 = vmatpush1.bf16.msra.mxu1 %v1671_v56  ;;  %v1733_v55 = vld [vmem:[#allocation2 + $0xd00] sm:$0xff]  ;;  %v1735_v56 = vld [vmem:[#allocation2 + $0xd10] sm:$0xff] }
 0x47e   : > { %1937 = vmatprep.subr.bf16.mxu0 %v1678_v41  ;;  %2101 = vmatprep.subr.bf16.mxu1 %v1680_v58  ;;  %v1742_v41 = vld [vmem:[#allocation2 + $0xd48] sm:$0xff]  ;;  %v1744_v58 = vld [vmem:[#allocation2 + $0xd58] sm:$0xff] }
 0x481   : > { %1938 = vmatpush1.bf16.msra.mxu0 %v1677_v59  ;;  %2102 = vmatpush1.bf16.msra.mxu1 %v1679_v63  ;;  %v1741_v59 = vld [vmem:[#allocation2 + $0xd40] sm:$0xff]  ;;  %v1743_v63 = vld [vmem:[#allocation2 + $0xd50] sm:$0xff] }
 0x482   : > { %1939 = vmatprep.subr.bf16.mxu0 %v1686_v20  ;;  %2103 = vmatprep.subr.bf16.mxu1 %v1688_v21  ;;  %v1750_v20 = vld [vmem:[#allocation2 + $0xd88] sm:$0xff]  ;;  %v1752_v21 = vld [vmem:[#allocation2 + $0xd98] sm:$0xff] }
 0x485   : > { %1940 = vmatpush1.bf16.msra.mxu0 %v1685_v22  ;;  %2104 = vmatpush1.bf16.msra.mxu1 %v1687_v23  ;;  %v1749_v22 = vld [vmem:[#allocation2 + $0xd80] sm:$0xff]  ;;  %v1751_v23 = vld [vmem:[#allocation2 + $0xd90] sm:$0xff] }
 0x486   : > { %1941 = vmatprep.subr.bf16.mxu0 %v1694_v0  ;;  %2105 = vmatprep.subr.bf16.mxu1 %v1696_v25  ;;  %v1758_v0 = vld [vmem:[#allocation2 + $0xdc8] sm:$0xff]  ;;  %v1760_v25 = vld [vmem:[#allocation2 + $0xdd8] sm:$0xff] }
 0x489   : > { %1942 = vmatpush1.bf16.msra.mxu0 %v1693_v1  ;;  %2106 = vmatpush1.bf16.msra.mxu1 %v1695_v27  ;;  %v1757_v1 = vld [vmem:[#allocation2 + $0xdc0] sm:$0xff]  ;;  %v1759_v27 = vld [vmem:[#allocation2 + $0xdd0] sm:$0xff] }
 0x48a   : > { %1952 = vmatprep.subr.bf16.mxu0 %v1702_v57  ;;  %2116 = vmatprep.subr.bf16.mxu1 %v1704_v29  ;;  %v1766_v57 = vld [vmem:[#allocation2 + $0xe08] sm:$0xff]  ;;  %v1768_v29 = vld [vmem:[#allocation2 + $0xe18] sm:$0xff] }
 0x48c   : > { %1944 = vmatmul.mubr.bf16.vlgmr.msra.gmra.mrb[0].mxu0 %v5072_v30  ;;  %2108 = vmatmul.mubr.bf16.vlgmr.msra.gmra.mrb[0].mxu1 %v5072_v30 }
 0x48d   : > { %1953 = vmatpush1.bf16.msra.mxu0 %v1701_v31  ;;  %2117 = vmatpush1.bf16.msra.mxu1 %v1703_v62  ;;  %v1765_v31 = vld [vmem:[#allocation2 + $0xe00] sm:$0xff]  ;;  %v1767_v62 = vld [vmem:[#allocation2 + $0xe10] sm:$0xff] }
 0x48e   : > { %1954 = vmatprep.subr.bf16.mxu0 %v1710_v16  ;;  %2118 = vmatprep.subr.bf16.mxu1 %v1712_v34  ;;  %v1774_v16 = vld [vmem:[#allocation2 + $0xe48] sm:$0xff]  ;;  %v1776_v34 = vld [vmem:[#allocation2 + $0xe58] sm:$0xff] }
 0x48f   : > { %1984 = vmatprep.mubr.bf16.mxu0 %v5076_v4  ;;  %2148 = vmatprep.mubr.bf16.mxu1 %v5076_v4 }
 0x491   : > { %1955 = vmatpush1.bf16.msra.mxu0 %v1709_v35  ;;  %2119 = vmatpush1.bf16.msra.mxu1 %v1711_v5  ;;  %v1773_v35 = vld [vmem:[#allocation2 + $0xe40] sm:$0xff]  ;;  %v1775_v5 = vld [vmem:[#allocation2 + $0xe50] sm:$0xff] }
 0x492   : > { %1956 = vmatprep.subr.bf16.mxu0 %v1718_v40  ;;  %2120 = vmatprep.subr.bf16.mxu1 %v1720_v42  ;;  %v1782_v40 = vld [vmem:[#allocation2 + $0xe88] sm:$0xff]  ;;  %v1784_v42 = vld [vmem:[#allocation2 + $0xe98] sm:$0xff] }
 0x495   : > { %1957 = vmatpush1.bf16.msra.mxu0 %v1717_v6  ;;  %2121 = vmatpush1.bf16.msra.mxu1 %v1719_v3  ;;  %v1781_v6 = vld [vmem:[#allocation2 + $0xe80] sm:$0xff]  ;;  %v1783_v3 = vld [vmem:[#allocation2 + $0xe90] sm:$0xff] }
 0x496   : > { %1958 = vmatprep.subr.bf16.mxu0 %v1726_v7  ;;  %2122 = vmatprep.subr.bf16.mxu1 %v1728_v44  ;;  %v1790_v7 = vld [vmem:[#allocation2 + $0xec8] sm:$0xff]  ;;  %v1792_v44 = vld [vmem:[#allocation2 + $0xed8] sm:$0xff] }
 0x499   : > { %1959 = vmatpush1.bf16.msra.mxu0 %v1725_v46  ;;  %2123 = vmatpush1.bf16.msra.mxu1 %v1727_v47  ;;  %v1789_v46 = vld [vmem:[#allocation2 + $0xec0] sm:$0xff]  ;;  %v1791_v47 = vld [vmem:[#allocation2 + $0xed0] sm:$0xff] }
 0x49a   : > { %1960 = vmatprep.subr.bf16.mxu0 %v1734_v33  ;;  %2124 = vmatprep.subr.bf16.mxu1 %v1736_v48  ;;  %v1798_v33 = vld [vmem:[#allocation2 + $0xf08] sm:$0xff]  ;;  %v1800_v48 = vld [vmem:[#allocation2 + $0xf18] sm:$0xff] }
 0x49d   : > { %1961 = vmatpush1.bf16.msra.mxu0 %v1733_v55  ;;  %2125 = vmatpush1.bf16.msra.mxu1 %v1735_v56  ;;  %v1797_v55 = vld [vmem:[#allocation2 + $0xf00] sm:$0xff]  ;;  %v1799_v56 = vld [vmem:[#allocation2 + $0xf10] sm:$0xff] }
 0x49e   : > { %1962 = vmatprep.subr.bf16.mxu0 %v1742_v41  ;;  %2126 = vmatprep.subr.bf16.mxu1 %v1744_v58  ;;  %v1806_v41 = vld [vmem:[#allocation2 + $0xf48] sm:$0xff]  ;;  %v1808_v58 = vld [vmem:[#allocation2 + $0xf58] sm:$0xff] }
 0x4a1   : > { %1963 = vmatpush1.bf16.msra.mxu0 %v1741_v59  ;;  %2127 = vmatpush1.bf16.msra.mxu1 %v1743_v63  ;;  %v1805_v59 = vld [vmem:[#allocation2 + $0xf40] sm:$0xff]  ;;  %v1807_v63 = vld [vmem:[#allocation2 + $0xf50] sm:$0xff] }
 0x4a2   : > { %1964 = vmatprep.subr.bf16.mxu0 %v1750_v20  ;;  %2128 = vmatprep.subr.bf16.mxu1 %v1752_v21  ;;  %v1814_v20 = vld [vmem:[#allocation2 + $0xf88] sm:$0xff]  ;;  %v1816_v21 = vld [vmem:[#allocation2 + $0xf98] sm:$0xff] }
 0x4a5   : > { %1965 = vmatpush1.bf16.msra.mxu0 %v1749_v22  ;;  %2129 = vmatpush1.bf16.msra.mxu1 %v1751_v23  ;;  %v1813_v22 = vld [vmem:[#allocation2 + $0xf80] sm:$0xff]  ;;  %v1815_v23 = vld [vmem:[#allocation2 + $0xf90] sm:$0xff] }
 0x4a6   : > { %1966 = vmatprep.subr.bf16.mxu0 %v1758_v0  ;;  %2130 = vmatprep.subr.bf16.mxu1 %v1760_v25  ;;  %v1822_v0 = vld [vmem:[#allocation2 + $0xfc8] sm:$0xff]  ;;  %v1824_v25 = vld [vmem:[#allocation2 + $0xfd8] sm:$0xff] }
 0x4a9   : > { %1967 = vmatpush1.bf16.msra.mxu0 %v1757_v1  ;;  %2131 = vmatpush1.bf16.msra.mxu1 %v1759_v27  ;;  %v1821_v1 = vld [vmem:[#allocation2 + $0xfc0] sm:$0xff]  ;;  %v1823_v27 = vld [vmem:[#allocation2 + $0xfd0] sm:$0xff] }
 0x4aa   : > { %1968 = vmatprep.subr.bf16.mxu0 %v1766_v57  ;;  %2132 = vmatprep.subr.bf16.mxu1 %v1768_v29  ;;  %v1322_v57 = vld [vmem:[#allocation2 + $0x28] sm:$0xff]  ;;  %v1324_v29 = vld [vmem:[#allocation2 + $0x38] sm:$0xff] }
 0x4ad   : > { %1969 = vmatpush1.bf16.msra.mxu0 %v1765_v31  ;;  %2133 = vmatpush1.bf16.msra.mxu1 %v1767_v62  ;;  %v5084_v31 = vpack.c.bf16 %v4540_v50, %v4540_v50  ;;  %v1321_v62 = vld [vmem:[#allocation2 + $0x20] sm:$0xff] }
 0x4ae   : > { %1970 = vmatprep.subr.bf16.mxu0 %v1774_v16  ;;  %2134 = vmatprep.subr.bf16.mxu1 %v1776_v34  ;;  %v1323_v16 = vld [vmem:[#allocation2 + $0x30] sm:$0xff]  ;;  %v1330_v34 = vld [vmem:[#allocation2 + $0x68] sm:$0xff] }
 0x4b1   : > { %1971 = vmatpush1.bf16.msra.mxu0 %v1773_v35  ;;  %2135 = vmatpush1.bf16.msra.mxu1 %v1775_v5  ;;  %v1332_v35 = vld [vmem:[#allocation2 + $0x78] sm:$0xff]  ;;  %v1329_v5 = vld [vmem:[#allocation2 + $0x60] sm:$0xff] }
 0x4b2   : > { %1972 = vmatprep.subr.bf16.mxu0 %v1782_v40  ;;  %2136 = vmatprep.subr.bf16.mxu1 %v1784_v42  ;;  %v1331_v40 = vld [vmem:[#allocation2 + $0x70] sm:$0xff]  ;;  %v1338_v42 = vld [vmem:[#allocation2 + $0xa8] sm:$0xff] }
 0x4b5   : > { %1973 = vmatpush1.bf16.msra.mxu0 %v1781_v6  ;;  %2137 = vmatpush1.bf16.msra.mxu1 %v1783_v3  ;;  %v1340_v6 = vld [vmem:[#allocation2 + $0xb8] sm:$0xff]  ;;  %v1337_v3 = vld [vmem:[#allocation2 + $0xa0] sm:$0xff] }
 0x4b6   : > { %1974 = vmatprep.subr.bf16.mxu0 %v1790_v7  ;;  %2138 = vmatprep.subr.bf16.mxu1 %v1792_v44  ;;  %v1339_v7 = vld [vmem:[#allocation2 + $0xb0] sm:$0xff]  ;;  %v1346_v44 = vld [vmem:[#allocation2 + $0xe8] sm:$0xff] }
 0x4b9   : > { %1975 = vmatpush1.bf16.msra.mxu0 %v1789_v46  ;;  %2139 = vmatpush1.bf16.msra.mxu1 %v1791_v47  ;;  %v1348_v46 = vld [vmem:[#allocation2 + $0xf8] sm:$0xff]  ;;  %v1345_v47 = vld [vmem:[#allocation2 + $0xe0] sm:$0xff] }
 0x4ba   : > { %1976 = vmatprep.subr.bf16.mxu0 %v1798_v33  ;;  %2140 = vmatprep.subr.bf16.mxu1 %v1800_v48  ;;  %v1347_v33 = vld [vmem:[#allocation2 + $0xf0] sm:$0xff]  ;;  %v1354_v48 = vld [vmem:[#allocation2 + $0x128] sm:$0xff] }
 0x4bd   : > { %1977 = vmatpush1.bf16.msra.mxu0 %v1797_v55  ;;  %2141 = vmatpush1.bf16.msra.mxu1 %v1799_v56  ;;  %v1356_v55 = vld [vmem:[#allocation2 + $0x138] sm:$0xff]  ;;  %v1355_v56 = vld [vmem:[#allocation2 + $0x130] sm:$0xff] }
 0x4be   : > { %1978 = vmatprep.subr.bf16.mxu0 %v1806_v41  ;;  %2142 = vmatprep.subr.bf16.mxu1 %v1808_v58  ;;  %v1362_v41 = vld [vmem:[#allocation2 + $0x168] sm:$0xff]  ;;  %v1364_v58 = vld [vmem:[#allocation2 + $0x178] sm:$0xff] }
 0x4c1   : > { %1979 = vmatpush1.bf16.msra.mxu0 %v1805_v59  ;;  %2143 = vmatpush1.bf16.msra.mxu1 %v1807_v63  ;;  %v1361_v59 = vld [vmem:[#allocation2 + $0x160] sm:$0xff]  ;;  %v1363_v63 = vld [vmem:[#allocation2 + $0x170] sm:$0xff] }
 0x4c2   : > { %1980 = vmatprep.subr.bf16.mxu0 %v1814_v20  ;;  %2144 = vmatprep.subr.bf16.mxu1 %v1816_v21  ;;  %v1370_v20 = vld [vmem:[#allocation2 + $0x1a8] sm:$0xff]  ;;  %v1372_v21 = vld [vmem:[#allocation2 + $0x1b8] sm:$0xff] }
 0x4c5   : > { %1981 = vmatpush1.bf16.msra.mxu0 %v1813_v22  ;;  %2145 = vmatpush1.bf16.msra.mxu1 %v1815_v23  ;;  %v1369_v22 = vld [vmem:[#allocation2 + $0x1a0] sm:$0xff]  ;;  %v1371_v23 = vld [vmem:[#allocation2 + $0x1b0] sm:$0xff] }
 0x4c6   : > { %1982 = vmatprep.subr.bf16.mxu0 %v1822_v0  ;;  %2146 = vmatprep.subr.bf16.mxu1 %v1824_v25  ;;  %v1378_v0 = vld [vmem:[#allocation2 + $0x1e8] sm:$0xff]  ;;  %v1380_v25 = vld [vmem:[#allocation2 + $0x1f8] sm:$0xff] }
 0x4c9   : > { %1983 = vmatpush1.bf16.msra.mxu0 %v1821_v1  ;;  %2147 = vmatpush1.bf16.msra.mxu1 %v1823_v27  ;;  %v1377_v1 = vld [vmem:[#allocation2 + $0x1e0] sm:$0xff]  ;;  %v1379_v27 = vld [vmem:[#allocation2 + $0x1f0] sm:$0xff] }
 0x4ca   : > { %2157 = vmatprep.subr.bf16.mxu0 %v1322_v57  ;;  %2321 = vmatprep.subr.bf16.mxu1 %v1324_v29  ;;  %v1386_v57 = vld [vmem:[#allocation2 + $0x228] sm:$0xff]  ;;  %v1388_v29 = vld [vmem:[#allocation2 + $0x238] sm:$0xff] }
 0x4cc   : > { %1985 = vmatmul.mubr.bf16.vlgmr.msra.gmra.mrb[0].mxu0 %v5084_v31  ;;  %2149 = vmatmul.mubr.bf16.vlgmr.msra.gmra.mrb[0].mxu1 %v5084_v31 }
 0x4cd   : > { %2158 = vmatpush1.bf16.msra.mxu0 %v1321_v62  ;;  %2322 = vmatpush1.bf16.msra.mxu1 %v1323_v16  ;;  %v1385_v62 = vld [vmem:[#allocation2 + $0x220] sm:$0xff]  ;;  %v1387_v16 = vld [vmem:[#allocation2 + $0x230] sm:$0xff] }
 0x4ce   : > { %2159 = vmatprep.subr.bf16.mxu0 %v1330_v34  ;;  %2323 = vmatprep.subr.bf16.mxu1 %v1332_v35  ;;  %v1394_v34 = vld [vmem:[#allocation2 + $0x268] sm:$0xff]  ;;  %v1396_v35 = vld [vmem:[#allocation2 + $0x278] sm:$0xff] }
 0x4cf   : > { %2189 = vmatprep.mubr.bf16.mxu0 %v5042_v17  ;;  %2353 = vmatprep.mubr.bf16.mxu1 %v5042_v17  ;;  %v1353_v17 = vld [vmem:[#allocation2 + $0x120] sm:$0xff] }
 0x4d1   : > { %2160 = vmatpush1.bf16.msra.mxu0 %v1329_v5  ;;  %2324 = vmatpush1.bf16.msra.mxu1 %v1331_v40  ;;  %v1393_v5 = vld [vmem:[#allocation2 + $0x260] sm:$0xff]  ;;  %v1395_v40 = vld [vmem:[#allocation2 + $0x270] sm:$0xff] }
 0x4d2   : > { %2161 = vmatprep.subr.bf16.mxu0 %v1338_v42  ;;  %2325 = vmatprep.subr.bf16.mxu1 %v1340_v6  ;;  %v1402_v42 = vld [vmem:[#allocation2 + $0x2a8] sm:$0xff]  ;;  %v1404_v6 = vld [vmem:[#allocation2 + $0x2b8] sm:$0xff] }
 0x4d5   : > { %2162 = vmatpush1.bf16.msra.mxu0 %v1337_v3  ;;  %2326 = vmatpush1.bf16.msra.mxu1 %v1339_v7  ;;  %v1401_v3 = vld [vmem:[#allocation2 + $0x2a0] sm:$0xff]  ;;  %v1403_v7 = vld [vmem:[#allocation2 + $0x2b0] sm:$0xff] }
 0x4d6   : > { %2163 = vmatprep.subr.bf16.mxu0 %v1346_v44  ;;  %2327 = vmatprep.subr.bf16.mxu1 %v1348_v46  ;;  %v1410_v44 = vld [vmem:[#allocation2 + $0x2e8] sm:$0xff]  ;;  %v1412_v46 = vld [vmem:[#allocation2 + $0x2f8] sm:$0xff] }
 0x4d9   : > { %2164 = vmatpush1.bf16.msra.mxu0 %v1345_v47  ;;  %2328 = vmatpush1.bf16.msra.mxu1 %v1347_v33  ;;  %v1409_v47 = vld [vmem:[#allocation2 + $0x2e0] sm:$0xff]  ;;  %v1411_v33 = vld [vmem:[#allocation2 + $0x2f0] sm:$0xff] }
 0x4da   : > { %2165 = vmatprep.subr.bf16.mxu0 %v1354_v48  ;;  %2329 = vmatprep.subr.bf16.mxu1 %v1356_v55  ;;  %v1418_v48 = vld [vmem:[#allocation2 + $0x328] sm:$0xff]  ;;  %v1420_v55 = vld [vmem:[#allocation2 + $0x338] sm:$0xff] }
 0x4dd   : > { %2166 = vmatpush1.bf16.msra.mxu0 %v1353_v17  ;;  %2330 = vmatpush1.bf16.msra.mxu1 %v1355_v56  ;;  %v1417_v17 = vld [vmem:[#allocation2 + $0x320] sm:$0xff]  ;;  %v1419_v56 = vld [vmem:[#allocation2 + $0x330] sm:$0xff] }
 0x4de   : > { %2167 = vmatprep.subr.bf16.mxu0 %v1362_v41  ;;  %2331 = vmatprep.subr.bf16.mxu1 %v1364_v58  ;;  %v1426_v41 = vld [vmem:[#allocation2 + $0x368] sm:$0xff]  ;;  %v1428_v58 = vld [vmem:[#allocation2 + $0x378] sm:$0xff] }
 0x4e1   : > { %2168 = vmatpush1.bf16.msra.mxu0 %v1361_v59  ;;  %2332 = vmatpush1.bf16.msra.mxu1 %v1363_v63  ;;  %v1425_v59 = vld [vmem:[#allocation2 + $0x360] sm:$0xff]  ;;  %v1427_v63 = vld [vmem:[#allocation2 + $0x370] sm:$0xff] }
 0x4e2   : > { %2169 = vmatprep.subr.bf16.mxu0 %v1370_v20  ;;  %2333 = vmatprep.subr.bf16.mxu1 %v1372_v21  ;;  %v1434_v20 = vld [vmem:[#allocation2 + $0x3a8] sm:$0xff]  ;;  %v1436_v21 = vld [vmem:[#allocation2 + $0x3b8] sm:$0xff] }
 0x4e5   : > { %2170 = vmatpush1.bf16.msra.mxu0 %v1369_v22  ;;  %2334 = vmatpush1.bf16.msra.mxu1 %v1371_v23  ;;  %v1433_v22 = vld [vmem:[#allocation2 + $0x3a0] sm:$0xff]  ;;  %v1435_v23 = vld [vmem:[#allocation2 + $0x3b0] sm:$0xff] }
 0x4e6   : > { %2171 = vmatprep.subr.bf16.mxu0 %v1378_v0  ;;  %2335 = vmatprep.subr.bf16.mxu1 %v1380_v25  ;;  %v1442_v0 = vld [vmem:[#allocation2 + $0x3e8] sm:$0xff]  ;;  %v1444_v25 = vld [vmem:[#allocation2 + $0x3f8] sm:$0xff] }
 0x4e9   : > { %2172 = vmatpush1.bf16.msra.mxu0 %v1377_v1  ;;  %2336 = vmatpush1.bf16.msra.mxu1 %v1379_v27  ;;  %v1441_v1 = vld [vmem:[#allocation2 + $0x3e0] sm:$0xff]  ;;  %v1443_v27 = vld [vmem:[#allocation2 + $0x3f0] sm:$0xff] }
 0x4ea   : > { %2173 = vmatprep.subr.bf16.mxu0 %v1386_v57  ;;  %2337 = vmatprep.subr.bf16.mxu1 %v1388_v29  ;;  %v1450_v57 = vld [vmem:[#allocation2 + $0x428] sm:$0xff]  ;;  %v1452_v29 = vld [vmem:[#allocation2 + $0x438] sm:$0xff] }
 0x4ed   : > { %2174 = vmatpush1.bf16.msra.mxu0 %v1385_v62  ;;  %2338 = vmatpush1.bf16.msra.mxu1 %v1387_v16  ;;  %v1449_v62 = vld [vmem:[#allocation2 + $0x420] sm:$0xff]  ;;  %v1451_v16 = vld [vmem:[#allocation2 + $0x430] sm:$0xff] }
 0x4ee   : > { %2175 = vmatprep.subr.bf16.mxu0 %v1394_v34  ;;  %2339 = vmatprep.subr.bf16.mxu1 %v1396_v35  ;;  %v1458_v34 = vld [vmem:[#allocation2 + $0x468] sm:$0xff]  ;;  %v1460_v35 = vld [vmem:[#allocation2 + $0x478] sm:$0xff] }
 0x4f1   : > { %2176 = vmatpush1.bf16.msra.mxu0 %v1393_v5  ;;  %2340 = vmatpush1.bf16.msra.mxu1 %v1395_v40  ;;  %v1457_v5 = vld [vmem:[#allocation2 + $0x460] sm:$0xff]  ;;  %v1459_v40 = vld [vmem:[#allocation2 + $0x470] sm:$0xff] }
 0x4f2   : > { %2177 = vmatprep.subr.bf16.mxu0 %v1402_v42  ;;  %2341 = vmatprep.subr.bf16.mxu1 %v1404_v6  ;;  %v1466_v42 = vld [vmem:[#allocation2 + $0x4a8] sm:$0xff]  ;;  %v1468_v6 = vld [vmem:[#allocation2 + $0x4b8] sm:$0xff] }
 0x4f5   : > { %2178 = vmatpush1.bf16.msra.mxu0 %v1401_v3  ;;  %2342 = vmatpush1.bf16.msra.mxu1 %v1403_v7  ;;  %v1465_v3 = vld [vmem:[#allocation2 + $0x4a0] sm:$0xff]  ;;  %v1467_v7 = vld [vmem:[#allocation2 + $0x4b0] sm:$0xff] }
 0x4f6   : > { %2179 = vmatprep.subr.bf16.mxu0 %v1410_v44  ;;  %2343 = vmatprep.subr.bf16.mxu1 %v1412_v46  ;;  %v1474_v44 = vld [vmem:[#allocation2 + $0x4e8] sm:$0xff]  ;;  %v1473_v46 = vld [vmem:[#allocation2 + $0x4e0] sm:$0xff] }
 0x4f9   : > { %2180 = vmatpush1.bf16.msra.mxu0 %v1409_v47  ;;  %2344 = vmatpush1.bf16.msra.mxu1 %v1411_v33  ;;  %v1475_v47 = vld [vmem:[#allocation2 + $0x4f0] sm:$0xff]  ;;  %v1482_v33 = vld [vmem:[#allocation2 + $0x528] sm:$0xff] }
 0x4fa   : > { %2181 = vmatprep.subr.bf16.mxu0 %v1418_v48  ;;  %2345 = vmatprep.subr.bf16.mxu1 %v1420_v55  ;;  %v1484_v48 = vld [vmem:[#allocation2 + $0x538] sm:$0xff]  ;;  %v1483_v55 = vld [vmem:[#allocation2 + $0x530] sm:$0xff] }
 0x4fd   : > { %2182 = vmatpush1.bf16.msra.mxu0 %v1417_v17  ;;  %2346 = vmatpush1.bf16.msra.mxu1 %v1419_v56  ;;  %v1490_v17 = vld [vmem:[#allocation2 + $0x568] sm:$0xff]  ;;  %v1492_v56 = vld [vmem:[#allocation2 + $0x578] sm:$0xff] }
 0x4fe   : > { %2183 = vmatprep.subr.bf16.mxu0 %v1426_v41  ;;  %2347 = vmatprep.subr.bf16.mxu1 %v1428_v58  ;;  %v1489_v41 = vld [vmem:[#allocation2 + $0x560] sm:$0xff]  ;;  %v1491_v58 = vld [vmem:[#allocation2 + $0x570] sm:$0xff] }
 0x501   : > { %2184 = vmatpush1.bf16.msra.mxu0 %v1425_v59  ;;  %2348 = vmatpush1.bf16.msra.mxu1 %v1427_v63  ;;  %v1498_v59 = vld [vmem:[#allocation2 + $0x5a8] sm:$0xff]  ;;  %v1500_v63 = vld [vmem:[#allocation2 + $0x5b8] sm:$0xff] }
 0x502   : > { %2185 = vmatprep.subr.bf16.mxu0 %v1434_v20  ;;  %2349 = vmatprep.subr.bf16.mxu1 %v1436_v21  ;;  %v1497_v20 = vld [vmem:[#allocation2 + $0x5a0] sm:$0xff]  ;;  %v1499_v21 = vld [vmem:[#allocation2 + $0x5b0] sm:$0xff] }
 0x505   : > { %2186 = vmatpush1.bf16.msra.mxu0 %v1433_v22  ;;  %2350 = vmatpush1.bf16.msra.mxu1 %v1435_v23  ;;  %v1506_v22 = vld [vmem:[#allocation2 + $0x5e8] sm:$0xff]  ;;  %v1508_v23 = vld [vmem:[#allocation2 + $0x5f8] sm:$0xff] }
 0x506   : > { %2187 = vmatprep.subr.bf16.mxu0 %v1442_v0  ;;  %2351 = vmatprep.subr.bf16.mxu1 %v1444_v25  ;;  %v1505_v0 = vld [vmem:[#allocation2 + $0x5e0] sm:$0xff]  ;;  %v1507_v25 = vld [vmem:[#allocation2 + $0x5f0] sm:$0xff] }
 0x509   : > { %2188 = vmatpush1.bf16.msra.mxu0 %v1441_v1  ;;  %2352 = vmatpush1.bf16.msra.mxu1 %v1443_v27  ;;  %v1514_v1 = vld [vmem:[#allocation2 + $0x628] sm:$0xff]  ;;  %v1516_v27 = vld [vmem:[#allocation2 + $0x638] sm:$0xff] }
 0x50a   : > { %2198 = vmatprep.subr.bf16.mxu0 %v1450_v57  ;;  %2362 = vmatprep.subr.bf16.mxu1 %v1452_v29  ;;  %v1513_v57 = vld [vmem:[#allocation2 + $0x620] sm:$0xff]  ;;  %v1515_v29 = vld [vmem:[#allocation2 + $0x630] sm:$0xff] }
 0x50c   : > { %2190 = vmatmul.mubr.bf16.vlgmr.msra.gmra.mrb[4].mxu0 %v5048_v43  ;;  %2354 = vmatmul.mubr.bf16.vlgmr.msra.gmra.mrb[4].mxu1 %v5048_v43  ;;  %v1476_v43 = vld [vmem:[#allocation2 + $0x4f8] sm:$0xff] }
 0x50d   : > { %2199 = vmatpush1.bf16.msra.mxu0 %v1449_v62  ;;  %2363 = vmatpush1.bf16.msra.mxu1 %v1451_v16  ;;  %v1522_v62 = vld [vmem:[#allocation2 + $0x668] sm:$0xff]  ;;  %v1524_v16 = vld [vmem:[#allocation2 + $0x678] sm:$0xff] }
 0x50e   : > { %2200 = vmatprep.subr.bf16.mxu0 %v1458_v34  ;;  %2364 = vmatprep.subr.bf16.mxu1 %v1460_v35  ;;  %v1521_v34 = vld [vmem:[#allocation2 + $0x660] sm:$0xff]  ;;  %v1523_v35 = vld [vmem:[#allocation2 + $0x670] sm:$0xff] }
 0x50f   : > { %2230 = vmatprep.mubr.bf16.mxu0 %v5052_v45  ;;  %2394 = vmatprep.mubr.bf16.mxu1 %v5052_v45  ;;  %v1481_v45 = vld [vmem:[#allocation2 + $0x520] sm:$0xff] }
 0x511   : > { %2201 = vmatpush1.bf16.msra.mxu0 %v1457_v5  ;;  %2365 = vmatpush1.bf16.msra.mxu1 %v1459_v40  ;;  %v1530_v5 = vld [vmem:[#allocation2 + $0x6a8] sm:$0xff]  ;;  %v1532_v40 = vld [vmem:[#allocation2 + $0x6b8] sm:$0xff] }
 0x512   : > { %2202 = vmatprep.subr.bf16.mxu0 %v1466_v42  ;;  %2366 = vmatprep.subr.bf16.mxu1 %v1468_v6  ;;  %v1529_v42 = vld [vmem:[#allocation2 + $0x6a0] sm:$0xff]  ;;  %v1531_v6 = vld [vmem:[#allocation2 + $0x6b0] sm:$0xff] }
 0x515   : > { %2203 = vmatpush1.bf16.msra.mxu0 %v1465_v3  ;;  %2367 = vmatpush1.bf16.msra.mxu1 %v1467_v7  ;;  %v1538_v3 = vld [vmem:[#allocation2 + $0x6e8] sm:$0xff]  ;;  %v1540_v7 = vld [vmem:[#allocation2 + $0x6f8] sm:$0xff] }
 0x516   : > { %2204 = vmatprep.subr.bf16.mxu0 %v1474_v44  ;;  %2368 = vmatprep.subr.bf16.mxu1 %v1476_v43  ;;  %v1537_v44 = vld [vmem:[#allocation2 + $0x6e0] sm:$0xff]  ;;  %v1539_v43 = vld [vmem:[#allocation2 + $0x6f0] sm:$0xff] }
 0x519   : > { %2205 = vmatpush1.bf16.msra.mxu0 %v1473_v46  ;;  %2369 = vmatpush1.bf16.msra.mxu1 %v1475_v47  ;;  %v1546_v46 = vld [vmem:[#allocation2 + $0x728] sm:$0xff]  ;;  %v1548_v47 = vld [vmem:[#allocation2 + $0x738] sm:$0xff] }
 0x51a   : > { %2206 = vmatprep.subr.bf16.mxu0 %v1482_v33  ;;  %2370 = vmatprep.subr.bf16.mxu1 %v1484_v48  ;;  %v1545_v33 = vld [vmem:[#allocation2 + $0x720] sm:$0xff]  ;;  %v1547_v48 = vld [vmem:[#allocation2 + $0x730] sm:$0xff] }
 0x51d   : > { %2207 = vmatpush1.bf16.msra.mxu0 %v1481_v45  ;;  %2371 = vmatpush1.bf16.msra.mxu1 %v1483_v55  ;;  %v1554_v45 = vld [vmem:[#allocation2 + $0x768] sm:$0xff]  ;;  %v1556_v55 = vld [vmem:[#allocation2 + $0x778] sm:$0xff] }
 0x51e   : > { %2208 = vmatprep.subr.bf16.mxu0 %v1490_v17  ;;  %2372 = vmatprep.subr.bf16.mxu1 %v1492_v56  ;;  %v1553_v17 = vld [vmem:[#allocation2 + $0x760] sm:$0xff]  ;;  %v1555_v56 = vld [vmem:[#allocation2 + $0x770] sm:$0xff] }
 0x521   : > { %2209 = vmatpush1.bf16.msra.mxu0 %v1489_v41  ;;  %2373 = vmatpush1.bf16.msra.mxu1 %v1491_v58  ;;  %v1562_v41 = vld [vmem:[#allocation2 + $0x7a8] sm:$0xff]  ;;  %v1564_v58 = vld [vmem:[#allocation2 + $0x7b8] sm:$0xff] }
 0x522   : > { %2210 = vmatprep.subr.bf16.mxu0 %v1498_v59  ;;  %2374 = vmatprep.subr.bf16.mxu1 %v1500_v63  ;;  %v1561_v59 = vld [vmem:[#allocation2 + $0x7a0] sm:$0xff]  ;;  %v1563_v63 = vld [vmem:[#allocation2 + $0x7b0] sm:$0xff] }
 0x525   : > { %2211 = vmatpush1.bf16.msra.mxu0 %v1497_v20  ;;  %2375 = vmatpush1.bf16.msra.mxu1 %v1499_v21  ;;  %v1570_v20 = vld [vmem:[#allocation2 + $0x7e8] sm:$0xff]  ;;  %v1572_v21 = vld [vmem:[#allocation2 + $0x7f8] sm:$0xff] }
 0x526   : > { %2212 = vmatprep.subr.bf16.mxu0 %v1506_v22  ;;  %2376 = vmatprep.subr.bf16.mxu1 %v1508_v23  ;;  %v1569_v22 = vld [vmem:[#allocation2 + $0x7e0] sm:$0xff]  ;;  %v1571_v23 = vld [vmem:[#allocation2 + $0x7f0] sm:$0xff] }
 0x529   : > { %2213 = vmatpush1.bf16.msra.mxu0 %v1505_v0  ;;  %2377 = vmatpush1.bf16.msra.mxu1 %v1507_v25  ;;  %v1578_v0 = vld [vmem:[#allocation2 + $0x828] sm:$0xff]  ;;  %v1580_v25 = vld [vmem:[#allocation2 + $0x838] sm:$0xff] }
 0x52a   : > { %2214 = vmatprep.subr.bf16.mxu0 %v1514_v1  ;;  %2378 = vmatprep.subr.bf16.mxu1 %v1516_v27  ;;  %v1577_v1 = vld [vmem:[#allocation2 + $0x820] sm:$0xff]  ;;  %v1579_v27 = vld [vmem:[#allocation2 + $0x830] sm:$0xff] }
 0x52d   : > { %2215 = vmatpush1.bf16.msra.mxu0 %v1513_v57  ;;  %2379 = vmatpush1.bf16.msra.mxu1 %v1515_v29  ;;  %v1586_v57 = vld [vmem:[#allocation2 + $0x868] sm:$0xff]  ;;  %v1588_v29 = vld [vmem:[#allocation2 + $0x878] sm:$0xff] }
 0x52e   : > { %2216 = vmatprep.subr.bf16.mxu0 %v1522_v62  ;;  %2380 = vmatprep.subr.bf16.mxu1 %v1524_v16  ;;  %v1585_v62 = vld [vmem:[#allocation2 + $0x860] sm:$0xff]  ;;  %v1587_v16 = vld [vmem:[#allocation2 + $0x870] sm:$0xff] }
 0x531   : > { %2217 = vmatpush1.bf16.msra.mxu0 %v1521_v34  ;;  %2381 = vmatpush1.bf16.msra.mxu1 %v1523_v35  ;;  %v1594_v34 = vld [vmem:[#allocation2 + $0x8a8] sm:$0xff]  ;;  %v1596_v35 = vld [vmem:[#allocation2 + $0x8b8] sm:$0xff] }
 0x532   : > { %2218 = vmatprep.subr.bf16.mxu0 %v1530_v5  ;;  %2382 = vmatprep.subr.bf16.mxu1 %v1532_v40  ;;  %v1593_v5 = vld [vmem:[#allocation2 + $0x8a0] sm:$0xff]  ;;  %v1595_v40 = vld [vmem:[#allocation2 + $0x8b0] sm:$0xff] }
 0x535   : > { %2219 = vmatpush1.bf16.msra.mxu0 %v1529_v42  ;;  %2383 = vmatpush1.bf16.msra.mxu1 %v1531_v6  ;;  %v1602_v42 = vld [vmem:[#allocation2 + $0x8e8] sm:$0xff]  ;;  %v1601_v6 = vld [vmem:[#allocation2 + $0x8e0] sm:$0xff] }
 0x536   : > { %2220 = vmatprep.subr.bf16.mxu0 %v1538_v3  ;;  %2384 = vmatprep.subr.bf16.mxu1 %v1540_v7  ;;  %v1603_v3 = vld [vmem:[#allocation2 + $0x8f0] sm:$0xff]  ;;  %v1610_v7 = vld [vmem:[#allocation2 + $0x928] sm:$0xff] }
 0x539   : > { %2221 = vmatpush1.bf16.msra.mxu0 %v1537_v44  ;;  %2385 = vmatpush1.bf16.msra.mxu1 %v1539_v43  ;;  %v1612_v44 = vld [vmem:[#allocation2 + $0x938] sm:$0xff]  ;;  %v1611_v43 = vld [vmem:[#allocation2 + $0x930] sm:$0xff] }
 0x53a   : > { %2222 = vmatprep.subr.bf16.mxu0 %v1546_v46  ;;  %2386 = vmatprep.subr.bf16.mxu1 %v1548_v47  ;;  %v1618_v46 = vld [vmem:[#allocation2 + $0x968] sm:$0xff]  ;;  %v1620_v47 = vld [vmem:[#allocation2 + $0x978] sm:$0xff] }
 0x53d   : > { %2223 = vmatpush1.bf16.msra.mxu0 %v1545_v33  ;;  %2387 = vmatpush1.bf16.msra.mxu1 %v1547_v48  ;;  %v1617_v33 = vld [vmem:[#allocation2 + $0x960] sm:$0xff]  ;;  %v1619_v48 = vld [vmem:[#allocation2 + $0x970] sm:$0xff] }
 0x53e   : > { %2224 = vmatprep.subr.bf16.mxu0 %v1554_v45  ;;  %2388 = vmatprep.subr.bf16.mxu1 %v1556_v55  ;;  %v1626_v45 = vld [vmem:[#allocation2 + $0x9a8] sm:$0xff]  ;;  %v1628_v55 = vld [vmem:[#allocation2 + $0x9b8] sm:$0xff] }
 0x541   : > { %2225 = vmatpush1.bf16.msra.mxu0 %v1553_v17  ;;  %2389 = vmatpush1.bf16.msra.mxu1 %v1555_v56  ;;  %v1625_v17 = vld [vmem:[#allocation2 + $0x9a0] sm:$0xff]  ;;  %v1627_v56 = vld [vmem:[#allocation2 + $0x9b0] sm:$0xff] }
 0x542   : > { %2226 = vmatprep.subr.bf16.mxu0 %v1562_v41  ;;  %2390 = vmatprep.subr.bf16.mxu1 %v1564_v58  ;;  %v1634_v41 = vld [vmem:[#allocation2 + $0x9e8] sm:$0xff]  ;;  %v1636_v58 = vld [vmem:[#allocation2 + $0x9f8] sm:$0xff] }
 0x545   : > { %2227 = vmatpush1.bf16.msra.mxu0 %v1561_v59  ;;  %2391 = vmatpush1.bf16.msra.mxu1 %v1563_v63  ;;  %v1633_v59 = vld [vmem:[#allocation2 + $0x9e0] sm:$0xff]  ;;  %v1635_v63 = vld [vmem:[#allocation2 + $0x9f0] sm:$0xff] }
 0x546   : > { %2228 = vmatprep.subr.bf16.mxu0 %v1570_v20  ;;  %2392 = vmatprep.subr.bf16.mxu1 %v1572_v21  ;;  %v1642_v20 = vld [vmem:[#allocation2 + $0xa28] sm:$0xff]  ;;  %v1644_v21 = vld [vmem:[#allocation2 + $0xa38] sm:$0xff] }
 0x549   : > { %2229 = vmatpush1.bf16.msra.mxu0 %v1569_v22  ;;  %2393 = vmatpush1.bf16.msra.mxu1 %v1571_v23  ;;  %v1641_v22 = vld [vmem:[#allocation2 + $0xa20] sm:$0xff]  ;;  %v1643_v23 = vld [vmem:[#allocation2 + $0xa30] sm:$0xff] }
 0x54a   : > { %2239 = vmatprep.subr.bf16.mxu0 %v1578_v0  ;;  %2403 = vmatprep.subr.bf16.mxu1 %v1580_v25  ;;  %v1650_v0 = vld [vmem:[#allocation2 + $0xa68] sm:$0xff]  ;;  %v1652_v25 = vld [vmem:[#allocation2 + $0xa78] sm:$0xff] }
 0x54c   : > { %2231 = vmatmul.mubr.bf16.vlgmr.msra.gmra.mrb[4].mxu0 %v5060_v32  ;;  %2395 = vmatmul.mubr.bf16.vlgmr.msra.gmra.mrb[4].mxu1 %v5060_v32  ;;  %v1604_v32 = vld [vmem:[#allocation2 + $0x8f8] sm:$0xff] }
 0x54d   : > { %2240 = vmatpush1.bf16.msra.mxu0 %v1577_v1  ;;  %2404 = vmatpush1.bf16.msra.mxu1 %v1579_v27  ;;  %v1649_v1 = vld [vmem:[#allocation2 + $0xa60] sm:$0xff]  ;;  %v1651_v27 = vld [vmem:[#allocation2 + $0xa70] sm:$0xff] }
 0x54e   : > { %2241 = vmatprep.subr.bf16.mxu0 %v1586_v57  ;;  %2405 = vmatprep.subr.bf16.mxu1 %v1588_v29  ;;  %v1658_v57 = vld [vmem:[#allocation2 + $0xaa8] sm:$0xff]  ;;  %v1660_v29 = vld [vmem:[#allocation2 + $0xab8] sm:$0xff] }
 0x54f   : > { %2271 = vmatprep.mubr.bf16.mxu0 %v5064_v38  ;;  %2435 = vmatprep.mubr.bf16.mxu1 %v5064_v38  ;;  %v1609_v38 = vld [vmem:[#allocation2 + $0x920] sm:$0xff] }
 0x551   : > { %2242 = vmatpush1.bf16.msra.mxu0 %v1585_v62  ;;  %2406 = vmatpush1.bf16.msra.mxu1 %v1587_v16  ;;  %v1657_v62 = vld [vmem:[#allocation2 + $0xaa0] sm:$0xff]  ;;  %v1659_v16 = vld [vmem:[#allocation2 + $0xab0] sm:$0xff] }
 0x552   : > { %2243 = vmatprep.subr.bf16.mxu0 %v1594_v34  ;;  %2407 = vmatprep.subr.bf16.mxu1 %v1596_v35  ;;  %v1666_v34 = vld [vmem:[#allocation2 + $0xae8] sm:$0xff]  ;;  %v1668_v35 = vld [vmem:[#allocation2 + $0xaf8] sm:$0xff] }
 0x555   : > { %2244 = vmatpush1.bf16.msra.mxu0 %v1593_v5  ;;  %2408 = vmatpush1.bf16.msra.mxu1 %v1595_v40  ;;  %v1665_v5 = vld [vmem:[#allocation2 + $0xae0] sm:$0xff]  ;;  %v1667_v40 = vld [vmem:[#allocation2 + $0xaf0] sm:$0xff] }
 0x556   : > { %2245 = vmatprep.subr.bf16.mxu0 %v1602_v42  ;;  %2409 = vmatprep.subr.bf16.mxu1 %v1604_v32  ;;  %v1674_v42 = vld [vmem:[#allocation2 + $0xb28] sm:$0xff]  ;;  %v1676_v32 = vld [vmem:[#allocation2 + $0xb38] sm:$0xff] }
 0x559   : > { %2246 = vmatpush1.bf16.msra.mxu0 %v1601_v6  ;;  %2410 = vmatpush1.bf16.msra.mxu1 %v1603_v3  ;;  %v1673_v6 = vld [vmem:[#allocation2 + $0xb20] sm:$0xff]  ;;  %v1675_v3 = vld [vmem:[#allocation2 + $0xb30] sm:$0xff] }
 0x55a   : > { %2247 = vmatprep.subr.bf16.mxu0 %v1610_v7  ;;  %2411 = vmatprep.subr.bf16.mxu1 %v1612_v44  ;;  %v1682_v7 = vld [vmem:[#allocation2 + $0xb68] sm:$0xff]  ;;  %v1684_v44 = vld [vmem:[#allocation2 + $0xb78] sm:$0xff] }
 0x55d   : > { %2248 = vmatpush1.bf16.msra.mxu0 %v1609_v38  ;;  %2412 = vmatpush1.bf16.msra.mxu1 %v1611_v43  ;;  %v1681_v38 = vld [vmem:[#allocation2 + $0xb60] sm:$0xff]  ;;  %v1683_v43 = vld [vmem:[#allocation2 + $0xb70] sm:$0xff] }
 0x55e   : > { %2249 = vmatprep.subr.bf16.mxu0 %v1618_v46  ;;  %2413 = vmatprep.subr.bf16.mxu1 %v1620_v47  ;;  %v1690_v46 = vld [vmem:[#allocation2 + $0xba8] sm:$0xff]  ;;  %v1692_v47 = vld [vmem:[#allocation2 + $0xbb8] sm:$0xff] }
 0x561   : > { %2250 = vmatpush1.bf16.msra.mxu0 %v1617_v33  ;;  %2414 = vmatpush1.bf16.msra.mxu1 %v1619_v48  ;;  %v1689_v33 = vld [vmem:[#allocation2 + $0xba0] sm:$0xff]  ;;  %v1691_v48 = vld [vmem:[#allocation2 + $0xbb0] sm:$0xff] }
 0x562   : > { %2251 = vmatprep.subr.bf16.mxu0 %v1626_v45  ;;  %2415 = vmatprep.subr.bf16.mxu1 %v1628_v55  ;;  %v1698_v45 = vld [vmem:[#allocation2 + $0xbe8] sm:$0xff]  ;;  %v1700_v55 = vld [vmem:[#allocation2 + $0xbf8] sm:$0xff] }
 0x565   : > { %2252 = vmatpush1.bf16.msra.mxu0 %v1625_v17  ;;  %2416 = vmatpush1.bf16.msra.mxu1 %v1627_v56  ;;  %v1697_v17 = vld [vmem:[#allocation2 + $0xbe0] sm:$0xff]  ;;  %v1699_v56 = vld [vmem:[#allocation2 + $0xbf0] sm:$0xff] }
 0x566   : > { %2253 = vmatprep.subr.bf16.mxu0 %v1634_v41  ;;  %2417 = vmatprep.subr.bf16.mxu1 %v1636_v58  ;;  %v1706_v41 = vld [vmem:[#allocation2 + $0xc28] sm:$0xff]  ;;  %v1708_v58 = vld [vmem:[#allocation2 + $0xc38] sm:$0xff] }
 0x569   : > { %2254 = vmatpush1.bf16.msra.mxu0 %v1633_v59  ;;  %2418 = vmatpush1.bf16.msra.mxu1 %v1635_v63  ;;  %v1705_v59 = vld [vmem:[#allocation2 + $0xc20] sm:$0xff]  ;;  %v1707_v63 = vld [vmem:[#allocation2 + $0xc30] sm:$0xff] }
 0x56a   : > { %2255 = vmatprep.subr.bf16.mxu0 %v1642_v20  ;;  %2419 = vmatprep.subr.bf16.mxu1 %v1644_v21  ;;  %v1714_v20 = vld [vmem:[#allocation2 + $0xc68] sm:$0xff]  ;;  %v1716_v21 = vld [vmem:[#allocation2 + $0xc78] sm:$0xff] }
 0x56d   : > { %2256 = vmatpush1.bf16.msra.mxu0 %v1641_v22  ;;  %2420 = vmatpush1.bf16.msra.mxu1 %v1643_v23  ;;  %v1713_v22 = vld [vmem:[#allocation2 + $0xc60] sm:$0xff]  ;;  %v1715_v23 = vld [vmem:[#allocation2 + $0xc70] sm:$0xff] }
 0x56e   : > { %2257 = vmatprep.subr.bf16.mxu0 %v1650_v0  ;;  %2421 = vmatprep.subr.bf16.mxu1 %v1652_v25  ;;  %v1722_v0 = vld [vmem:[#allocation2 + $0xca8] sm:$0xff]  ;;  %v1724_v25 = vld [vmem:[#allocation2 + $0xcb8] sm:$0xff] }
 0x571   : > { %2258 = vmatpush1.bf16.msra.mxu0 %v1649_v1  ;;  %2422 = vmatpush1.bf16.msra.mxu1 %v1651_v27  ;;  %v1721_v1 = vld [vmem:[#allocation2 + $0xca0] sm:$0xff]  ;;  %v1723_v27 = vld [vmem:[#allocation2 + $0xcb0] sm:$0xff] }
 0x572   : > { %2259 = vmatprep.subr.bf16.mxu0 %v1658_v57  ;;  %2423 = vmatprep.subr.bf16.mxu1 %v1660_v29  ;;  %v1730_v57 = vld [vmem:[#allocation2 + $0xce8] sm:$0xff]  ;;  %v1729_v29 = vld [vmem:[#allocation2 + $0xce0] sm:$0xff] }
 0x575   : > { %2260 = vmatpush1.bf16.msra.mxu0 %v1657_v62  ;;  %2424 = vmatpush1.bf16.msra.mxu1 %v1659_v16  ;;  %v1731_v62 = vld [vmem:[#allocation2 + $0xcf0] sm:$0xff]  ;;  %v1738_v16 = vld [vmem:[#allocation2 + $0xd28] sm:$0xff] }
 0x576   : > { %2261 = vmatprep.subr.bf16.mxu0 %v1666_v34  ;;  %2425 = vmatprep.subr.bf16.mxu1 %v1668_v35  ;;  %v1740_v34 = vld [vmem:[#allocation2 + $0xd38] sm:$0xff]  ;;  %v1739_v35 = vld [vmem:[#allocation2 + $0xd30] sm:$0xff] }
 0x579   : > { %2262 = vmatpush1.bf16.msra.mxu0 %v1665_v5  ;;  %2426 = vmatpush1.bf16.msra.mxu1 %v1667_v40  ;;  %v1746_v5 = vld [vmem:[#allocation2 + $0xd68] sm:$0xff]  ;;  %v1748_v40 = vld [vmem:[#allocation2 + $0xd78] sm:$0xff] }
 0x57a   : > { %2263 = vmatprep.subr.bf16.mxu0 %v1674_v42  ;;  %2427 = vmatprep.subr.bf16.mxu1 %v1676_v32  ;;  %v1745_v42 = vld [vmem:[#allocation2 + $0xd60] sm:$0xff]  ;;  %v1747_v32 = vld [vmem:[#allocation2 + $0xd70] sm:$0xff] }
 0x57d   : > { %2264 = vmatpush1.bf16.msra.mxu0 %v1673_v6  ;;  %2428 = vmatpush1.bf16.msra.mxu1 %v1675_v3 }
 0x57e   : > { %2265 = vmatprep.subr.bf16.mxu0 %v1682_v7  ;;  %2429 = vmatprep.subr.bf16.mxu1 %v1684_v44  ;;  %v1754_v7 = vld [vmem:[#allocation2 + $0xda8] sm:$0xff]  ;;  %v1756_v44 = vld [vmem:[#allocation2 + $0xdb8] sm:$0xff] }
 0x581   : > { %2266 = vmatpush1.bf16.msra.mxu0 %v1681_v38  ;;  %2430 = vmatpush1.bf16.msra.mxu1 %v1683_v43 }
 0x582   : > { %2267 = vmatprep.subr.bf16.mxu0 %v1690_v46  ;;  %2431 = vmatprep.subr.bf16.mxu1 %v1692_v47 }
 0x585   : > { %2268 = vmatpush1.bf16.msra.mxu0 %v1689_v33  ;;  %2432 = vmatpush1.bf16.msra.mxu1 %v1691_v48 }
 0x586   : > { %2269 = vmatprep.subr.bf16.mxu0 %v1698_v45  ;;  %2433 = vmatprep.subr.bf16.mxu1 %v1700_v55 }
 0x589   : > { %2270 = vmatpush1.bf16.msra.mxu0 %v1697_v17  ;;  %2434 = vmatpush1.bf16.msra.mxu1 %v1699_v56  ;;  %v1753_v17 = vld [vmem:[#allocation2 + $0xda0] sm:$0xff]  ;;  %v1755_v56 = vld [vmem:[#allocation2 + $0xdb0] sm:$0xff] }
 0x58a   : > { %2280 = vmatprep.subr.bf16.mxu0 %v1706_v41  ;;  %2444 = vmatprep.subr.bf16.mxu1 %v1708_v58 }
 0x58c   : > { %2272 = vmatmul.mubr.bf16.vlgmr.msra.gmra.mrb[4].mxu0 %v5072_v30  ;;  %2436 = vmatmul.mubr.bf16.vlgmr.msra.gmra.mrb[4].mxu1 %v5072_v30  ;;  %v1732_v30 = vld [vmem:[#allocation2 + $0xcf8] sm:$0xff] }
 0x58d   : > { %2281 = vmatpush1.bf16.msra.mxu0 %v1705_v59  ;;  %2445 = vmatpush1.bf16.msra.mxu1 %v1707_v63  ;;  %v1762_v59 = vld [vmem:[#allocation2 + $0xde8] sm:$0xff]  ;;  %v1764_v63 = vld [vmem:[#allocation2 + $0xdf8] sm:$0xff] }
 0x58e   : > { %2282 = vmatprep.subr.bf16.mxu0 %v1714_v20  ;;  %2446 = vmatprep.subr.bf16.mxu1 %v1716_v21 }
 0x58f   : > { %2312 = vmatprep.mubr.bf16.mxu0 %v5076_v4  ;;  %2476 = vmatprep.mubr.bf16.mxu1 %v5076_v4  ;;  %v1737_v4 = vld [vmem:[#allocation2 + $0xd20] sm:$0xff] }
 0x591   : > { %2283 = vmatpush1.bf16.msra.mxu0 %v1713_v22  ;;  %2447 = vmatpush1.bf16.msra.mxu1 %v1715_v23  ;;  %v1761_v22 = vld [vmem:[#allocation2 + $0xde0] sm:$0xff]  ;;  %v1763_v23 = vld [vmem:[#allocation2 + $0xdf0] sm:$0xff] }
 0x592   : > { %2284 = vmatprep.subr.bf16.mxu0 %v1722_v0  ;;  %2448 = vmatprep.subr.bf16.mxu1 %v1724_v25  ;;  %v1770_v25 = vld [vmem:[#allocation2 + $0xe28] sm:$0xff] }
 0x595   : > { %2285 = vmatpush1.bf16.msra.mxu0 %v1721_v1  ;;  %2449 = vmatpush1.bf16.msra.mxu1 %v1723_v27  ;;  %v1772_v1 = vld [vmem:[#allocation2 + $0xe38] sm:$0xff]  ;;  %v1769_v27 = vld [vmem:[#allocation2 + $0xe20] sm:$0xff] }
 0x596   : > { %2286 = vmatprep.subr.bf16.mxu0 %v1730_v57  ;;  %2450 = vmatprep.subr.bf16.mxu1 %v1732_v30  ;;  %v1771_v57 = vld [vmem:[#allocation2 + $0xe30] sm:$0xff]  ;;  %v1778_v30 = vld [vmem:[#allocation2 + $0xe68] sm:$0xff] }
 0x599   : > { %2287 = vmatpush1.bf16.msra.mxu0 %v1729_v29  ;;  %2451 = vmatpush1.bf16.msra.mxu1 %v1731_v62  ;;  %v1780_v29 = vld [vmem:[#allocation2 + $0xe78] sm:$0xff]  ;;  %v1777_v62 = vld [vmem:[#allocation2 + $0xe60] sm:$0xff] }
 0x59a   : > { %2288 = vmatprep.subr.bf16.mxu0 %v1738_v16  ;;  %2452 = vmatprep.subr.bf16.mxu1 %v1740_v34  ;;  %v1779_v16 = vld [vmem:[#allocation2 + $0xe70] sm:$0xff]  ;;  %v1786_v34 = vld [vmem:[#allocation2 + $0xea8] sm:$0xff] }
 0x59d   : > { %2289 = vmatpush1.bf16.msra.mxu0 %v1737_v4  ;;  %2453 = vmatpush1.bf16.msra.mxu1 %v1739_v35  ;;  %v1788_v4 = vld [vmem:[#allocation2 + $0xeb8] sm:$0xff]  ;;  %v1785_v35 = vld [vmem:[#allocation2 + $0xea0] sm:$0xff] }
 0x59e   : > { %2290 = vmatprep.subr.bf16.mxu0 %v1746_v5  ;;  %2454 = vmatprep.subr.bf16.mxu1 %v1748_v40  ;;  %v1787_v5 = vld [vmem:[#allocation2 + $0xeb0] sm:$0xff]  ;;  %v1794_v40 = vld [vmem:[#allocation2 + $0xee8] sm:$0xff] }
 0x59f   : > { %v5102_v6 = vpop.f32.mrb[0].mxu0  ;;  %v5104_v3 = vpop.f32.mrb[0].mxu1 }
 0x5a0   : > { %v2485_v38 = vmul.f32 %v4564_v54, %v5102_v6  ;;  %v5108_v43 = vpop.f32.mrb[1].mxu0  ;;  %v5110_v46 = vpop.f32.mrb[1].mxu1  ;;  %v2487_v41 = vmul.f32 %v4556_v36, %v5104_v3 }
 0x5a1   : > { %v2486_v47 = vmul.f32 %v4560_v53, %v5108_v43  ;;  %v1990_v33 = vpop.f32.mrb[2].mxu0  ;;  %v2154_v48 = vpop.f32.mrb[2].mxu1  ;;  %2291 = vmatpush1.bf16.msra.mxu0 %v1745_v42  ;;  %2455 = vmatpush1.bf16.msra.mxu1 %v1747_v32  ;;  %v2488_v20 = vmul.f32 %v4552_v52, %v5110_v46  ;;  %v1796_v42 = vld [vmem:[#allocation2 + $0xef8] sm:$0xff]  ;;  %v1793_v32 = vld [vmem:[#allocation2 + $0xee0] sm:$0xff] }
 0x5a2   : > { %v1991_v45 = vpop.f32.mrb[3].mxu0  ;;  %v2155_v55 = vpop.f32.mrb[3].mxu1  ;;  %2292 = vmatprep.subr.bf16.mxu0 %v1754_v7  ;;  %2456 = vmatprep.subr.bf16.mxu1 %v1756_v44  ;;  %v1795_v7 = vld [vmem:[#allocation2 + $0xef0] sm:$0xff]  ;;  %v1802_v44 = vld [vmem:[#allocation2 + $0xf28] sm:$0xff] }
 0x5a3   : > { %v2493_v58 = vadd.f32 %v2486_v47, %v2485_v38  ;;  %v1804_v38 = vld [vmem:[#allocation2 + $0xf38] sm:$0xff]  ;;  %v1801_v47 = vld [vmem:[#allocation2 + $0xf20] sm:$0xff]  ;;  %v1803_v33 = vld [vmem:[#allocation2 + $0xf30] sm:$0xff] }
 0x5a4   : > { %v1810_v48 = vld [vmem:[#allocation2 + $0xf68] sm:$0xff]  ;;  %v1812_v45 = vld [vmem:[#allocation2 + $0xf78] sm:$0xff]  ;;  %v1809_v55 = vld [vmem:[#allocation2 + $0xf60] sm:$0xff] }
 0x5a5   : > { %v2494_v21 = vadd.f32 %v2493_v58, %v2487_v41  ;;  %2293 = vmatpush1.bf16.msra.mxu0 %v1753_v17  ;;  %2457 = vmatpush1.bf16.msra.mxu1 %v1755_v56  ;;  %v1811_v17 = vld [vmem:[#allocation2 + $0xf70] sm:$0xff]  ;;  %v1818_v56 = vld [vmem:[#allocation2 + $0xfa8] sm:$0xff]  ;;  %v1820_v41 = vld [vmem:[#allocation2 + $0xfb8] sm:$0xff] }
 0x5a6   : > { %2294 = vmatprep.subr.bf16.mxu0 %v1762_v59  ;;  %2458 = vmatprep.subr.bf16.mxu1 %v1764_v63  ;;  %v1817_v58 = vld [vmem:[#allocation2 + $0xfa0] sm:$0xff]  ;;  %v1819_v59 = vld [vmem:[#allocation2 + $0xfb0] sm:$0xff]  ;;  %v1826_v63 = vld [vmem:[#allocation2 + $0xfe8] sm:$0xff] }
 0x5a7   : > { %v5118_v0 = vadd.f32 %v2494_v21, %v2488_v20  ;;  %v1828_v20 = vld [vmem:[#allocation2 + $0xff8] sm:$0xff]  ;;  %v1825_v21 = vld [vmem:[#allocation2 + $0xfe0] sm:$0xff] }
 0x5a9   : > { %2295 = vmatpush1.bf16.msra.mxu0 %v1761_v22  ;;  %2459 = vmatpush1.bf16.msra.mxu1 %v1763_v23  ;;  %v1827_v22 = vld [vmem:[#allocation2 + $0xff0] sm:$0xff]  ;;  %v3880_v23 = vld [vmem:[#allocation2 + $0x8] sm:$0xff] }
 0x5aa   : > { %2296 = vmatprep.subr.bf16.mxu0 %v1770_v25  ;;  %2460 = vmatprep.subr.bf16.mxu1 %v1772_v1  ;;  %v3881_v25 = vld [vmem:[#allocation2 + $0x18] sm:$0xff]  ;;  %v3882_v1 = vld [vmem:[#allocation2] sm:$0xff] }
 0x5ad   : > { %2297 = vmatpush1.bf16.msra.mxu0 %v1769_v27  ;;  %2461 = vmatpush1.bf16.msra.mxu1 %v1771_v57  ;;  %v3883_v27 = vld [vmem:[#allocation2 + $0x10] sm:$0xff]  ;;  %v3884_v57 = vld [vmem:[#allocation2 + $0x48] sm:$0xff] }
 0x5ae   : > { %2298 = vmatprep.subr.bf16.mxu0 %v1778_v30  ;;  %2462 = vmatprep.subr.bf16.mxu1 %v1780_v29  ;;  %v3885_v30 = vld [vmem:[#allocation2 + $0x58] sm:$0xff]  ;;  %v3886_v29 = vld [vmem:[#allocation2 + $0x40] sm:$0xff] }
 0x5b1   : > { %2299 = vmatpush1.bf16.msra.mxu0 %v1777_v62  ;;  %2463 = vmatpush1.bf16.msra.mxu1 %v1779_v16  ;;  %v3887_v62 = vld [vmem:[#allocation2 + $0x50] sm:$0xff]  ;;  %v3888_v16 = vld [vmem:[#allocation2 + $0x88] sm:$0xff] }
 0x5b2   : > { %2300 = vmatprep.subr.bf16.mxu0 %v1786_v34  ;;  %2464 = vmatprep.subr.bf16.mxu1 %v1788_v4  ;;  %v3889_v34 = vld [vmem:[#allocation2 + $0x98] sm:$0xff]  ;;  %v3890_v4 = vld [vmem:[#allocation2 + $0x80] sm:$0xff] }
 0x5b5   : > { %2301 = vmatpush1.bf16.msra.mxu0 %v1785_v35  ;;  %2465 = vmatpush1.bf16.msra.mxu1 %v1787_v5  ;;  %v3891_v35 = vld [vmem:[#allocation2 + $0x90] sm:$0xff]  ;;  %v3893_v5 = vld [vmem:[#allocation2 + $0xd8] sm:$0xff] }
 0x5b6   : > { %2302 = vmatprep.subr.bf16.mxu0 %v1794_v40  ;;  %2466 = vmatprep.subr.bf16.mxu1 %v1796_v42  ;;  %v3894_v40 = vld [vmem:[#allocation2 + $0xc0] sm:$0xff]  ;;  %v3895_v42 = vld [vmem:[#allocation2 + $0xd0] sm:$0xff] }
 0x5b9   : > { %2303 = vmatpush1.bf16.msra.mxu0 %v1793_v32  ;;  %2467 = vmatpush1.bf16.msra.mxu1 %v1795_v7  ;;  %v3896_v32 = vld [vmem:[#allocation2 + $0x108] sm:$0xff]  ;;  %v3897_v7 = vld [vmem:[#allocation2 + $0x118] sm:$0xff] }
 0x5ba   : > { %2304 = vmatprep.subr.bf16.mxu0 %v1802_v44  ;;  %2468 = vmatprep.subr.bf16.mxu1 %v1804_v38  ;;  %v3898_v44 = vld [vmem:[#allocation2 + $0x100] sm:$0xff]  ;;  %v3899_v38 = vld [vmem:[#allocation2 + $0x110] sm:$0xff] }
 0x5bd   : > { %2305 = vmatpush1.bf16.msra.mxu0 %v1801_v47  ;;  %2469 = vmatpush1.bf16.msra.mxu1 %v1803_v33  ;;  %v3900_v47 = vld [vmem:[#allocation2 + $0x148] sm:$0xff]  ;;  %v3901_v33 = vld [vmem:[#allocation2 + $0x158] sm:$0xff] }
 0x5be   : > { %2306 = vmatprep.subr.bf16.mxu0 %v1810_v48  ;;  %2470 = vmatprep.subr.bf16.mxu1 %v1812_v45  ;;  %v3902_v48 = vld [vmem:[#allocation2 + $0x140] sm:$0xff]  ;;  %v3903_v45 = vld [vmem:[#allocation2 + $0x150] sm:$0xff] }
 0x5c1   : > { %2307 = vmatpush1.bf16.msra.mxu0 %v1809_v55  ;;  %2471 = vmatpush1.bf16.msra.mxu1 %v1811_v17  ;;  %v3904_v55 = vld [vmem:[#allocation2 + $0x188] sm:$0xff]  ;;  %v3905_v17 = vld [vmem:[#allocation2 + $0x198] sm:$0xff] }
 0x5c2   : > { %2308 = vmatprep.subr.bf16.mxu0 %v1818_v56  ;;  %2472 = vmatprep.subr.bf16.mxu1 %v1820_v41  ;;  %v3906_v56 = vld [vmem:[#allocation2 + $0x180] sm:$0xff]  ;;  %v3907_v41 = vld [vmem:[#allocation2 + $0x190] sm:$0xff] }
 0x5c5   : > { %2309 = vmatpush1.bf16.msra.mxu0 %v1817_v58  ;;  %2473 = vmatpush1.bf16.msra.mxu1 %v1819_v59  ;;  %v3908_v58 = vld [vmem:[#allocation2 + $0x1c8] sm:$0xff]  ;;  %v3909_v59 = vld [vmem:[#allocation2 + $0x1d8] sm:$0xff] }
 0x5c6   : > { %2310 = vmatprep.subr.bf16.mxu0 %v1826_v63  ;;  %2474 = vmatprep.subr.bf16.mxu1 %v1828_v20  ;;  %v3910_v63 = vld [vmem:[#allocation2 + $0x1c0] sm:$0xff]  ;;  %v3911_v20 = vld [vmem:[#allocation2 + $0x1d0] sm:$0xff] }
 0x5c9   : > { %2311 = vmatpush1.bf16.msra.mxu0 %v1825_v21  ;;  %2475 = vmatpush1.bf16.msra.mxu1 %v1827_v22  ;;  %v3912_v21 = vld [vmem:[#allocation2 + $0x208] sm:$0xff]  ;;  %v3913_v22 = vld [vmem:[#allocation2 + $0x218] sm:$0xff] }
 0x5ca   : > { %2583 = vmatprep.subr.bf16.mxu0 %v3880_v23  ;;  %2747 = vmatprep.subr.bf16.mxu1 %v3881_v25  ;;  %v3914_v23 = vld [vmem:[#allocation2 + $0x200] sm:$0xff]  ;;  %v3915_v25 = vld [vmem:[#allocation2 + $0x210] sm:$0xff] }
 0x5cc   : > { %2313 = vmatmul.mubr.bf16.vlgmr.msra.gmra.mrb[4].mxu0 %v5084_v31  ;;  %2477 = vmatmul.mubr.bf16.vlgmr.msra.gmra.mrb[4].mxu1 %v5084_v31  ;;  %v3892_v31 = vld [vmem:[#allocation2 + $0xc8] sm:$0xff] }
 0x5cd   : > { %2584 = vmatpush1.bf16.msra.mxu0 %v3882_v1  ;;  %2748 = vmatpush1.bf16.msra.mxu1 %v3883_v27  ;;  %v3916_v1 = vld [vmem:[#allocation2 + $0x248] sm:$0xff]  ;;  %v3917_v27 = vld [vmem:[#allocation2 + $0x258] sm:$0xff] }
 0x5ce   : > { %2585 = vmatprep.subr.bf16.mxu0 %v3884_v57  ;;  %2749 = vmatprep.subr.bf16.mxu1 %v3885_v30  ;;  %v3918_v57 = vld [vmem:[#allocation2 + $0x240] sm:$0xff]  ;;  %v3919_v30 = vld [vmem:[#allocation2 + $0x250] sm:$0xff] }
 0x5d1   : > { %2586 = vmatpush1.bf16.msra.mxu0 %v3886_v29  ;;  %2750 = vmatpush1.bf16.msra.mxu1 %v3887_v62  ;;  %v3920_v29 = vld [vmem:[#allocation2 + $0x288] sm:$0xff]  ;;  %v3921_v62 = vld [vmem:[#allocation2 + $0x298] sm:$0xff] }
 0x5d2   : > { %2587 = vmatprep.subr.bf16.mxu0 %v3888_v16  ;;  %2751 = vmatprep.subr.bf16.mxu1 %v3889_v34  ;;  %v3922_v16 = vld [vmem:[#allocation2 + $0x280] sm:$0xff]  ;;  %v3923_v34 = vld [vmem:[#allocation2 + $0x290] sm:$0xff] }
 0x5d5   : > { %2588 = vmatpush1.bf16.msra.mxu0 %v3890_v4  ;;  %2752 = vmatpush1.bf16.msra.mxu1 %v3891_v35  ;;  %v3924_v4 = vld [vmem:[#allocation2 + $0x2c8] sm:$0xff]  ;;  %v3925_v35 = vld [vmem:[#allocation2 + $0x2d8] sm:$0xff] }
 0x5d6   : > { %2589 = vmatprep.subr.bf16.mxu0 %v3892_v31  ;;  %2753 = vmatprep.subr.bf16.mxu1 %v3893_v5  ;;  %v3926_v31 = vld [vmem:[#allocation2 + $0x2c0] sm:$0xff]  ;;  %v3927_v5 = vld [vmem:[#allocation2 + $0x2d0] sm:$0xff] }
 0x5d9   : > { %2590 = vmatpush1.bf16.msra.mxu0 %v3894_v40  ;;  %2754 = vmatpush1.bf16.msra.mxu1 %v3895_v42  ;;  %v3928_v40 = vld [vmem:[#allocation2 + $0x308] sm:$0xff]  ;;  %v3929_v42 = vld [vmem:[#allocation2 + $0x318] sm:$0xff] }
 0x5da   : > { %2591 = vmatprep.subr.bf16.mxu0 %v3896_v32  ;;  %2755 = vmatprep.subr.bf16.mxu1 %v3897_v7  ;;  %v3930_v32 = vld [vmem:[#allocation2 + $0x300] sm:$0xff]  ;;  %v3931_v7 = vld [vmem:[#allocation2 + $0x310] sm:$0xff] }
 0x5dd   : > { %2592 = vmatpush1.bf16.msra.mxu0 %v3898_v44  ;;  %2756 = vmatpush1.bf16.msra.mxu1 %v3899_v38  ;;  %v3932_v44 = vld [vmem:[#allocation2 + $0x348] sm:$0xff]  ;;  %v3933_v38 = vld [vmem:[#allocation2 + $0x358] sm:$0xff] }
 0x5de   : > { %2593 = vmatprep.subr.bf16.mxu0 %v3900_v47  ;;  %2757 = vmatprep.subr.bf16.mxu1 %v3901_v33  ;;  %v3934_v47 = vld [vmem:[#allocation2 + $0x340] sm:$0xff]  ;;  %v3935_v33 = vld [vmem:[#allocation2 + $0x350] sm:$0xff] }
 0x5e1   : > { %2594 = vmatpush1.bf16.msra.mxu0 %v3902_v48  ;;  %2758 = vmatpush1.bf16.msra.mxu1 %v3903_v45  ;;  %v3936_v48 = vld [vmem:[#allocation2 + $0x388] sm:$0xff]  ;;  %v3937_v45 = vld [vmem:[#allocation2 + $0x398] sm:$0xff] }
 0x5e2   : > { %2595 = vmatprep.subr.bf16.mxu0 %v3904_v55  ;;  %2759 = vmatprep.subr.bf16.mxu1 %v3905_v17  ;;  %v3938_v55 = vld [vmem:[#allocation2 + $0x380] sm:$0xff]  ;;  %v3939_v17 = vld [vmem:[#allocation2 + $0x390] sm:$0xff] }
 0x5e5   : > { %2596 = vmatpush1.bf16.msra.mxu0 %v3906_v56  ;;  %2760 = vmatpush1.bf16.msra.mxu1 %v3907_v41  ;;  %v3940_v56 = vld [vmem:[#allocation2 + $0x3c8] sm:$0xff]  ;;  %v3941_v41 = vld [vmem:[#allocation2 + $0x3d8] sm:$0xff] }
 0x5e6   : > { %2597 = vmatprep.subr.bf16.mxu0 %v3908_v58  ;;  %2761 = vmatprep.subr.bf16.mxu1 %v3909_v59  ;;  %v3942_v58 = vld [vmem:[#allocation2 + $0x3c0] sm:$0xff]  ;;  %v3943_v59 = vld [vmem:[#allocation2 + $0x3d0] sm:$0xff] }
 0x5e9   : > { %2598 = vmatpush1.bf16.msra.mxu0 %v3910_v63  ;;  %2762 = vmatpush1.bf16.msra.mxu1 %v3911_v20  ;;  %v3944_v63 = vld [vmem:[#allocation2 + $0x408] sm:$0xff]  ;;  %v3945_v20 = vld [vmem:[#allocation2 + $0x418] sm:$0xff] }
 0x5ea   : > { %2599 = vmatprep.subr.bf16.mxu0 %v3912_v21  ;;  %2763 = vmatprep.subr.bf16.mxu1 %v3913_v22 }
 0x5ed   : > { %2600 = vmatpush1.bf16.msra.mxu0 %v3914_v23  ;;  %2764 = vmatpush1.bf16.msra.mxu1 %v3915_v25 }
 0x5ee   : > { %2601 = vmatprep.subr.bf16.mxu0 %v3916_v1  ;;  %2765 = vmatprep.subr.bf16.mxu1 %v3917_v27 }
 0x5f1   : > { %2602 = vmatpush1.bf16.msra.mxu0 %v3918_v57  ;;  %2766 = vmatpush1.bf16.msra.mxu1 %v3919_v30 }
 0x5f2   : > { %2603 = vmatprep.subr.bf16.mxu0 %v3920_v29  ;;  %2767 = vmatprep.subr.bf16.mxu1 %v3921_v62 }
 0x5f5   : > { %2604 = vmatpush1.bf16.msra.mxu0 %v3922_v16  ;;  %2768 = vmatpush1.bf16.msra.mxu1 %v3923_v34 }
 0x5f6   : > { %2605 = vmatprep.subr.bf16.mxu0 %v3924_v4  ;;  %2769 = vmatprep.subr.bf16.mxu1 %v3925_v35 }
 0x5f9   : > { %2606 = vmatpush1.bf16.msra.mxu0 %v3926_v31  ;;  %2770 = vmatpush1.bf16.msra.mxu1 %v3927_v5 }
 0x5fa   : > { %2607 = vmatprep.subr.bf16.mxu0 %v3928_v40  ;;  %2771 = vmatprep.subr.bf16.mxu1 %v3929_v42 }
 0x5fd   : > { %2608 = vmatpush1.bf16.msra.mxu0 %v3930_v32  ;;  %2772 = vmatpush1.bf16.msra.mxu1 %v3931_v7 }
 0x5fe   : > { %2609 = vmatprep.subr.bf16.mxu0 %v3932_v44  ;;  %2773 = vmatprep.subr.bf16.mxu1 %v3933_v38 }
 0x601   : > { %2610 = vmatpush1.bf16.msra.mxu0 %v3934_v47  ;;  %2774 = vmatpush1.bf16.msra.mxu1 %v3935_v33 }
 0x602   : > { %2611 = vmatprep.subr.bf16.mxu0 %v3936_v48  ;;  %2775 = vmatprep.subr.bf16.mxu1 %v3937_v45 }
 0x605   : > { %2612 = vmatpush1.bf16.msra.mxu0 %v3938_v55  ;;  %2776 = vmatpush1.bf16.msra.mxu1 %v3939_v17 }
 0x606   : > { %2613 = vmatprep.subr.bf16.mxu0 %v3940_v56  ;;  %2777 = vmatprep.subr.bf16.mxu1 %v3941_v41 }
 0x609   : > { %2614 = vmatpush1.bf16.msra.mxu0 %v3942_v58  ;;  %2778 = vmatpush1.bf16.msra.mxu1 %v3943_v59 }
 0x60a   : > { %2624 = vmatprep.subr.bf16.mxu0 %v3944_v63  ;;  %2788 = vmatprep.subr.bf16.mxu1 %v3945_v20 }
 0x69f   : > { %v2314_v21 = vpop.f32.mrb[4].mxu0  ;;  %v2478_v22 = vpop.f32.mrb[4].mxu1 }
 0x6a0   : > { %v2489_v23 = vmul.f32 %v4548_v39, %v2314_v21  ;;  %v2316_v25 = vpop.f32.mrb[5].mxu0  ;;  %v2480_v1 = vpop.f32.mrb[5].mxu1  ;;  %v2491_v34 = vmul.f32 %v4540_v50, %v2478_v22 }
 0x6a1   : > { %v2490_v27 = vmul.f32 %v4544_v51, %v2316_v25  ;;  %v2318_v57 = vpop.f32.mrb[6].mxu0  ;;  %v2482_v30 = vpop.f32.mrb[6].mxu1  ;;  %v2492_v35 = vmul.f32 %v4536_v49, %v2480_v1 }
 0x6a2   : > { %v2496_v29 = vadd.f32 %v5118_v0, %v2489_v23  ;;  %v2319_v62 = vpop.f32.mrb[7].mxu0  ;;  %v2483_v16 = vpop.f32.mrb[7].mxu1 }
 0x6a4   : > { %v2497_v4 = vadd.f32 %v2496_v29, %v2490_v27 }
 0x6a6   : > { %v2498_v31 = vadd.f32 %v2497_v4, %v2491_v34 }
 0x6a8   : > { %v2499_v5 = vadd.f32 %v2498_v31, %v2492_v35 }
 0x6aa   : > { %2500 = vadd.xlane.f32.xlu0 %v2499_v5 }
 0x737   : > { %v2501_v40 = vpop.xlane.xlu0 %2500 }
 0x738   : > { %3872 = vrcp.f32 %v2501_v40  ;;  %vm2502_vm0 = vcmp.gt.f32.partialorder %v2501_v40, 0.0  ;;  %v3946_v40 = vld [vmem:[#allocation2 + $0x400] sm:$0xff] }
 0x739   : > { %3874 = vrcp.f32 %v4532_v37 }
 0x742   : > { %v3873_v42 = vpop.eup %3872 }
 0x743   : > { %v2504_v32 = vmul.f32 %v4532_v37, %v3873_v42  ;;  %v3875_v27 = vpop.eup %3874  ;;  %v3947_v42 = vld [vmem:[#allocation2 + $0x410] sm:$0xff] }
 0x745   : > { %v5128_v7 = vsel %vm2502_vm0, %v2504_v32, 0.0  ;;  %v3948_v32 = vld [vmem:[#allocation2 + $0x448] sm:$0xff] }
 0x746   : > { %v2522_v0 = vmul.f32 %v5128_v7, %v5102_v6  ;;  %v2523_v44 = vmul.f32 %v5128_v7, %v5108_v43  ;;  %v2524_v38 = vmul.f32 %v5128_v7, %v5104_v3  ;;  %v2525_v47 = vmul.f32 %v5128_v7, %v5110_v46 }
 0x747   : > { %v2526_v33 = vmul.f32 %v5128_v7, %v2314_v21  ;;  %v2527_v6 = vmul.f32 %v5128_v7, %v2316_v25  ;;  %v2529_v56 = vmul.f32 %v5128_v7, %v2480_v1 }
 0x748   : > { %v5140_v48 = vsub.f32 %v4596_v60, %v2522_v0  ;;  %v5143_v45 = vsub.f32 %v4592_v19, %v2523_v44  ;;  %v5146_v55 = vsub.f32 %v4588_v18, %v2524_v38  ;;  %v5150_v43 = vsub.f32 %v4584_v26, %v2525_v47  ;;  %v3949_v0 = vld [vmem:[#allocation2 + $0x458] sm:$0xff]  ;;  %v3950_v44 = vld [vmem:[#allocation2 + $0x440] sm:$0xff]  ;;  %v3951_v38 = vld [vmem:[#allocation2 + $0x450] sm:$0xff] }
 0x749   : > { %v2528_v60 = vmul.f32 %v5128_v7, %v2478_v22  ;;  %v5158_v17 = vsub.f32 %v4580_v24, %v2526_v33  ;;  %v5164_v26 = vsub.f32 %v4576_v2, %v2527_v6  ;;  %v5174_v20 = vsub.f32 %v4568_v61, %v2529_v56  ;;  %v3952_v47 = vld [vmem:[#allocation2 + $0x488] sm:$0xff]  ;;  %v3953_v33 = vld [vmem:[#allocation2 + $0x498] sm:$0xff]  ;;  %v3954_v6 = vld [vmem:[#allocation2 + $0x480] sm:$0xff] }
 0x74a   : > { %v2538_v3 = vmul.f32 %v5140_v48, %v5140_v48  ;;  %v2539_v46 = vmul.f32 %v5143_v45, %v5143_v45  ;;  %v2540_v18 = vmul.f32 %v5146_v55, %v5146_v55  ;;  %v2541_v41 = vmul.f32 %v5150_v43, %v5150_v43  ;;  %v3960_v56 = vld [vmem:[#allocation2 + $0x508] sm:$0xff] }
 0x74b   : > { %v5169_v59 = vsub.f32 %v4572_v28, %v2528_v60  ;;  %v2542_v24 = vmul.f32 %v5158_v17, %v5158_v17  ;;  %v2543_v21 = vmul.f32 %v5164_v26, %v5164_v26  ;;  %v2545_v25 = vmul.f32 %v5174_v20, %v5174_v20  ;;  %v3957_v60 = vld [vmem:[#allocation2 + $0x4d8] sm:$0xff] }
 0x74c   : > { %v2546_v19 = vadd.f32 %v2539_v46, %v2538_v3  ;;  %v3955_v3 = vld [vmem:[#allocation2 + $0x490] sm:$0xff]  ;;  %v3956_v46 = vld [vmem:[#allocation2 + $0x4c8] sm:$0xff] }
 0x74d   : > { %v2544_v2 = vmul.f32 %v5169_v59, %v5169_v59 }
 0x74e   : > { %v2547_v58 = vadd.f32 %v2546_v19, %v2540_v18  ;;  %v3958_v18 = vld [vmem:[#allocation2 + $0x4c0] sm:$0xff]  ;;  %v3959_v19 = vld [vmem:[#allocation2 + $0x4d0] sm:$0xff] }
 0x750   : > { %v2548_v63 = vadd.f32 %v2547_v58, %v2541_v41  ;;  %v3961_v41 = vld [vmem:[#allocation2 + $0x518] sm:$0xff]  ;;  %v3962_v58 = vld [vmem:[#allocation2 + $0x500] sm:$0xff] }
 0x752   : > { %v2549_v22 = vadd.f32 %v2548_v63, %v2542_v24  ;;  %v3963_v24 = vld [vmem:[#allocation2 + $0x510] sm:$0xff]  ;;  %v3964_v63 = vld [vmem:[#allocation2 + $0x548] sm:$0xff] }
 0x754   : > { %v2550_v23 = vadd.f32 %v2549_v22, %v2543_v21  ;;  %v3965_v21 = vld [vmem:[#allocation2 + $0x558] sm:$0xff]  ;;  %v3966_v22 = vld [vmem:[#allocation2 + $0x540] sm:$0xff] }
 0x756   : > { %v2551_v28 = vadd.f32 %v2550_v23, %v2544_v2  ;;  %v3967_v2 = vld [vmem:[#allocation2 + $0x550] sm:$0xff]  ;;  %v3968_v23 = vld [vmem:[#allocation2 + $0x588] sm:$0xff] }
 0x758   : > { %v2552_v1 = vadd.f32 %v2551_v28, %v2545_v25  ;;  %v3969_v25 = vld [vmem:[#allocation2 + $0x598] sm:$0xff]  ;;  %v3970_v28 = vld [vmem:[#allocation2 + $0x580] sm:$0xff] }
 0x75a   : > { %2553 = vadd.xlane.f32.xlu0 %v2552_v1  ;;  %v3971_v1 = vld [vmem:[#allocation2 + $0x590] sm:$0xff] }
 0x7e7   : > { %v5184_v61 = vpop.xlane.xlu0 %2553 }
 0x7e8   : > { %v2557_v57 = vmul.f32 %v3875_v27, %v5184_v61  ;;  %v3972_v27 = vld [vmem:[#allocation2 + $0x5c8] sm:$0xff]  ;;  %vm3309_vm3 = vcmp.gt.f32.partialorder %v5184_v61, 0.0 }
 0x7ea   : > { %v5187_v30 = vsel %vm2555_vm1, %v2557_v57, 0.0  ;;  %v3973_v57 = vld [vmem:[#allocation2 + $0x5d8] sm:$0xff] }
 0x7eb   : > { %v2560_v29 = vmul.f32 %v4560_v53, %v5187_v30  ;;  %v2559_v62 = vmul.f32 %v4564_v54, %v5187_v30  ;;  %v2562_v16 = vmul.f32 %v4552_v52, %v5187_v30 }
 0x7ed   : > { %v5196_v34 = vadd.f32 %v2560_v29, %v5143_v45  ;;  %v5199_v37 = vadd.f32 %v2559_v62, %v5140_v48  ;;  %v5202_v4 = vadd.f32 %v2562_v16, %v5150_v43  ;;  %v3974_v29 = vld [vmem:[#allocation2 + $0x5c0] sm:$0xff]  ;;  %v3975_v62 = vld [vmem:[#allocation2 + $0x5d0] sm:$0xff]  ;;  %v3976_v16 = vld [vmem:[#allocation2 + $0x608] sm:$0xff] }
 0x7ef   : > { %v5206_v35 = vpack.c.bf16 %v5196_v34, %v5196_v34  ;;  %v5210_v31 = vpack.c.bf16 %v5199_v37, %v5199_v37  ;;  %v5218_v5 = vpack.c.bf16 %v5202_v4, %v5202_v4 }
 0x7f1   : > { %2615 = vmatprep.mubr.bf16.mxu0 %v5206_v35  ;;  %2779 = vmatprep.mubr.bf16.mxu1 %v5206_v35 }
 0x7f2   : > { %2616 = vmatmul.mubr.bf16.vlgmr.msra.gmra.mrb[8].mxu0 %v5210_v31  ;;  %2780 = vmatmul.mubr.bf16.vlgmr.msra.gmra.mrb[8].mxu1 %v5210_v31 }
 0x7f3   : > { %2625 = vmatpush1.bf16.msra.mxu0 %v3946_v40  ;;  %2789 = vmatpush1.bf16.msra.mxu1 %v3947_v42  ;;  %v3977_v40 = vld [vmem:[#allocation2 + $0x618] sm:$0xff]  ;;  %v3978_v42 = vld [vmem:[#allocation2 + $0x600] sm:$0xff] }
 0x7f4   : > { %2656 = vmatprep.mubr.bf16.mxu0 %v5218_v5  ;;  %2820 = vmatprep.mubr.bf16.mxu1 %v5218_v5 }
 0x7f5   : > { %2626 = vmatprep.subr.bf16.mxu0 %v3948_v32  ;;  %2790 = vmatprep.subr.bf16.mxu1 %v3949_v0  ;;  %v3979_v32 = vld [vmem:[#allocation2 + $0x610] sm:$0xff]  ;;  %v3980_v0 = vld [vmem:[#allocation2 + $0x648] sm:$0xff] }
 0x7f7   : > { %2627 = vmatpush1.bf16.msra.mxu0 %v3950_v44  ;;  %2791 = vmatpush1.bf16.msra.mxu1 %v3951_v38  ;;  %v3981_v44 = vld [vmem:[#allocation2 + $0x658] sm:$0xff]  ;;  %v3982_v38 = vld [vmem:[#allocation2 + $0x640] sm:$0xff] }
 0x7f8   : > { %2628 = vmatprep.subr.bf16.mxu0 %v3952_v47  ;;  %2792 = vmatprep.subr.bf16.mxu1 %v3953_v33  ;;  %v3983_v47 = vld [vmem:[#allocation2 + $0x650] sm:$0xff]  ;;  %v3984_v33 = vld [vmem:[#allocation2 + $0x688] sm:$0xff] }
 0x7fb   : > { %2629 = vmatpush1.bf16.msra.mxu0 %v3954_v6  ;;  %2793 = vmatpush1.bf16.msra.mxu1 %v3955_v3  ;;  %v3985_v6 = vld [vmem:[#allocation2 + $0x698] sm:$0xff]  ;;  %v3986_v3 = vld [vmem:[#allocation2 + $0x680] sm:$0xff] }
 0x7fc   : > { %2630 = vmatprep.subr.bf16.mxu0 %v3956_v46  ;;  %2794 = vmatprep.subr.bf16.mxu1 %v3957_v60  ;;  %v3987_v46 = vld [vmem:[#allocation2 + $0x690] sm:$0xff]  ;;  %v3988_v60 = vld [vmem:[#allocation2 + $0x6c8] sm:$0xff] }
 0x7ff   : > { %2631 = vmatpush1.bf16.msra.mxu0 %v3958_v18  ;;  %2795 = vmatpush1.bf16.msra.mxu1 %v3959_v19  ;;  %v3989_v18 = vld [vmem:[#allocation2 + $0x6d8] sm:$0xff]  ;;  %v3990_v19 = vld [vmem:[#allocation2 + $0x6c0] sm:$0xff] }
 0x800   : > { %2632 = vmatprep.subr.bf16.mxu0 %v3960_v56  ;;  %2796 = vmatprep.subr.bf16.mxu1 %v3961_v41  ;;  %v3991_v56 = vld [vmem:[#allocation2 + $0x6d0] sm:$0xff]  ;;  %v3992_v41 = vld [vmem:[#allocation2 + $0x708] sm:$0xff] }
 0x803   : > { %2633 = vmatpush1.bf16.msra.mxu0 %v3962_v58  ;;  %2797 = vmatpush1.bf16.msra.mxu1 %v3963_v24  ;;  %v3993_v58 = vld [vmem:[#allocation2 + $0x718] sm:$0xff]  ;;  %v3994_v24 = vld [vmem:[#allocation2 + $0x700] sm:$0xff] }
 0x804   : > { %2634 = vmatprep.subr.bf16.mxu0 %v3964_v63  ;;  %2798 = vmatprep.subr.bf16.mxu1 %v3965_v21  ;;  %v3995_v63 = vld [vmem:[#allocation2 + $0x710] sm:$0xff]  ;;  %v3996_v21 = vld [vmem:[#allocation2 + $0x748] sm:$0xff] }
 0x807   : > { %2635 = vmatpush1.bf16.msra.mxu0 %v3966_v22  ;;  %2799 = vmatpush1.bf16.msra.mxu1 %v3967_v2  ;;  %v3997_v22 = vld [vmem:[#allocation2 + $0x758] sm:$0xff]  ;;  %v3998_v2 = vld [vmem:[#allocation2 + $0x740] sm:$0xff] }
 0x808   : > { %2636 = vmatprep.subr.bf16.mxu0 %v3968_v23  ;;  %2800 = vmatprep.subr.bf16.mxu1 %v3969_v25  ;;  %v3999_v23 = vld [vmem:[#allocation2 + $0x750] sm:$0xff]  ;;  %v4000_v25 = vld [vmem:[#allocation2 + $0x788] sm:$0xff] }
 0x80b   : > { %2637 = vmatpush1.bf16.msra.mxu0 %v3970_v28  ;;  %2801 = vmatpush1.bf16.msra.mxu1 %v3971_v1  ;;  %v4001_v28 = vld [vmem:[#allocation2 + $0x798] sm:$0xff]  ;;  %v2561_v1 = vmul.f32 %v4556_v36, %v5187_v30 }
 0x80c   : > { %2638 = vmatprep.subr.bf16.mxu0 %v3972_v27  ;;  %2802 = vmatprep.subr.bf16.mxu1 %v3973_v57  ;;  %v2564_v27 = vmul.f32 %v4544_v51, %v5187_v30  ;;  %v4002_v57 = vld [vmem:[#allocation2 + $0x780] sm:$0xff] }
 0x80f   : > { %2639 = vmatpush1.bf16.msra.mxu0 %v3974_v29  ;;  %2803 = vmatpush1.bf16.msra.mxu1 %v3975_v62  ;;  %v4003_v29 = vld [vmem:[#allocation2 + $0x790] sm:$0xff]  ;;  %v4004_v62 = vld [vmem:[#allocation2 + $0x7c8] sm:$0xff] }
 0x810   : > { %2640 = vmatprep.subr.bf16.mxu0 %v3976_v16  ;;  %2804 = vmatprep.subr.bf16.mxu1 %v3977_v40  ;;  %v4005_v16 = vld [vmem:[#allocation2 + $0x7d8] sm:$0xff]  ;;  %v5227_v40 = vadd.f32 %v2561_v1, %v5146_v55  ;;  %v4027_v1 = vld [vmem:[#allocation2 + $0x910] sm:$0xff] }
 0x813   : > { %2641 = vmatpush1.bf16.msra.mxu0 %v3978_v42  ;;  %2805 = vmatpush1.bf16.msra.mxu1 %v3979_v32  ;;  %v5230_v42 = vadd.f32 %v2564_v27, %v5164_v26  ;;  %v4006_v32 = vld [vmem:[#allocation2 + $0x7c0] sm:$0xff]  ;;  %v4028_v27 = vld [vmem:[#allocation2 + $0x948] sm:$0xff] }
 0x814   : > { %2642 = vmatprep.subr.bf16.mxu0 %v3980_v0  ;;  %2806 = vmatprep.subr.bf16.mxu1 %v3981_v44  ;;  %v4007_v0 = vld [vmem:[#allocation2 + $0x7d0] sm:$0xff]  ;;  %v5234_v44 = vpack.c.bf16 %v5227_v40, %v5227_v40 }
 0x817   : > { %2643 = vmatpush1.bf16.msra.mxu0 %v3982_v38  ;;  %2807 = vmatpush1.bf16.msra.mxu1 %v3983_v47  ;;  %v4008_v38 = vld [vmem:[#allocation2 + $0x808] sm:$0xff]  ;;  %v4009_v47 = vld [vmem:[#allocation2 + $0x818] sm:$0xff] }
 0x818   : > { %2644 = vmatprep.subr.bf16.mxu0 %v3984_v33  ;;  %2808 = vmatprep.subr.bf16.mxu1 %v3985_v6  ;;  %v5238_v33 = vpack.c.bf16 %v5230_v42, %v5230_v42  ;;  %v4010_v6 = vld [vmem:[#allocation2 + $0x800] sm:$0xff] }
 0x81b   : > { %2645 = vmatpush1.bf16.msra.mxu0 %v3986_v3  ;;  %2809 = vmatpush1.bf16.msra.mxu1 %v3987_v46  ;;  %v4011_v3 = vld [vmem:[#allocation2 + $0x810] sm:$0xff]  ;;  %v4012_v46 = vld [vmem:[#allocation2 + $0x848] sm:$0xff] }
 0x81c   : > { %2646 = vmatprep.subr.bf16.mxu0 %v3988_v60  ;;  %2810 = vmatprep.subr.bf16.mxu1 %v3989_v18  ;;  %v4013_v60 = vld [vmem:[#allocation2 + $0x858] sm:$0xff]  ;;  %v4014_v18 = vld [vmem:[#allocation2 + $0x840] sm:$0xff] }
 0x81f   : > { %2647 = vmatpush1.bf16.msra.mxu0 %v3990_v19  ;;  %2811 = vmatpush1.bf16.msra.mxu1 %v3991_v56  ;;  %v4015_v19 = vld [vmem:[#allocation2 + $0x850] sm:$0xff]  ;;  %v4016_v56 = vld [vmem:[#allocation2 + $0x888] sm:$0xff] }
 0x820   : > { %2648 = vmatprep.subr.bf16.mxu0 %v3992_v41  ;;  %2812 = vmatprep.subr.bf16.mxu1 %v3993_v58  ;;  %v4017_v41 = vld [vmem:[#allocation2 + $0x898] sm:$0xff]  ;;  %v4018_v58 = vld [vmem:[#allocation2 + $0x880] sm:$0xff] }
 0x823   : > { %2649 = vmatpush1.bf16.msra.mxu0 %v3994_v24  ;;  %2813 = vmatpush1.bf16.msra.mxu1 %v3995_v63  ;;  %v4019_v24 = vld [vmem:[#allocation2 + $0x890] sm:$0xff]  ;;  %v4020_v63 = vld [vmem:[#allocation2 + $0x8c8] sm:$0xff] }
 0x824   : > { %2650 = vmatprep.subr.bf16.mxu0 %v3996_v21  ;;  %2814 = vmatprep.subr.bf16.mxu1 %v3997_v22  ;;  %v4021_v21 = vld [vmem:[#allocation2 + $0x8d8] sm:$0xff]  ;;  %v4022_v22 = vld [vmem:[#allocation2 + $0x8c0] sm:$0xff] }
 0x827   : > { %2651 = vmatpush1.bf16.msra.mxu0 %v3998_v2  ;;  %2815 = vmatpush1.bf16.msra.mxu1 %v3999_v23  ;;  %v4023_v2 = vld [vmem:[#allocation2 + $0x8d0] sm:$0xff]  ;;  %v4024_v23 = vld [vmem:[#allocation2 + $0x908] sm:$0xff] }
 0x828   : > { %2652 = vmatprep.subr.bf16.mxu0 %v4000_v25  ;;  %2816 = vmatprep.subr.bf16.mxu1 %v4001_v28  ;;  %v4025_v25 = vld [vmem:[#allocation2 + $0x918] sm:$0xff]  ;;  %v4026_v28 = vld [vmem:[#allocation2 + $0x900] sm:$0xff] }
 0x82b   : > { %2653 = vmatpush1.bf16.msra.mxu0 %v4002_v57  ;;  %2817 = vmatpush1.bf16.msra.mxu1 %v4003_v29  ;;  %v4029_v57 = vld [vmem:[#allocation2 + $0x958] sm:$0xff]  ;;  %v4030_v29 = vld [vmem:[#allocation2 + $0x940] sm:$0xff] }
 0x82c   : > { %2654 = vmatprep.subr.bf16.mxu0 %v4004_v62  ;;  %2818 = vmatprep.subr.bf16.mxu1 %v4005_v16  ;;  %v4031_v62 = vld [vmem:[#allocation2 + $0x950] sm:$0xff]  ;;  %v4032_v16 = vld [vmem:[#allocation2 + $0x988] sm:$0xff] }
 0x82f   : > { %2655 = vmatpush1.bf16.msra.mxu0 %v4006_v32  ;;  %2819 = vmatpush1.bf16.msra.mxu1 %v4007_v0  ;;  %v4033_v32 = vld [vmem:[#allocation2 + $0x998] sm:$0xff]  ;;  %v4034_v0 = vld [vmem:[#allocation2 + $0x980] sm:$0xff] }
 0x830   : > { %2665 = vmatprep.subr.bf16.mxu0 %v4008_v38  ;;  %2829 = vmatprep.subr.bf16.mxu1 %v4009_v47  ;;  %v4035_v38 = vld [vmem:[#allocation2 + $0x990] sm:$0xff]  ;;  %v4036_v47 = vld [vmem:[#allocation2 + $0x9c8] sm:$0xff] }
 0x832   : > { %2657 = vmatmul.mubr.bf16.vlgmr.msra.gmra.mrb[8].mxu0 %v5234_v44  ;;  %2821 = vmatmul.mubr.bf16.vlgmr.msra.gmra.mrb[8].mxu1 %v5234_v44 }
 0x833   : > { %2666 = vmatpush1.bf16.msra.mxu0 %v4010_v6  ;;  %2697 = vmatprep.mubr.bf16.mxu0 %v5238_v33  ;;  %v4037_v6 = vld [vmem:[#allocation2 + $0x9d8] sm:$0xff] }
 0x834   : > { %2830 = vmatpush1.bf16.msra.mxu1 %v4011_v3  ;;  %2861 = vmatprep.mubr.bf16.mxu1 %v5238_v33  ;;  %v4038_v3 = vld [vmem:[#allocation2 + $0x9c0] sm:$0xff] }
 0x835   : > { %2667 = vmatprep.subr.bf16.mxu0 %v4012_v46  ;;  %2831 = vmatprep.subr.bf16.mxu1 %v4013_v60  ;;  %v4039_v46 = vld [vmem:[#allocation2 + $0x9d0] sm:$0xff]  ;;  %v4040_v60 = vld [vmem:[#allocation2 + $0xa08] sm:$0xff] }
 0x837   : > { %2668 = vmatpush1.bf16.msra.mxu0 %v4014_v18  ;;  %v4041_v18 = vld [vmem:[#allocation2 + $0xa18] sm:$0xff] }
 0x838   : > { %2832 = vmatpush1.bf16.msra.mxu1 %v4015_v19  ;;  %2669 = vmatprep.subr.bf16.mxu0 %v4016_v56  ;;  %v4042_v19 = vld [vmem:[#allocation2 + $0xa00] sm:$0xff]  ;;  %v4043_v56 = vld [vmem:[#allocation2 + $0xa10] sm:$0xff] }
 0x839   : > { %2833 = vmatprep.subr.bf16.mxu1 %v4017_v41  ;;  %v4044_v41 = vld [vmem:[#allocation2 + $0xa48] sm:$0xff] }
 0x83b   : > { %2670 = vmatpush1.bf16.msra.mxu0 %v4018_v58  ;;  %v4045_v58 = vld [vmem:[#allocation2 + $0xa58] sm:$0xff] }
 0x83c   : > { %2834 = vmatpush1.bf16.msra.mxu1 %v4019_v24  ;;  %2671 = vmatprep.subr.bf16.mxu0 %v4020_v63  ;;  %v4046_v24 = vld [vmem:[#allocation2 + $0xa40] sm:$0xff]  ;;  %v4047_v63 = vld [vmem:[#allocation2 + $0xa50] sm:$0xff] }
 0x83d   : > { %2835 = vmatprep.subr.bf16.mxu1 %v4021_v21  ;;  %v4048_v21 = vld [vmem:[#allocation2 + $0xa88] sm:$0xff] }
 0x83f   : > { %2672 = vmatpush1.bf16.msra.mxu0 %v4022_v22  ;;  %v4049_v22 = vld [vmem:[#allocation2 + $0xa98] sm:$0xff] }
 0x840   : > { %2836 = vmatpush1.bf16.msra.mxu1 %v4023_v2  ;;  %2673 = vmatprep.subr.bf16.mxu0 %v4024_v23  ;;  %v4050_v2 = vld [vmem:[#allocation2 + $0xa80] sm:$0xff]  ;;  %v4051_v23 = vld [vmem:[#allocation2 + $0xa90] sm:$0xff] }
 0x841   : > { %2837 = vmatprep.subr.bf16.mxu1 %v4025_v25  ;;  %v4052_v25 = vld [vmem:[#allocation2 + $0xac8] sm:$0xff] }
 0x843   : > { %2674 = vmatpush1.bf16.msra.mxu0 %v4026_v28  ;;  %v4053_v28 = vld [vmem:[#allocation2 + $0xad8] sm:$0xff] }
 0x844   : > { %2838 = vmatpush1.bf16.msra.mxu1 %v4027_v1  ;;  %2675 = vmatprep.subr.bf16.mxu0 %v4028_v27  ;;  %v4054_v1 = vld [vmem:[#allocation2 + $0xac0] sm:$0xff]  ;;  %v4055_v27 = vld [vmem:[#allocation2 + $0xad0] sm:$0xff] }
 0x845   : > { %2839 = vmatprep.subr.bf16.mxu1 %v4029_v57  ;;  %v4056_v57 = vld [vmem:[#allocation2 + $0xb08] sm:$0xff] }
 0x847   : > { %2676 = vmatpush1.bf16.msra.mxu0 %v4030_v29  ;;  %v4057_v29 = vld [vmem:[#allocation2 + $0xb18] sm:$0xff] }
 0x848   : > { %2840 = vmatpush1.bf16.msra.mxu1 %v4031_v62  ;;  %2677 = vmatprep.subr.bf16.mxu0 %v4032_v16  ;;  %v4058_v62 = vld [vmem:[#allocation2 + $0xb00] sm:$0xff]  ;;  %v4059_v16 = vld [vmem:[#allocation2 + $0xb10] sm:$0xff] }
 0x849   : > { %2841 = vmatprep.subr.bf16.mxu1 %v4033_v32  ;;  %v4060_v32 = vld [vmem:[#allocation2 + $0xb48] sm:$0xff] }
 0x84b   : > { %2678 = vmatpush1.bf16.msra.mxu0 %v4034_v0  ;;  %v4061_v0 = vld [vmem:[#allocation2 + $0xb58] sm:$0xff] }
 0x84c   : > { %2842 = vmatpush1.bf16.msra.mxu1 %v4035_v38  ;;  %2679 = vmatprep.subr.bf16.mxu0 %v4036_v47  ;;  %v4062_v38 = vld [vmem:[#allocation2 + $0xb40] sm:$0xff]  ;;  %v4063_v47 = vld [vmem:[#allocation2 + $0xb50] sm:$0xff] }
 0x84d   : > { %2843 = vmatprep.subr.bf16.mxu1 %v4037_v6  ;;  %v4064_v6 = vld [vmem:[#allocation2 + $0xb88] sm:$0xff] }
 0x84f   : > { %2680 = vmatpush1.bf16.msra.mxu0 %v4038_v3  ;;  %v2563_v3 = vmul.f32 %v4548_v39, %v5187_v30 }
 0x850   : > { %2844 = vmatpush1.bf16.msra.mxu1 %v4039_v46  ;;  %2681 = vmatprep.subr.bf16.mxu0 %v4040_v60  ;;  %v4065_v46 = vld [vmem:[#allocation2 + $0xb98] sm:$0xff]  ;;  %v2566_v60 = vmul.f32 %v4536_v49, %v5187_v30 }
 0x851   : > { %2845 = vmatprep.subr.bf16.mxu1 %v4041_v18  ;;  %v4066_v18 = vld [vmem:[#allocation2 + $0xb80] sm:$0xff] }
 0x853   : > { %2682 = vmatpush1.bf16.msra.mxu0 %v4042_v19  ;;  %v4067_v19 = vld [vmem:[#allocation2 + $0xb90] sm:$0xff] }
 0x854   : > { %2846 = vmatpush1.bf16.msra.mxu1 %v4043_v56  ;;  %2683 = vmatprep.subr.bf16.mxu0 %v4044_v41  ;;  %v4068_v56 = vld [vmem:[#allocation2 + $0xbc8] sm:$0xff]  ;;  %v5249_v41 = vadd.f32 %v2563_v3, %v5158_v17  ;;  %v4086_v3 = vld [vmem:[#allocation2 + $0xcc0] sm:$0xff] }
 0x855   : > { %2847 = vmatprep.subr.bf16.mxu1 %v4045_v58  ;;  %v4069_v58 = vld [vmem:[#allocation2 + $0xbd8] sm:$0xff] }
 0x857   : > { %2684 = vmatpush1.bf16.msra.mxu0 %v4046_v24  ;;  %v5252_v24 = vadd.f32 %v2566_v60, %v5174_v20  ;;  %v4088_v60 = vld [vmem:[#allocation2 + $0xd08] sm:$0xff] }
 0x858   : > { %2848 = vmatpush1.bf16.msra.mxu1 %v4047_v63  ;;  %2685 = vmatprep.subr.bf16.mxu0 %v4048_v21  ;;  %v4070_v63 = vld [vmem:[#allocation2 + $0xbc0] sm:$0xff]  ;;  %v4071_v21 = vld [vmem:[#allocation2 + $0xbd0] sm:$0xff] }
 0x859   : > { %2849 = vmatprep.subr.bf16.mxu1 %v4049_v22  ;;  %v5256_v22 = vpack.c.bf16 %v5249_v41, %v5249_v41 }
 0x85b   : > { %2686 = vmatpush1.bf16.msra.mxu0 %v4050_v2  ;;  %v4072_v2 = vld [vmem:[#allocation2 + $0xc08] sm:$0xff] }
 0x85c   : > { %2850 = vmatpush1.bf16.msra.mxu1 %v4051_v23  ;;  %2687 = vmatprep.subr.bf16.mxu0 %v4052_v25  ;;  %v4073_v23 = vld [vmem:[#allocation2 + $0xc18] sm:$0xff]  ;;  %v5261_v25 = vpack.c.bf16 %v5252_v24, %v5252_v24 }
 0x85d   : > { %2851 = vmatprep.subr.bf16.mxu1 %v4053_v28  ;;  %v4074_v28 = vld [vmem:[#allocation2 + $0xc00] sm:$0xff] }
 0x85f   : > { %2688 = vmatpush1.bf16.msra.mxu0 %v4054_v1  ;;  %v4075_v1 = vld [vmem:[#allocation2 + $0xc10] sm:$0xff] }
 0x860   : > { %2852 = vmatpush1.bf16.msra.mxu1 %v4055_v27  ;;  %2689 = vmatprep.subr.bf16.mxu0 %v4056_v57  ;;  %v4076_v27 = vld [vmem:[#allocation2 + $0xc48] sm:$0xff]  ;;  %v4077_v57 = vld [vmem:[#allocation2 + $0xc58] sm:$0xff] }
 0x861   : > { %2853 = vmatprep.subr.bf16.mxu1 %v4057_v29  ;;  %v4078_v29 = vld [vmem:[#allocation2 + $0xc40] sm:$0xff] }
 0x863   : > { %2690 = vmatpush1.bf16.msra.mxu0 %v4058_v62  ;;  %v4079_v62 = vld [vmem:[#allocation2 + $0xc50] sm:$0xff] }
 0x864   : > { %2854 = vmatpush1.bf16.msra.mxu1 %v4059_v16  ;;  %2691 = vmatprep.subr.bf16.mxu0 %v4060_v32  ;;  %v4080_v16 = vld [vmem:[#allocation2 + $0xc88] sm:$0xff]  ;;  %v4081_v32 = vld [vmem:[#allocation2 + $0xc98] sm:$0xff] }
 0x865   : > { %2855 = vmatprep.subr.bf16.mxu1 %v4061_v0  ;;  %v4082_v0 = vld [vmem:[#allocation2 + $0xc80] sm:$0xff] }
 0x867   : > { %2692 = vmatpush1.bf16.msra.mxu0 %v4062_v38  ;;  %v4083_v38 = vld [vmem:[#allocation2 + $0xc90] sm:$0xff] }
 0x868   : > { %2856 = vmatpush1.bf16.msra.mxu1 %v4063_v47  ;;  %2693 = vmatprep.subr.bf16.mxu0 %v4064_v6  ;;  %v4084_v47 = vld [vmem:[#allocation2 + $0xcc8] sm:$0xff]  ;;  %v4085_v6 = vld [vmem:[#allocation2 + $0xcd8] sm:$0xff] }
 0x869   : > { %2857 = vmatprep.subr.bf16.mxu1 %v4065_v46  ;;  %v4087_v46 = vld [vmem:[#allocation2 + $0xcd0] sm:$0xff] }
 0x86b   : > { %2694 = vmatpush1.bf16.msra.mxu0 %v4066_v18  ;;  %v4089_v18 = vld [vmem:[#allocation2 + $0xd18] sm:$0xff] }
 0x86c   : > { %2858 = vmatpush1.bf16.msra.mxu1 %v4067_v19  ;;  %2695 = vmatprep.subr.bf16.mxu0 %v4068_v56  ;;  %v4090_v19 = vld [vmem:[#allocation2 + $0xd00] sm:$0xff]  ;;  %v4091_v56 = vld [vmem:[#allocation2 + $0xd10] sm:$0xff] }
 0x86d   : > { %2859 = vmatprep.subr.bf16.mxu1 %v4069_v58  ;;  %v4092_v58 = vld [vmem:[#allocation2 + $0xd48] sm:$0xff] }
 0x86f   : > { %2696 = vmatpush1.bf16.msra.mxu0 %v4070_v63  ;;  %v4093_v63 = vld [vmem:[#allocation2 + $0xd58] sm:$0xff] }
 0x870   : > { %2860 = vmatpush1.bf16.msra.mxu1 %v4071_v21  ;;  %2706 = vmatprep.subr.bf16.mxu0 %v4072_v2  ;;  %v4094_v21 = vld [vmem:[#allocation2 + $0xd40] sm:$0xff]  ;;  %v4095_v2 = vld [vmem:[#allocation2 + $0xd50] sm:$0xff] }
 0x871   : > { %2870 = vmatprep.subr.bf16.mxu1 %v4073_v23  ;;  %v4096_v23 = vld [vmem:[#allocation2 + $0xd88] sm:$0xff] }
 0x872   : > { %2698 = vmatmul.mubr.bf16.vlgmr.msra.gmra.mrb[8].mxu0 %v5256_v22 }
 0x873   : > { %2862 = vmatmul.mubr.bf16.vlgmr.msra.gmra.mrb[8].mxu1 %v5256_v22  ;;  %2707 = vmatpush1.bf16.msra.mxu0 %v4074_v28  ;;  %v4097_v28 = vld [vmem:[#allocation2 + $0xd98] sm:$0xff] }
 0x874   : > { %2738 = vmatprep.mubr.bf16.mxu0 %v5261_v25  ;;  %2871 = vmatpush1.bf16.msra.mxu1 %v4075_v1  ;;  %v4098_v1 = vld [vmem:[#allocation2 + $0xd80] sm:$0xff] }
 0x875   : > { %2902 = vmatprep.mubr.bf16.mxu1 %v5261_v25  ;;  %2708 = vmatprep.subr.bf16.mxu0 %v4076_v27  ;;  %v4099_v27 = vld [vmem:[#allocation2 + $0xd90] sm:$0xff] }
 0x876   : > { %2872 = vmatprep.subr.bf16.mxu1 %v4077_v57  ;;  %v4100_v57 = vld [vmem:[#allocation2 + $0xdc8] sm:$0xff] }
 0x877   : > { %2709 = vmatpush1.bf16.msra.mxu0 %v4078_v29  ;;  %v4101_v29 = vld [vmem:[#allocation2 + $0xdd8] sm:$0xff] }
 0x878   : > { %2873 = vmatpush1.bf16.msra.mxu1 %v4079_v62  ;;  %2710 = vmatprep.subr.bf16.mxu0 %v4080_v16  ;;  %v4102_v62 = vld [vmem:[#allocation2 + $0xdc0] sm:$0xff]  ;;  %v4103_v16 = vld [vmem:[#allocation2 + $0xdd0] sm:$0xff] }
 0x879   : > { %2874 = vmatprep.subr.bf16.mxu1 %v4081_v32  ;;  %v4104_v32 = vld [vmem:[#allocation2 + $0xe08] sm:$0xff] }
 0x87b   : > { %2711 = vmatpush1.bf16.msra.mxu0 %v4082_v0  ;;  %v4105_v0 = vld [vmem:[#allocation2 + $0xe18] sm:$0xff] }
 0x87c   : > { %2875 = vmatpush1.bf16.msra.mxu1 %v4083_v38  ;;  %2712 = vmatprep.subr.bf16.mxu0 %v4084_v47  ;;  %v4106_v38 = vld [vmem:[#allocation2 + $0xe00] sm:$0xff]  ;;  %v4107_v47 = vld [vmem:[#allocation2 + $0xe10] sm:$0xff] }
 0x87d   : > { %2876 = vmatprep.subr.bf16.mxu1 %v4085_v6  ;;  %v4108_v6 = vld [vmem:[#allocation2 + $0xe48] sm:$0xff] }
 0x87f   : > { %2713 = vmatpush1.bf16.msra.mxu0 %v4086_v3  ;;  %v4109_v3 = vld [vmem:[#allocation2 + $0xe58] sm:$0xff] }
 0x880   : > { %2877 = vmatpush1.bf16.msra.mxu1 %v4087_v46  ;;  %2714 = vmatprep.subr.bf16.mxu0 %v4088_v60  ;;  %v4110_v46 = vld [vmem:[#allocation2 + $0xe40] sm:$0xff]  ;;  %v4111_v60 = vld [vmem:[#allocation2 + $0xe50] sm:$0xff] }
 0x881   : > { %2878 = vmatprep.subr.bf16.mxu1 %v4089_v18  ;;  %v4112_v18 = vld [vmem:[#allocation2 + $0xe88] sm:$0xff] }
 0x883   : > { %2715 = vmatpush1.bf16.msra.mxu0 %v4090_v19  ;;  %v4113_v19 = vld [vmem:[#allocation2 + $0xe98] sm:$0xff] }
 0x884   : > { %2879 = vmatpush1.bf16.msra.mxu1 %v4091_v56  ;;  %2716 = vmatprep.subr.bf16.mxu0 %v4092_v58  ;;  %v4114_v56 = vld [vmem:[#allocation2 + $0xe80] sm:$0xff]  ;;  %v4115_v58 = vld [vmem:[#allocation2 + $0xe90] sm:$0xff] }
 0x885   : > { %2880 = vmatprep.subr.bf16.mxu1 %v4093_v63  ;;  %v4116_v63 = vld [vmem:[#allocation2 + $0xec8] sm:$0xff] }
 0x887   : > { %2717 = vmatpush1.bf16.msra.mxu0 %v4094_v21  ;;  %v4117_v21 = vld [vmem:[#allocation2 + $0xed8] sm:$0xff] }
 0x888   : > { %2881 = vmatpush1.bf16.msra.mxu1 %v4095_v2  ;;  %2718 = vmatprep.subr.bf16.mxu0 %v4096_v23  ;;  %v4118_v2 = vld [vmem:[#allocation2 + $0xec0] sm:$0xff]  ;;  %v4119_v23 = vld [vmem:[#allocation2 + $0xed0] sm:$0xff] }
 0x889   : > { %2882 = vmatprep.subr.bf16.mxu1 %v4097_v28  ;;  %v4120_v28 = vld [vmem:[#allocation2 + $0xf08] sm:$0xff] }
 0x88b   : > { %2719 = vmatpush1.bf16.msra.mxu0 %v4098_v1  ;;  %v4121_v1 = vld [vmem:[#allocation2 + $0xf18] sm:$0xff] }
 0x88c   : > { %2883 = vmatpush1.bf16.msra.mxu1 %v4099_v27  ;;  %2720 = vmatprep.subr.bf16.mxu0 %v4100_v57  ;;  %v4122_v27 = vld [vmem:[#allocation2 + $0xf00] sm:$0xff]  ;;  %v4123_v57 = vld [vmem:[#allocation2 + $0xf10] sm:$0xff] }
 0x88d   : > { %2884 = vmatprep.subr.bf16.mxu1 %v4101_v29  ;;  %v4124_v29 = vld [vmem:[#allocation2 + $0xf48] sm:$0xff] }
 0x88f   : > { %2721 = vmatpush1.bf16.msra.mxu0 %v4102_v62  ;;  %v4125_v62 = vld [vmem:[#allocation2 + $0xf58] sm:$0xff] }
 0x890   : > { %2885 = vmatpush1.bf16.msra.mxu1 %v4103_v16  ;;  %2722 = vmatprep.subr.bf16.mxu0 %v4104_v32  ;;  %v4126_v16 = vld [vmem:[#allocation2 + $0xf40] sm:$0xff]  ;;  %v4127_v32 = vld [vmem:[#allocation2 + $0xf50] sm:$0xff] }
 0x891   : > { %2886 = vmatprep.subr.bf16.mxu1 %v4105_v0  ;;  %v4128_v0 = vld [vmem:[#allocation2 + $0xf88] sm:$0xff] }
 0x893   : > { %2723 = vmatpush1.bf16.msra.mxu0 %v4106_v38  ;;  %v2565_v38 = vmul.f32 %v4540_v50, %v5187_v30 }
 0x894   : > { %2887 = vmatpush1.bf16.msra.mxu1 %v4107_v47  ;;  %2724 = vmatprep.subr.bf16.mxu0 %v4108_v6  ;;  %v4129_v47 = vld [vmem:[#allocation2 + $0xf98] sm:$0xff]  ;;  %v4130_v6 = vld [vmem:[#allocation2 + $0xf80] sm:$0xff] }
 0x895   : > { %2888 = vmatprep.subr.bf16.mxu1 %v4109_v3  ;;  %v4131_v3 = vld [vmem:[#allocation2 + $0xf90] sm:$0xff] }
 0x897   : > { %2725 = vmatpush1.bf16.msra.mxu0 %v4110_v46  ;;  %v4132_v46 = vld [vmem:[#allocation2 + $0xfc8] sm:$0xff] }
 0x898   : > { %2889 = vmatpush1.bf16.msra.mxu1 %v4111_v60  ;;  %2726 = vmatprep.subr.bf16.mxu0 %v4112_v18  ;;  %v5269_v60 = vadd.f32 %v2565_v38, %v5169_v59  ;;  %v4133_v18 = vld [vmem:[#allocation2 + $0xfd8] sm:$0xff]  ;;  %v4151_v38 = vld [vmem:[#allocation2 + $0xf0] sm:$0xff] }
 0x899   : > { %2890 = vmatprep.subr.bf16.mxu1 %v4113_v19  ;;  %v4134_v19 = vld [vmem:[#allocation2 + $0xfc0] sm:$0xff] }
 0x89a   : > { %v5273_v30 = vpack.c.bf16 %v5269_v60, %v5269_v60 }
 0x89b   : > { %2727 = vmatpush1.bf16.msra.mxu0 %v4114_v56  ;;  %v4135_v56 = vld [vmem:[#allocation2 + $0xfd0] sm:$0xff] }
 0x89c   : > { %2891 = vmatpush1.bf16.msra.mxu1 %v4115_v58  ;;  %2728 = vmatprep.subr.bf16.mxu0 %v4116_v63  ;;  %v4136_v58 = vld [vmem:[#allocation2 + $0x28] sm:$0xff]  ;;  %v4137_v63 = vld [vmem:[#allocation2 + $0x38] sm:$0xff] }
 0x89d   : > { %2892 = vmatprep.subr.bf16.mxu1 %v4117_v21  ;;  %v4138_v21 = vld [vmem:[#allocation2 + $0x20] sm:$0xff] }
 0x89f   : > { %2729 = vmatpush1.bf16.msra.mxu0 %v4118_v2  ;;  %v4139_v2 = vld [vmem:[#allocation2 + $0x30] sm:$0xff] }
 0x8a0   : > { %2893 = vmatpush1.bf16.msra.mxu1 %v4119_v23  ;;  %2730 = vmatprep.subr.bf16.mxu0 %v4120_v28  ;;  %v4140_v23 = vld [vmem:[#allocation2 + $0x68] sm:$0xff]  ;;  %v4141_v28 = vld [vmem:[#allocation2 + $0x78] sm:$0xff] }
 0x8a1   : > { %2894 = vmatprep.subr.bf16.mxu1 %v4121_v1  ;;  %v4142_v1 = vld [vmem:[#allocation2 + $0x60] sm:$0xff] }
 0x8a3   : > { %2731 = vmatpush1.bf16.msra.mxu0 %v4122_v27  ;;  %v4143_v27 = vld [vmem:[#allocation2 + $0x70] sm:$0xff] }
 0x8a4   : > { %2895 = vmatpush1.bf16.msra.mxu1 %v4123_v57  ;;  %2732 = vmatprep.subr.bf16.mxu0 %v4124_v29  ;;  %v4144_v57 = vld [vmem:[#allocation2 + $0xa8] sm:$0xff]  ;;  %v4145_v29 = vld [vmem:[#allocation2 + $0xb8] sm:$0xff] }
 0x8a5   : > { %2896 = vmatprep.subr.bf16.mxu1 %v4125_v62  ;;  %v4146_v62 = vld [vmem:[#allocation2 + $0xa0] sm:$0xff] }
 0x8a7   : > { %2733 = vmatpush1.bf16.msra.mxu0 %v4126_v16  ;;  %v4147_v16 = vld [vmem:[#allocation2 + $0xb0] sm:$0xff] }
 0x8a8   : > { %2897 = vmatpush1.bf16.msra.mxu1 %v4127_v32  ;;  %2734 = vmatprep.subr.bf16.mxu0 %v4128_v0  ;;  %v4148_v32 = vld [vmem:[#allocation2 + $0xe8] sm:$0xff]  ;;  %v4149_v0 = vld [vmem:[#allocation2 + $0xf8] sm:$0xff] }
 0x8a9   : > { %2898 = vmatprep.subr.bf16.mxu1 %v4129_v47  ;;  %v4152_v47 = vld [vmem:[#allocation2 + $0x128] sm:$0xff] }
 0x8ab   : > { %2735 = vmatpush1.bf16.msra.mxu0 %v4130_v6  ;;  %v4153_v6 = vld [vmem:[#allocation2 + $0x138] sm:$0xff] }
 0x8ac   : > { %2899 = vmatpush1.bf16.msra.mxu1 %v4131_v3  ;;  %2736 = vmatprep.subr.bf16.mxu0 %v4132_v46  ;;  %v4154_v3 = vld [vmem:[#allocation2 + $0x120] sm:$0xff]  ;;  %v4155_v46 = vld [vmem:[#allocation2 + $0x130] sm:$0xff] }
 0x8ad   : > { %2900 = vmatprep.subr.bf16.mxu1 %v4133_v18  ;;  %v4156_v18 = vld [vmem:[#allocation2 + $0x168] sm:$0xff] }
 0x8af   : > { %2737 = vmatpush1.bf16.msra.mxu0 %v4134_v19  ;;  %v4157_v19 = vld [vmem:[#allocation2 + $0x178] sm:$0xff] }
 0x8b0   : > { %2901 = vmatpush1.bf16.msra.mxu1 %v4135_v56  ;;  %2911 = vmatprep.subr.bf16.mxu0 %v4136_v58  ;;  %v4158_v56 = vld [vmem:[#allocation2 + $0x160] sm:$0xff]  ;;  %v4159_v58 = vld [vmem:[#allocation2 + $0x170] sm:$0xff] }
 0x8b1   : > { %3075 = vmatprep.subr.bf16.mxu1 %v4137_v63  ;;  %v4160_v63 = vld [vmem:[#allocation2 + $0x1a8] sm:$0xff] }
 0x8b2   : > { %2739 = vmatmul.mubr.bf16.vlgmr.msra.gmra.mrb[8].mxu0 %v5273_v30 }
 0x8b3   : > { %2903 = vmatmul.mubr.bf16.vlgmr.msra.gmra.mrb[8].mxu1 %v5273_v30  ;;  %2912 = vmatpush1.bf16.msra.mxu0 %v4138_v21  ;;  %v4161_v21 = vld [vmem:[#allocation2 + $0x1b8] sm:$0xff] }
 0x8b4   : > { %2943 = vmatprep.mubr.bf16.mxu0 %v5206_v35  ;;  %3076 = vmatpush1.bf16.msra.mxu1 %v4139_v2  ;;  %v4162_v2 = vld [vmem:[#allocation2 + $0x1a0] sm:$0xff] }
 0x8b5   : > { %3107 = vmatprep.mubr.bf16.mxu1 %v5206_v35  ;;  %2913 = vmatprep.subr.bf16.mxu0 %v4140_v23  ;;  %v4150_v35 = vld [vmem:[#allocation2 + $0xe0] sm:$0xff]  ;;  %v4163_v23 = vld [vmem:[#allocation2 + $0x1b0] sm:$0xff] }
 0x8b6   : > { %3077 = vmatprep.subr.bf16.mxu1 %v4141_v28  ;;  %v4164_v28 = vld [vmem:[#allocation2 + $0x1e8] sm:$0xff] }
 0x8b7   : > { %2914 = vmatpush1.bf16.msra.mxu0 %v4142_v1  ;;  %v4165_v1 = vld [vmem:[#allocation2 + $0x1f8] sm:$0xff] }
 0x8b8   : > { %3078 = vmatpush1.bf16.msra.mxu1 %v4143_v27  ;;  %2915 = vmatprep.subr.bf16.mxu0 %v4144_v57  ;;  %v4166_v27 = vld [vmem:[#allocation2 + $0x1e0] sm:$0xff]  ;;  %v4167_v57 = vld [vmem:[#allocation2 + $0x1f0] sm:$0xff] }
 0x8b9   : > { %3079 = vmatprep.subr.bf16.mxu1 %v4145_v29  ;;  %v4168_v29 = vld [vmem:[#allocation2 + $0x228] sm:$0xff] }
 0x8bb   : > { %2916 = vmatpush1.bf16.msra.mxu0 %v4146_v62  ;;  %v4169_v62 = vld [vmem:[#allocation2 + $0x238] sm:$0xff] }
 0x8bc   : > { %3080 = vmatpush1.bf16.msra.mxu1 %v4147_v16  ;;  %2917 = vmatprep.subr.bf16.mxu0 %v4148_v32  ;;  %v4170_v16 = vld [vmem:[#allocation2 + $0x220] sm:$0xff]  ;;  %v4171_v32 = vld [vmem:[#allocation2 + $0x230] sm:$0xff] }
 0x8bd   : > { %3081 = vmatprep.subr.bf16.mxu1 %v4149_v0  ;;  %v4172_v0 = vld [vmem:[#allocation2 + $0x268] sm:$0xff] }
 0x8bf   : > { %2918 = vmatpush1.bf16.msra.mxu0 %v4150_v35  ;;  %v4173_v35 = vld [vmem:[#allocation2 + $0x278] sm:$0xff] }
 0x8c0   : > { %3082 = vmatpush1.bf16.msra.mxu1 %v4151_v38  ;;  %2919 = vmatprep.subr.bf16.mxu0 %v4152_v47  ;;  %v4174_v38 = vld [vmem:[#allocation2 + $0x260] sm:$0xff]  ;;  %v4175_v47 = vld [vmem:[#allocation2 + $0x270] sm:$0xff] }
 0x8c1   : > { %3083 = vmatprep.subr.bf16.mxu1 %v4153_v6  ;;  %v4176_v6 = vld [vmem:[#allocation2 + $0x2a8] sm:$0xff] }
 0x8c3   : > { %2920 = vmatpush1.bf16.msra.mxu0 %v4154_v3  ;;  %v4177_v3 = vld [vmem:[#allocation2 + $0x2b8] sm:$0xff] }
 0x8c4   : > { %3084 = vmatpush1.bf16.msra.mxu1 %v4155_v46  ;;  %2921 = vmatprep.subr.bf16.mxu0 %v4156_v18  ;;  %v4178_v46 = vld [vmem:[#allocation2 + $0x2a0] sm:$0xff]  ;;  %v4179_v18 = vld [vmem:[#allocation2 + $0x2b0] sm:$0xff] }
 0x8c5   : > { %3085 = vmatprep.subr.bf16.mxu1 %v4157_v19  ;;  %v4180_v19 = vld [vmem:[#allocation2 + $0x2e8] sm:$0xff] }
 0x8c7   : > { %2922 = vmatpush1.bf16.msra.mxu0 %v4158_v56  ;;  %v4181_v56 = vld [vmem:[#allocation2 + $0x2f8] sm:$0xff] }
 0x8c8   : > { %3086 = vmatpush1.bf16.msra.mxu1 %v4159_v58  ;;  %2923 = vmatprep.subr.bf16.mxu0 %v4160_v63  ;;  %v4182_v58 = vld [vmem:[#allocation2 + $0x2e0] sm:$0xff]  ;;  %v4183_v63 = vld [vmem:[#allocation2 + $0x2f0] sm:$0xff] }
 0x8c9   : > { %3087 = vmatprep.subr.bf16.mxu1 %v4161_v21  ;;  %v4184_v21 = vld [vmem:[#allocation2 + $0x328] sm:$0xff] }
 0x8cb   : > { %2924 = vmatpush1.bf16.msra.mxu0 %v4162_v2  ;;  %v4185_v2 = vld [vmem:[#allocation2 + $0x338] sm:$0xff] }
 0x8cc   : > { %3088 = vmatpush1.bf16.msra.mxu1 %v4163_v23  ;;  %2925 = vmatprep.subr.bf16.mxu0 %v4164_v28  ;;  %v4186_v23 = vld [vmem:[#allocation2 + $0x320] sm:$0xff]  ;;  %v4187_v28 = vld [vmem:[#allocation2 + $0x330] sm:$0xff] }
 0x8cd   : > { %3089 = vmatprep.subr.bf16.mxu1 %v4165_v1  ;;  %v4188_v1 = vld [vmem:[#allocation2 + $0x368] sm:$0xff] }
 0x8cf   : > { %2926 = vmatpush1.bf16.msra.mxu0 %v4166_v27  ;;  %v4189_v27 = vld [vmem:[#allocation2 + $0x378] sm:$0xff] }
 0x8d0   : > { %3090 = vmatpush1.bf16.msra.mxu1 %v4167_v57  ;;  %2927 = vmatprep.subr.bf16.mxu0 %v4168_v29  ;;  %v4190_v57 = vld [vmem:[#allocation2 + $0x360] sm:$0xff]  ;;  %v4191_v29 = vld [vmem:[#allocation2 + $0x370] sm:$0xff] }
 0x8d1   : > { %3091 = vmatprep.subr.bf16.mxu1 %v4169_v62  ;;  %v4192_v62 = vld [vmem:[#allocation2 + $0x3a8] sm:$0xff] }
 0x8d3   : > { %2928 = vmatpush1.bf16.msra.mxu0 %v4170_v16  ;;  %v4193_v16 = vld [vmem:[#allocation2 + $0x3b8] sm:$0xff] }
 0x8d4   : > { %3092 = vmatpush1.bf16.msra.mxu1 %v4171_v32  ;;  %2929 = vmatprep.subr.bf16.mxu0 %v4172_v0  ;;  %v4194_v32 = vld [vmem:[#allocation2 + $0x3a0] sm:$0xff]  ;;  %v4195_v0 = vld [vmem:[#allocation2 + $0x3b0] sm:$0xff] }
 0x8d5   : > { %3093 = vmatprep.subr.bf16.mxu1 %v4173_v35  ;;  %v4196_v35 = vld [vmem:[#allocation2 + $0x3e8] sm:$0xff] }
 0x8d7   : > { %2930 = vmatpush1.bf16.msra.mxu0 %v4174_v38  ;;  %v4197_v38 = vld [vmem:[#allocation2 + $0x3f8] sm:$0xff] }
 0x8d8   : > { %3094 = vmatpush1.bf16.msra.mxu1 %v4175_v47  ;;  %2931 = vmatprep.subr.bf16.mxu0 %v4176_v6  ;;  %v4198_v47 = vld [vmem:[#allocation2 + $0x3e0] sm:$0xff]  ;;  %v4199_v6 = vld [vmem:[#allocation2 + $0x3f0] sm:$0xff] }
 0x8d9   : > { %3095 = vmatprep.subr.bf16.mxu1 %v4177_v3  ;;  %v4200_v3 = vld [vmem:[#allocation2 + $0x428] sm:$0xff] }
 0x8db   : > { %2932 = vmatpush1.bf16.msra.mxu0 %v4178_v46  ;;  %v4201_v46 = vld [vmem:[#allocation2 + $0x438] sm:$0xff] }
 0x8dc   : > { %3096 = vmatpush1.bf16.msra.mxu1 %v4179_v18  ;;  %2933 = vmatprep.subr.bf16.mxu0 %v4180_v19  ;;  %v4202_v18 = vld [vmem:[#allocation2 + $0x420] sm:$0xff]  ;;  %v4203_v19 = vld [vmem:[#allocation2 + $0x430] sm:$0xff] }
 0x8dd   : > { %3097 = vmatprep.subr.bf16.mxu1 %v4181_v56  ;;  %v4204_v56 = vld [vmem:[#allocation2 + $0x468] sm:$0xff] }
 0x8df   : > { %2934 = vmatpush1.bf16.msra.mxu0 %v4182_v58  ;;  %v4205_v58 = vld [vmem:[#allocation2 + $0x478] sm:$0xff] }
 0x8e0   : > { %3098 = vmatpush1.bf16.msra.mxu1 %v4183_v63  ;;  %2935 = vmatprep.subr.bf16.mxu0 %v4184_v21  ;;  %v4206_v63 = vld [vmem:[#allocation2 + $0x460] sm:$0xff]  ;;  %v4207_v21 = vld [vmem:[#allocation2 + $0x470] sm:$0xff] }
 0x8e1   : > { %3099 = vmatprep.subr.bf16.mxu1 %v4185_v2  ;;  %v4208_v2 = vld [vmem:[#allocation2 + $0x4a8] sm:$0xff] }
 0x8e3   : > { %2936 = vmatpush1.bf16.msra.mxu0 %v4186_v23  ;;  %v4209_v23 = vld [vmem:[#allocation2 + $0x4b8] sm:$0xff] }
 0x8e4   : > { %3100 = vmatpush1.bf16.msra.mxu1 %v4187_v28  ;;  %2937 = vmatprep.subr.bf16.mxu0 %v4188_v1  ;;  %v4211_v28 = vld [vmem:[#allocation2 + $0x4b0] sm:$0xff]  ;;  %v4212_v1 = vld [vmem:[#allocation2 + $0x4e8] sm:$0xff] }
 0x8e5   : > { %3101 = vmatprep.subr.bf16.mxu1 %v4189_v27  ;;  %v4213_v27 = vld [vmem:[#allocation2 + $0x4f8] sm:$0xff] }
 0x8e7   : > { %2938 = vmatpush1.bf16.msra.mxu0 %v4190_v57  ;;  %v4215_v57 = vld [vmem:[#allocation2 + $0x4f0] sm:$0xff] }
 0x8e8   : > { %3102 = vmatpush1.bf16.msra.mxu1 %v4191_v29  ;;  %2939 = vmatprep.subr.bf16.mxu0 %v4192_v62  ;;  %v4216_v29 = vld [vmem:[#allocation2 + $0x528] sm:$0xff]  ;;  %v4217_v62 = vld [vmem:[#allocation2 + $0x538] sm:$0xff] }
 0x8e9   : > { %3103 = vmatprep.subr.bf16.mxu1 %v4193_v16  ;;  %v4218_v16 = vld [vmem:[#allocation2 + $0x520] sm:$0xff] }
 0x8eb   : > { %2940 = vmatpush1.bf16.msra.mxu0 %v4194_v32  ;;  %v4219_v32 = vld [vmem:[#allocation2 + $0x530] sm:$0xff] }
 0x8ec   : > { %3104 = vmatpush1.bf16.msra.mxu1 %v4195_v0  ;;  %2941 = vmatprep.subr.bf16.mxu0 %v4196_v35  ;;  %v4220_v0 = vld [vmem:[#allocation2 + $0x568] sm:$0xff]  ;;  %v4221_v35 = vld [vmem:[#allocation2 + $0x578] sm:$0xff] }
 0x8ed   : > { %3105 = vmatprep.subr.bf16.mxu1 %v4197_v38  ;;  %v4222_v38 = vld [vmem:[#allocation2 + $0x560] sm:$0xff] }
 0x8ef   : > { %2942 = vmatpush1.bf16.msra.mxu0 %v4198_v47  ;;  %v4223_v47 = vld [vmem:[#allocation2 + $0x570] sm:$0xff] }
 0x8f0   : > { %3106 = vmatpush1.bf16.msra.mxu1 %v4199_v6  ;;  %2952 = vmatprep.subr.bf16.mxu0 %v4200_v3  ;;  %v4224_v6 = vld [vmem:[#allocation2 + $0x5a8] sm:$0xff]  ;;  %v4225_v3 = vld [vmem:[#allocation2 + $0x5b8] sm:$0xff] }
 0x8f1   : > { %3116 = vmatprep.subr.bf16.mxu1 %v4201_v46  ;;  %v4226_v46 = vld [vmem:[#allocation2 + $0x5a0] sm:$0xff] }
 0x8f2   : > { %2944 = vmatmul.mubr.bf16.vlgmr.msra.gmra.mrb[12].mxu0 %v5210_v31 }
 0x8f3   : > { %3108 = vmatmul.mubr.bf16.vlgmr.msra.gmra.mrb[12].mxu1 %v5210_v31  ;;  %2953 = vmatpush1.bf16.msra.mxu0 %v4202_v18  ;;  %v4210_v31 = vld [vmem:[#allocation2 + $0x4a0] sm:$0xff]  ;;  %v4227_v18 = vld [vmem:[#allocation2 + $0x5b0] sm:$0xff] }
 0x8f4   : > { %2984 = vmatprep.mubr.bf16.mxu0 %v5218_v5  ;;  %3117 = vmatpush1.bf16.msra.mxu1 %v4203_v19  ;;  %v4228_v19 = vld [vmem:[#allocation2 + $0x5e8] sm:$0xff] }
 0x8f5   : > { %3148 = vmatprep.mubr.bf16.mxu1 %v5218_v5  ;;  %2954 = vmatprep.subr.bf16.mxu0 %v4204_v56  ;;  %v4214_v5 = vld [vmem:[#allocation2 + $0x4e0] sm:$0xff]  ;;  %v4229_v56 = vld [vmem:[#allocation2 + $0x5f8] sm:$0xff] }
 0x8f6   : > { %3118 = vmatprep.subr.bf16.mxu1 %v4205_v58  ;;  %v4230_v58 = vld [vmem:[#allocation2 + $0x5e0] sm:$0xff] }
 0x8f7   : > { %2955 = vmatpush1.bf16.msra.mxu0 %v4206_v63  ;;  %v4231_v63 = vld [vmem:[#allocation2 + $0x5f0] sm:$0xff] }
 0x8f8   : > { %3119 = vmatpush1.bf16.msra.mxu1 %v4207_v21  ;;  %2956 = vmatprep.subr.bf16.mxu0 %v4208_v2  ;;  %v4232_v21 = vld [vmem:[#allocation2 + $0x628] sm:$0xff]  ;;  %v4233_v2 = vld [vmem:[#allocation2 + $0x638] sm:$0xff] }
 0x8f9   : > { %3120 = vmatprep.subr.bf16.mxu1 %v4209_v23  ;;  %v4234_v23 = vld [vmem:[#allocation2 + $0x620] sm:$0xff] }
 0x8fb   : > { %2957 = vmatpush1.bf16.msra.mxu0 %v4210_v31  ;;  %v4235_v31 = vld [vmem:[#allocation2 + $0x630] sm:$0xff] }
 0x8fc   : > { %3121 = vmatpush1.bf16.msra.mxu1 %v4211_v28  ;;  %2958 = vmatprep.subr.bf16.mxu0 %v4212_v1  ;;  %v4236_v28 = vld [vmem:[#allocation2 + $0x668] sm:$0xff]  ;;  %v4237_v1 = vld [vmem:[#allocation2 + $0x678] sm:$0xff] }
 0x8fd   : > { %3122 = vmatprep.subr.bf16.mxu1 %v4213_v27  ;;  %v4238_v27 = vld [vmem:[#allocation2 + $0x660] sm:$0xff] }
 0x8ff   : > { %2959 = vmatpush1.bf16.msra.mxu0 %v4214_v5  ;;  %v4239_v5 = vld [vmem:[#allocation2 + $0x670] sm:$0xff] }
 0x900   : > { %3123 = vmatpush1.bf16.msra.mxu1 %v4215_v57  ;;  %2960 = vmatprep.subr.bf16.mxu0 %v4216_v29  ;;  %v4240_v57 = vld [vmem:[#allocation2 + $0x6a8] sm:$0xff]  ;;  %v4241_v29 = vld [vmem:[#allocation2 + $0x6b8] sm:$0xff] }
 0x901   : > { %3124 = vmatprep.subr.bf16.mxu1 %v4217_v62  ;;  %v4242_v62 = vld [vmem:[#allocation2 + $0x6a0] sm:$0xff] }
 0x903   : > { %2961 = vmatpush1.bf16.msra.mxu0 %v4218_v16  ;;  %v4243_v16 = vld [vmem:[#allocation2 + $0x6b0] sm:$0xff] }
 0x904   : > { %3125 = vmatpush1.bf16.msra.mxu1 %v4219_v32  ;;  %2962 = vmatprep.subr.bf16.mxu0 %v4220_v0  ;;  %v4244_v32 = vld [vmem:[#allocation2 + $0x6e8] sm:$0xff]  ;;  %v4245_v0 = vld [vmem:[#allocation2 + $0x6f8] sm:$0xff] }
 0x905   : > { %3126 = vmatprep.subr.bf16.mxu1 %v4221_v35  ;;  %v4246_v35 = vld [vmem:[#allocation2 + $0x6e0] sm:$0xff] }
 0x907   : > { %2963 = vmatpush1.bf16.msra.mxu0 %v4222_v38  ;;  %v4247_v38 = vld [vmem:[#allocation2 + $0x6f0] sm:$0xff] }
 0x908   : > { %3127 = vmatpush1.bf16.msra.mxu1 %v4223_v47  ;;  %2964 = vmatprep.subr.bf16.mxu0 %v4224_v6  ;;  %v4248_v47 = vld [vmem:[#allocation2 + $0x728] sm:$0xff]  ;;  %v4249_v6 = vld [vmem:[#allocation2 + $0x738] sm:$0xff] }
 0x909   : > { %3128 = vmatprep.subr.bf16.mxu1 %v4225_v3  ;;  %v4250_v3 = vld [vmem:[#allocation2 + $0x720] sm:$0xff] }
 0x90b   : > { %2965 = vmatpush1.bf16.msra.mxu0 %v4226_v46  ;;  %v4251_v46 = vld [vmem:[#allocation2 + $0x730] sm:$0xff] }
 0x90c   : > { %3129 = vmatpush1.bf16.msra.mxu1 %v4227_v18  ;;  %2966 = vmatprep.subr.bf16.mxu0 %v4228_v19  ;;  %v4252_v18 = vld [vmem:[#allocation2 + $0x768] sm:$0xff]  ;;  %v4253_v19 = vld [vmem:[#allocation2 + $0x778] sm:$0xff] }
 0x90d   : > { %3130 = vmatprep.subr.bf16.mxu1 %v4229_v56  ;;  %v4254_v56 = vld [vmem:[#allocation2 + $0x760] sm:$0xff] }
 0x90f   : > { %2967 = vmatpush1.bf16.msra.mxu0 %v4230_v58  ;;  %v4255_v58 = vld [vmem:[#allocation2 + $0x770] sm:$0xff] }
 0x910   : > { %3131 = vmatpush1.bf16.msra.mxu1 %v4231_v63  ;;  %2968 = vmatprep.subr.bf16.mxu0 %v4232_v21  ;;  %v4256_v63 = vld [vmem:[#allocation2 + $0x7a8] sm:$0xff]  ;;  %v4257_v21 = vld [vmem:[#allocation2 + $0x7b8] sm:$0xff] }
 0x911   : > { %3132 = vmatprep.subr.bf16.mxu1 %v4233_v2  ;;  %v4258_v2 = vld [vmem:[#allocation2 + $0x7a0] sm:$0xff] }
 0x913   : > { %2969 = vmatpush1.bf16.msra.mxu0 %v4234_v23  ;;  %v4259_v23 = vld [vmem:[#allocation2 + $0x7b0] sm:$0xff] }
 0x914   : > { %3133 = vmatpush1.bf16.msra.mxu1 %v4235_v31  ;;  %2970 = vmatprep.subr.bf16.mxu0 %v4236_v28  ;;  %v4260_v31 = vld [vmem:[#allocation2 + $0x7e8] sm:$0xff]  ;;  %v4261_v28 = vld [vmem:[#allocation2 + $0x7f8] sm:$0xff] }
 0x915   : > { %3134 = vmatprep.subr.bf16.mxu1 %v4237_v1  ;;  %v4262_v1 = vld [vmem:[#allocation2 + $0x7e0] sm:$0xff] }
 0x917   : > { %2971 = vmatpush1.bf16.msra.mxu0 %v4238_v27  ;;  %v4263_v27 = vld [vmem:[#allocation2 + $0x7f0] sm:$0xff] }
 0x918   : > { %3135 = vmatpush1.bf16.msra.mxu1 %v4239_v5  ;;  %2972 = vmatprep.subr.bf16.mxu0 %v4240_v57  ;;  %v4264_v5 = vld [vmem:[#allocation2 + $0x828] sm:$0xff]  ;;  %v4265_v57 = vld [vmem:[#allocation2 + $0x838] sm:$0xff] }
 0x919   : > { %3136 = vmatprep.subr.bf16.mxu1 %v4241_v29  ;;  %v4266_v29 = vld [vmem:[#allocation2 + $0x820] sm:$0xff] }
 0x91b   : > { %2973 = vmatpush1.bf16.msra.mxu0 %v4242_v62  ;;  %v4267_v62 = vld [vmem:[#allocation2 + $0x830] sm:$0xff] }
 0x91c   : > { %3137 = vmatpush1.bf16.msra.mxu1 %v4243_v16  ;;  %2974 = vmatprep.subr.bf16.mxu0 %v4244_v32  ;;  %v4268_v16 = vld [vmem:[#allocation2 + $0x868] sm:$0xff]  ;;  %v4269_v32 = vld [vmem:[#allocation2 + $0x878] sm:$0xff] }
 0x91d   : > { %3138 = vmatprep.subr.bf16.mxu1 %v4245_v0  ;;  %v4270_v0 = vld [vmem:[#allocation2 + $0x860] sm:$0xff] }
 0x91f   : > { %2975 = vmatpush1.bf16.msra.mxu0 %v4246_v35  ;;  %v4271_v35 = vld [vmem:[#allocation2 + $0x870] sm:$0xff] }
 0x920   : > { %3139 = vmatpush1.bf16.msra.mxu1 %v4247_v38  ;;  %2976 = vmatprep.subr.bf16.mxu0 %v4248_v47  ;;  %v4272_v38 = vld [vmem:[#allocation2 + $0x8a8] sm:$0xff]  ;;  %v4273_v47 = vld [vmem:[#allocation2 + $0x8b8] sm:$0xff] }
 0x921   : > { %3140 = vmatprep.subr.bf16.mxu1 %v4249_v6  ;;  %v4275_v6 = vld [vmem:[#allocation2 + $0x8b0] sm:$0xff] }
 0x923   : > { %2977 = vmatpush1.bf16.msra.mxu0 %v4250_v3  ;;  %v4276_v3 = vld [vmem:[#allocation2 + $0x8e8] sm:$0xff] }
 0x924   : > { %3141 = vmatpush1.bf16.msra.mxu1 %v4251_v46  ;;  %2978 = vmatprep.subr.bf16.mxu0 %v4252_v18  ;;  %v4277_v46 = vld [vmem:[#allocation2 + $0x8f8] sm:$0xff]  ;;  %v4279_v18 = vld [vmem:[#allocation2 + $0x8f0] sm:$0xff] }
 0x925   : > { %3142 = vmatprep.subr.bf16.mxu1 %v4253_v19  ;;  %v4280_v19 = vld [vmem:[#allocation2 + $0x928] sm:$0xff] }
 0x927   : > { %2979 = vmatpush1.bf16.msra.mxu0 %v4254_v56  ;;  %v4281_v56 = vld [vmem:[#allocation2 + $0x938] sm:$0xff] }
 0x928   : > { %3143 = vmatpush1.bf16.msra.mxu1 %v4255_v58  ;;  %2980 = vmatprep.subr.bf16.mxu0 %v4256_v63  ;;  %v4282_v58 = vld [vmem:[#allocation2 + $0x920] sm:$0xff]  ;;  %v4283_v63 = vld [vmem:[#allocation2 + $0x930] sm:$0xff] }
 0x929   : > { %3144 = vmatprep.subr.bf16.mxu1 %v4257_v21  ;;  %v4284_v21 = vld [vmem:[#allocation2 + $0x968] sm:$0xff] }
 0x92b   : > { %2981 = vmatpush1.bf16.msra.mxu0 %v4258_v2  ;;  %v4285_v2 = vld [vmem:[#allocation2 + $0x978] sm:$0xff] }
 0x92c   : > { %3145 = vmatpush1.bf16.msra.mxu1 %v4259_v23  ;;  %2982 = vmatprep.subr.bf16.mxu0 %v4260_v31  ;;  %v4286_v23 = vld [vmem:[#allocation2 + $0x960] sm:$0xff]  ;;  %v4287_v31 = vld [vmem:[#allocation2 + $0x970] sm:$0xff] }
 0x92d   : > { %3146 = vmatprep.subr.bf16.mxu1 %v4261_v28  ;;  %v4288_v28 = vld [vmem:[#allocation2 + $0x9a8] sm:$0xff] }
 0x92f   : > { %2983 = vmatpush1.bf16.msra.mxu0 %v4262_v1  ;;  %v4289_v1 = vld [vmem:[#allocation2 + $0x9b8] sm:$0xff] }
 0x930   : > { %3147 = vmatpush1.bf16.msra.mxu1 %v4263_v27  ;;  %2993 = vmatprep.subr.bf16.mxu0 %v4264_v5  ;;  %v4290_v27 = vld [vmem:[#allocation2 + $0x9a0] sm:$0xff]  ;;  %v4291_v5 = vld [vmem:[#allocation2 + $0x9b0] sm:$0xff] }
 0x931   : > { %3157 = vmatprep.subr.bf16.mxu1 %v4265_v57  ;;  %v4292_v57 = vld [vmem:[#allocation2 + $0x9e8] sm:$0xff] }
 0x932   : > { %2985 = vmatmul.mubr.bf16.vlgmr.msra.gmra.mrb[12].mxu0 %v5234_v44 }
 0x933   : > { %3149 = vmatmul.mubr.bf16.vlgmr.msra.gmra.mrb[12].mxu1 %v5234_v44  ;;  %2994 = vmatpush1.bf16.msra.mxu0 %v4266_v29  ;;  %v4274_v44 = vld [vmem:[#allocation2 + $0x8a0] sm:$0xff]  ;;  %v4293_v29 = vld [vmem:[#allocation2 + $0x9f8] sm:$0xff] }
 0x934   : > { %3025 = vmatprep.mubr.bf16.mxu0 %v5238_v33  ;;  %3158 = vmatpush1.bf16.msra.mxu1 %v4267_v62  ;;  %v4294_v62 = vld [vmem:[#allocation2 + $0x9e0] sm:$0xff] }
 0x935   : > { %3189 = vmatprep.mubr.bf16.mxu1 %v5238_v33  ;;  %2995 = vmatprep.subr.bf16.mxu0 %v4268_v16  ;;  %v4278_v33 = vld [vmem:[#allocation2 + $0x8e0] sm:$0xff]  ;;  %v4295_v16 = vld [vmem:[#allocation2 + $0x9f0] sm:$0xff] }
 0x936   : > { %3159 = vmatprep.subr.bf16.mxu1 %v4269_v32  ;;  %v4296_v32 = vld [vmem:[#allocation2 + $0xa28] sm:$0xff] }
 0x937   : > { %2996 = vmatpush1.bf16.msra.mxu0 %v4270_v0  ;;  %v4297_v0 = vld [vmem:[#allocation2 + $0xa38] sm:$0xff] }
 0x938   : > { %3160 = vmatpush1.bf16.msra.mxu1 %v4271_v35  ;;  %2997 = vmatprep.subr.bf16.mxu0 %v4272_v38  ;;  %v4298_v35 = vld [vmem:[#allocation2 + $0xa20] sm:$0xff]  ;;  %v4299_v38 = vld [vmem:[#allocation2 + $0xa30] sm:$0xff] }
 0x939   : > { %3161 = vmatprep.subr.bf16.mxu1 %v4273_v47  ;;  %v4300_v47 = vld [vmem:[#allocation2 + $0xa68] sm:$0xff] }
 0x93b   : > { %2998 = vmatpush1.bf16.msra.mxu0 %v4274_v44  ;;  %v4301_v44 = vld [vmem:[#allocation2 + $0xa78] sm:$0xff] }
 0x93c   : > { %3162 = vmatpush1.bf16.msra.mxu1 %v4275_v6  ;;  %2999 = vmatprep.subr.bf16.mxu0 %v4276_v3  ;;  %v4302_v6 = vld [vmem:[#allocation2 + $0xa60] sm:$0xff]  ;;  %v4303_v3 = vld [vmem:[#allocation2 + $0xa70] sm:$0xff] }
 0x93d   : > { %3163 = vmatprep.subr.bf16.mxu1 %v4277_v46  ;;  %v4304_v46 = vld [vmem:[#allocation2 + $0xaa8] sm:$0xff] }
 0x93f   : > { %3000 = vmatpush1.bf16.msra.mxu0 %v4278_v33  ;;  %v4305_v33 = vld [vmem:[#allocation2 + $0xab8] sm:$0xff] }
 0x940   : > { %3164 = vmatpush1.bf16.msra.mxu1 %v4279_v18  ;;  %3001 = vmatprep.subr.bf16.mxu0 %v4280_v19  ;;  %v4306_v18 = vld [vmem:[#allocation2 + $0xaa0] sm:$0xff]  ;;  %v4307_v19 = vld [vmem:[#allocation2 + $0xab0] sm:$0xff] }
 0x941   : > { %3165 = vmatprep.subr.bf16.mxu1 %v4281_v56  ;;  %v4308_v56 = vld [vmem:[#allocation2 + $0xae8] sm:$0xff] }
 0x943   : > { %3002 = vmatpush1.bf16.msra.mxu0 %v4282_v58  ;;  %v4309_v58 = vld [vmem:[#allocation2 + $0xaf8] sm:$0xff] }
 0x944   : > { %3166 = vmatpush1.bf16.msra.mxu1 %v4283_v63  ;;  %3003 = vmatprep.subr.bf16.mxu0 %v4284_v21  ;;  %v4310_v63 = vld [vmem:[#allocation2 + $0xae0] sm:$0xff]  ;;  %v4311_v21 = vld [vmem:[#allocation2 + $0xaf0] sm:$0xff] }
 0x945   : > { %3167 = vmatprep.subr.bf16.mxu1 %v4285_v2  ;;  %v4312_v2 = vld [vmem:[#allocation2 + $0xb28] sm:$0xff] }
 0x947   : > { %3004 = vmatpush1.bf16.msra.mxu0 %v4286_v23  ;;  %v4313_v23 = vld [vmem:[#allocation2 + $0xb38] sm:$0xff] }
 0x948   : > { %3168 = vmatpush1.bf16.msra.mxu1 %v4287_v31  ;;  %3005 = vmatprep.subr.bf16.mxu0 %v4288_v28  ;;  %v4314_v31 = vld [vmem:[#allocation2 + $0xb20] sm:$0xff]  ;;  %v4315_v28 = vld [vmem:[#allocation2 + $0xb30] sm:$0xff] }
 0x949   : > { %3169 = vmatprep.subr.bf16.mxu1 %v4289_v1  ;;  %v4316_v1 = vld [vmem:[#allocation2 + $0xb68] sm:$0xff] }
 0x94b   : > { %3006 = vmatpush1.bf16.msra.mxu0 %v4290_v27  ;;  %v4317_v27 = vld [vmem:[#allocation2 + $0xb78] sm:$0xff] }
 0x94c   : > { %3170 = vmatpush1.bf16.msra.mxu1 %v4291_v5  ;;  %3007 = vmatprep.subr.bf16.mxu0 %v4292_v57  ;;  %v4318_v5 = vld [vmem:[#allocation2 + $0xb60] sm:$0xff]  ;;  %v4319_v57 = vld [vmem:[#allocation2 + $0xb70] sm:$0xff] }
 0x94d   : > { %3171 = vmatprep.subr.bf16.mxu1 %v4293_v29  ;;  %v4320_v29 = vld [vmem:[#allocation2 + $0xba8] sm:$0xff] }
 0x94f   : > { %3008 = vmatpush1.bf16.msra.mxu0 %v4294_v62  ;;  %v4321_v62 = vld [vmem:[#allocation2 + $0xbb8] sm:$0xff] }
 0x950   : > { %3172 = vmatpush1.bf16.msra.mxu1 %v4295_v16  ;;  %3009 = vmatprep.subr.bf16.mxu0 %v4296_v32  ;;  %v4322_v16 = vld [vmem:[#allocation2 + $0xba0] sm:$0xff]  ;;  %v4323_v32 = vld [vmem:[#allocation2 + $0xbb0] sm:$0xff] }
 0x951   : > { %3173 = vmatprep.subr.bf16.mxu1 %v4297_v0  ;;  %v4324_v0 = vld [vmem:[#allocation2 + $0xbe8] sm:$0xff] }
 0x953   : > { %3010 = vmatpush1.bf16.msra.mxu0 %v4298_v35  ;;  %v4325_v35 = vld [vmem:[#allocation2 + $0xbf8] sm:$0xff] }
 0x954   : > { %3174 = vmatpush1.bf16.msra.mxu1 %v4299_v38  ;;  %3011 = vmatprep.subr.bf16.mxu0 %v4300_v47  ;;  %v4326_v38 = vld [vmem:[#allocation2 + $0xbe0] sm:$0xff]  ;;  %v4327_v47 = vld [vmem:[#allocation2 + $0xbf0] sm:$0xff] }
 0x955   : > { %3175 = vmatprep.subr.bf16.mxu1 %v4301_v44  ;;  %v4328_v44 = vld [vmem:[#allocation2 + $0xc28] sm:$0xff] }
 0x957   : > { %3012 = vmatpush1.bf16.msra.mxu0 %v4302_v6  ;;  %v4329_v6 = vld [vmem:[#allocation2 + $0xc38] sm:$0xff] }
 0x958   : > { %3176 = vmatpush1.bf16.msra.mxu1 %v4303_v3  ;;  %3013 = vmatprep.subr.bf16.mxu0 %v4304_v46  ;;  %v4330_v3 = vld [vmem:[#allocation2 + $0xc20] sm:$0xff]  ;;  %v4331_v46 = vld [vmem:[#allocation2 + $0xc30] sm:$0xff] }
 0x959   : > { %3177 = vmatprep.subr.bf16.mxu1 %v4305_v33  ;;  %v4332_v33 = vld [vmem:[#allocation2 + $0xc68] sm:$0xff] }
 0x95b   : > { %3014 = vmatpush1.bf16.msra.mxu0 %v4306_v18  ;;  %v4333_v18 = vld [vmem:[#allocation2 + $0xc78] sm:$0xff] }
 0x95c   : > { %3178 = vmatpush1.bf16.msra.mxu1 %v4307_v19  ;;  %3015 = vmatprep.subr.bf16.mxu0 %v4308_v56  ;;  %v4334_v19 = vld [vmem:[#allocation2 + $0xc60] sm:$0xff]  ;;  %v4335_v56 = vld [vmem:[#allocation2 + $0xc70] sm:$0xff] }
 0x95d   : > { %3179 = vmatprep.subr.bf16.mxu1 %v4309_v58  ;;  %v4336_v58 = vld [vmem:[#allocation2 + $0xca8] sm:$0xff] }
 0x95f   : > { %3016 = vmatpush1.bf16.msra.mxu0 %v4310_v63  ;;  %v4337_v63 = vld [vmem:[#allocation2 + $0xcb8] sm:$0xff] }
 0x960   : > { %3180 = vmatpush1.bf16.msra.mxu1 %v4311_v21  ;;  %3017 = vmatprep.subr.bf16.mxu0 %v4312_v2  ;;  %v4339_v21 = vld [vmem:[#allocation2 + $0xcb0] sm:$0xff]  ;;  %v4340_v2 = vld [vmem:[#allocation2 + $0xce8] sm:$0xff] }
 0x961   : > { %3181 = vmatprep.subr.bf16.mxu1 %v4313_v23  ;;  %v4341_v23 = vld [vmem:[#allocation2 + $0xcf8] sm:$0xff] }
 0x963   : > { %3018 = vmatpush1.bf16.msra.mxu0 %v4314_v31  ;;  %v4343_v31 = vld [vmem:[#allocation2 + $0xcf0] sm:$0xff] }
 0x964   : > { %3182 = vmatpush1.bf16.msra.mxu1 %v4315_v28  ;;  %3019 = vmatprep.subr.bf16.mxu0 %v4316_v1  ;;  %v4344_v28 = vld [vmem:[#allocation2 + $0xd28] sm:$0xff]  ;;  %v4345_v1 = vld [vmem:[#allocation2 + $0xd38] sm:$0xff] }
 0x965   : > { %3183 = vmatprep.subr.bf16.mxu1 %v4317_v27  ;;  %v4346_v27 = vld [vmem:[#allocation2 + $0xd20] sm:$0xff] }
 0x967   : > { %3020 = vmatpush1.bf16.msra.mxu0 %v4318_v5  ;;  %v4347_v5 = vld [vmem:[#allocation2 + $0xd30] sm:$0xff] }
 0x968   : > { %3184 = vmatpush1.bf16.msra.mxu1 %v4319_v57  ;;  %3021 = vmatprep.subr.bf16.mxu0 %v4320_v29  ;;  %v4348_v57 = vld [vmem:[#allocation2 + $0xd68] sm:$0xff] }
 0x969   : > { %3185 = vmatprep.subr.bf16.mxu1 %v4321_v62  ;;  %v4349_v62 = vld [vmem:[#allocation2 + $0xd78] sm:$0xff] }
 0x96b   : > { %3022 = vmatpush1.bf16.msra.mxu0 %v4322_v16 }
 0x96c   : > { %3186 = vmatpush1.bf16.msra.mxu1 %v4323_v32  ;;  %3023 = vmatprep.subr.bf16.mxu0 %v4324_v0 }
 0x96d   : > { %3187 = vmatprep.subr.bf16.mxu1 %v4325_v35 }
 0x96f   : > { %3024 = vmatpush1.bf16.msra.mxu0 %v4326_v38 }
 0x970   : > { %3188 = vmatpush1.bf16.msra.mxu1 %v4327_v47  ;;  %3034 = vmatprep.subr.bf16.mxu0 %v4328_v44  ;;  %v4350_v44 = vld [vmem:[#allocation2 + $0xd60] sm:$0xff] }
 0x971   : > { %3198 = vmatprep.subr.bf16.mxu1 %v4329_v6 }
 0x972   : > { %3026 = vmatmul.mubr.bf16.vlgmr.msra.gmra.mrb[12].mxu0 %v5256_v22 }
 0x973   : > { %3190 = vmatmul.mubr.bf16.vlgmr.msra.gmra.mrb[12].mxu1 %v5256_v22  ;;  %3035 = vmatpush1.bf16.msra.mxu0 %v4330_v3  ;;  %v4338_v22 = vld [vmem:[#allocation2 + $0xca0] sm:$0xff]  ;;  %v4351_v3 = vld [vmem:[#allocation2 + $0xd70] sm:$0xff] }
 0x974   : > { %3066 = vmatprep.mubr.bf16.mxu0 %v5261_v25  ;;  %3199 = vmatpush1.bf16.msra.mxu1 %v4331_v46 }
 0x975   : > { %3230 = vmatprep.mubr.bf16.mxu1 %v5261_v25  ;;  %3036 = vmatprep.subr.bf16.mxu0 %v4332_v33  ;;  %v4342_v25 = vld [vmem:[#allocation2 + $0xce0] sm:$0xff]  ;;  %v4352_v33 = vld [vmem:[#allocation2 + $0xda8] sm:$0xff] }
 0x976   : > { %3200 = vmatprep.subr.bf16.mxu1 %v4333_v18 }
 0x977   : > { %3037 = vmatpush1.bf16.msra.mxu0 %v4334_v19 }
 0x978   : > { %3201 = vmatpush1.bf16.msra.mxu1 %v4335_v56  ;;  %3038 = vmatprep.subr.bf16.mxu0 %v4336_v58  ;;  %v4353_v58 = vld [vmem:[#allocation2 + $0xdb8] sm:$0xff] }
 0x979   : > { %3202 = vmatprep.subr.bf16.mxu1 %v4337_v63 }
 0x97b   : > { %3039 = vmatpush1.bf16.msra.mxu0 %v4338_v22 }
 0x97c   : > { %3203 = vmatpush1.bf16.msra.mxu1 %v4339_v21  ;;  %3040 = vmatprep.subr.bf16.mxu0 %v4340_v2  ;;  %v4354_v21 = vld [vmem:[#allocation2 + $0xda0] sm:$0xff]  ;;  %v4355_v2 = vld [vmem:[#allocation2 + $0xdb0] sm:$0xff] }
 0x97d   : > { %3204 = vmatprep.subr.bf16.mxu1 %v4341_v23  ;;  %v4356_v23 = vld [vmem:[#allocation2 + $0xde8] sm:$0xff] }
 0x97f   : > { %3041 = vmatpush1.bf16.msra.mxu0 %v4342_v25 }
 0x980   : > { %3205 = vmatpush1.bf16.msra.mxu1 %v4343_v31  ;;  %3042 = vmatprep.subr.bf16.mxu0 %v4344_v28  ;;  %v4357_v31 = vld [vmem:[#allocation2 + $0xdf8] sm:$0xff]  ;;  %v4358_v28 = vld [vmem:[#allocation2 + $0xde0] sm:$0xff] }
 0x981   : > { %3206 = vmatprep.subr.bf16.mxu1 %v4345_v1  ;;  %v4359_v1 = vld [vmem:[#allocation2 + $0xdf0] sm:$0xff] }
 0x983   : > { %3043 = vmatpush1.bf16.msra.mxu0 %v4346_v27  ;;  %v4360_v27 = vld [vmem:[#allocation2 + $0xe28] sm:$0xff] }
 0x984   : > { %3207 = vmatpush1.bf16.msra.mxu1 %v4347_v5  ;;  %3044 = vmatprep.subr.bf16.mxu0 %v4348_v57  ;;  %v4361_v5 = vld [vmem:[#allocation2 + $0xe38] sm:$0xff]  ;;  %v4362_v57 = vld [vmem:[#allocation2 + $0xe20] sm:$0xff] }
 0x985   : > { %v5291_v29 = vpop.f32.mrb[8].mxu0  ;;  %3208 = vmatprep.subr.bf16.mxu1 %v4349_v62  ;;  %v4363_v62 = vld [vmem:[#allocation2 + $0xe30] sm:$0xff] }
 0x986   : > { %v3239_v16 = vmul.f32 %v5291_v29, %v5199_v37  ;;  %v5295_v32 = vpop.f32.mrb[8].mxu1  ;;  %v5297_v0 = vpop.f32.mrb[9].mxu0 }
 0x987   : > { %v3240_v35 = vmul.f32 %v5297_v0, %v5196_v34  ;;  %v5301_v38 = vpop.f32.mrb[9].mxu1  ;;  %v2744_v47 = vpop.f32.mrb[10].mxu0  ;;  %3045 = vmatpush1.bf16.msra.mxu0 %v4350_v44  ;;  %v3241_v18 = vmul.f32 %v5295_v32, %v5227_v40  ;;  %v4367_v44 = vld [vmem:[#allocation2 + $0xe70] sm:$0xff] }
 0x988   : > { %v2908_v6 = vpop.f32.mrb[10].mxu1  ;;  %3209 = vmatpush1.bf16.msra.mxu1 %v4351_v3  ;;  %v2745_v46 = vpop.f32.mrb[11].mxu0  ;;  %3046 = vmatprep.subr.bf16.mxu0 %v4352_v33  ;;  %v3242_v63 = vmul.f32 %v5301_v38, %v5202_v4  ;;  %v4366_v47 = vld [vmem:[#allocation2 + $0xe60] sm:$0xff]  ;;  %v4369_v3 = vld [vmem:[#allocation2 + $0xeb8] sm:$0xff]  ;;  %v4371_v33 = vld [vmem:[#allocation2 + $0xeb0] sm:$0xff] }
 0x989   : > { %v3247_v19 = vadd.f32 %v3240_v35, %v3239_v16  ;;  %v2909_v56 = vpop.f32.mrb[11].mxu1  ;;  %3210 = vmatprep.subr.bf16.mxu1 %v4353_v58  ;;  %v4364_v16 = vld [vmem:[#allocation2 + $0xe68] sm:$0xff]  ;;  %v4365_v35 = vld [vmem:[#allocation2 + $0xe78] sm:$0xff]  ;;  %v4370_v46 = vld [vmem:[#allocation2 + $0xea0] sm:$0xff] }
 0x98a   : > { %v4368_v6 = vld [vmem:[#allocation2 + $0xea8] sm:$0xff]  ;;  %v4374_v56 = vld [vmem:[#allocation2 + $0xee0] sm:$0xff]  ;;  %v4375_v58 = vld [vmem:[#allocation2 + $0xef0] sm:$0xff] }
 0x98b   : > { %v3248_v22 = vadd.f32 %v3247_v19, %v3241_v18  ;;  %3047 = vmatpush1.bf16.msra.mxu0 %v4354_v21  ;;  %v4372_v18 = vld [vmem:[#allocation2 + $0xee8] sm:$0xff]  ;;  %v4373_v19 = vld [vmem:[#allocation2 + $0xef8] sm:$0xff]  ;;  %v4378_v21 = vld [vmem:[#allocation2 + $0xf20] sm:$0xff] }
 0x98c   : > { %3211 = vmatpush1.bf16.msra.mxu1 %v4355_v2  ;;  %3048 = vmatprep.subr.bf16.mxu0 %v4356_v23  ;;  %v4379_v2 = vld [vmem:[#allocation2 + $0xf30] sm:$0xff]  ;;  %v4380_v23 = vld [vmem:[#allocation2 + $0xf68] sm:$0xff] }
 0x98d   : > { %v5307_v25 = vadd.f32 %v3248_v22, %v3242_v63  ;;  %3212 = vmatprep.subr.bf16.mxu1 %v4357_v31  ;;  %v4376_v63 = vld [vmem:[#allocation2 + $0xf28] sm:$0xff]  ;;  %v4377_v22 = vld [vmem:[#allocation2 + $0xf38] sm:$0xff] }
 0x98e   : > { %v4381_v31 = vld [vmem:[#allocation2 + $0xf78] sm:$0xff] }
 0x98f   : > { %3049 = vmatpush1.bf16.msra.mxu0 %v4358_v28  ;;  %v4382_v28 = vld [vmem:[#allocation2 + $0xf60] sm:$0xff] }
 0x990   : > { %3213 = vmatpush1.bf16.msra.mxu1 %v4359_v1  ;;  %3050 = vmatprep.subr.bf16.mxu0 %v4360_v27  ;;  %v4383_v1 = vld [vmem:[#allocation2 + $0xf70] sm:$0xff]  ;;  %v4384_v27 = vld [vmem:[#allocation2 + $0xfa8] sm:$0xff] }
 0x991   : > { %3214 = vmatprep.subr.bf16.mxu1 %v4361_v5  ;;  %v4385_v5 = vld [vmem:[#allocation2 + $0xfb8] sm:$0xff] }
 0x993   : > { %3051 = vmatpush1.bf16.msra.mxu0 %v4362_v57  ;;  %v4386_v57 = vld [vmem:[#allocation2 + $0xfa0] sm:$0xff] }
 0x994   : > { %3215 = vmatpush1.bf16.msra.mxu1 %v4363_v62  ;;  %3052 = vmatprep.subr.bf16.mxu0 %v4364_v16  ;;  %v4387_v62 = vld [vmem:[#allocation2 + $0xfb0] sm:$0xff]  ;;  %v4388_v16 = vld [vmem:[#allocation2 + $0xfe8] sm:$0xff] }
 0x995   : > { %3216 = vmatprep.subr.bf16.mxu1 %v4365_v35  ;;  %v4389_v35 = vld [vmem:[#allocation2 + $0xff8] sm:$0xff] }
 0x997   : > { %3053 = vmatpush1.bf16.msra.mxu0 %v4366_v47  ;;  %v4390_v47 = vld [vmem:[#allocation2 + $0xfe0] sm:$0xff] }
 0x998   : > { %3217 = vmatpush1.bf16.msra.mxu1 %v4367_v44  ;;  %3054 = vmatprep.subr.bf16.mxu0 %v4368_v6  ;;  %v4391_v44 = vld [vmem:[#allocation2 + $0xff0] sm:$0xff] }
 0x999   : > { %3218 = vmatprep.subr.bf16.mxu1 %v4369_v3 }
 0x99b   : > { %3055 = vmatpush1.bf16.msra.mxu0 %v4370_v46 }
 0x99c   : > { %3219 = vmatpush1.bf16.msra.mxu1 %v4371_v33  ;;  %3056 = vmatprep.subr.bf16.mxu0 %v4372_v18 }
 0x99d   : > { %3220 = vmatprep.subr.bf16.mxu1 %v4373_v19 }
 0x99f   : > { %3057 = vmatpush1.bf16.msra.mxu0 %v4374_v56 }
 0x9a0   : > { %3221 = vmatpush1.bf16.msra.mxu1 %v4375_v58  ;;  %3058 = vmatprep.subr.bf16.mxu0 %v4376_v63 }
 0x9a1   : > { %3222 = vmatprep.subr.bf16.mxu1 %v4377_v22 }
 0x9a3   : > { %3059 = vmatpush1.bf16.msra.mxu0 %v4378_v21 }
 0x9a4   : > { %3223 = vmatpush1.bf16.msra.mxu1 %v4379_v2  ;;  %3060 = vmatprep.subr.bf16.mxu0 %v4380_v23 }
 0x9a5   : > { %3224 = vmatprep.subr.bf16.mxu1 %v4381_v31 }
 0x9a7   : > { %3061 = vmatpush1.bf16.msra.mxu0 %v4382_v28 }
 0x9a8   : > { %3225 = vmatpush1.bf16.msra.mxu1 %v4383_v1  ;;  %3062 = vmatprep.subr.bf16.mxu0 %v4384_v27  ;;  %v2506_v27 = vmul.f32 %v4564_v54, %v5128_v7  ;;  %v2513_v54 = vmul.f32 %v4536_v49, %v5128_v7 }
 0x9a9   : > { %3226 = vmatprep.subr.bf16.mxu1 %v4385_v5  ;;  %v2508_v5 = vmul.f32 %v4556_v36, %v5128_v7 }
 0x9aa   : > { %v2521_v49 = vadd.f32 %v4600_v15, %v2513_v54 }
 0x9ab   : > { %3063 = vmatpush1.bf16.msra.mxu0 %v4386_v57  ;;  %v2509_v57 = vmul.f32 %v4552_v52, %v5128_v7  ;;  %v2516_v52 = vadd.f32 %v4620_v10, %v2508_v5 }
 0x9ac   : > { %3227 = vmatpush1.bf16.msra.mxu1 %v4387_v62  ;;  %3064 = vmatprep.subr.bf16.mxu0 %v4388_v16  ;;  %v2510_v62 = vmul.f32 %v4548_v39, %v5128_v7  ;;  %v2511_v16 = vmul.f32 %v4544_v51, %v5128_v7 }
 0x9ad   : > { %3228 = vmatprep.subr.bf16.mxu1 %v4389_v35  ;;  %v2512_v35 = vmul.f32 %v4540_v50, %v5128_v7  ;;  %v2517_v39 = vadd.f32 %v4616_v11, %v2509_v57 }
 0x9ae   : > { %v2519_v51 = vadd.f32 %v4608_v13, %v2511_v16 }
 0x9af   : > { %3065 = vmatpush1.bf16.msra.mxu0 %v4390_v47  ;;  %v2520_v50 = vadd.f32 %v4604_v14, %v2512_v35 }
 0x9b0   : > { %3229 = vmatpush1.bf16.msra.mxu1 %v4391_v44 }
 0x9b2   : > { %3067 = vmatmul.mubr.bf16.vlgmr.msra.gmra.mrb[12].mxu0 %v5273_v30 }
 0x9b3   : > { %3231 = vmatmul.mubr.bf16.vlgmr.msra.gmra.mrb[12].mxu1 %v5273_v30 }
 0xa85   : > { %v3068_v6 = vpop.f32.mrb[12].mxu0 }
 0xa86   : > { %v3243_v3 = vmul.f32 %v3068_v6, %v5249_v41  ;;  %v5312_v46 = vpop.f32.mrb[12].mxu1  ;;  %v3070_v33 = vpop.f32.mrb[13].mxu0 }
 0xa87   : > { %v3244_v18 = vmul.f32 %v3070_v33, %v5230_v42  ;;  %v5315_v19 = vpop.f32.mrb[13].mxu1  ;;  %v3072_v56 = vpop.f32.mrb[14].mxu0  ;;  %v3245_v2 = vmul.f32 %v5312_v46, %v5269_v60 }
 0xa88   : > { %v3250_v58 = vadd.f32 %v5307_v25, %v3243_v3  ;;  %v3236_v63 = vpop.f32.mrb[14].mxu1  ;;  %v3073_v22 = vpop.f32.mrb[15].mxu0  ;;  %v3246_v23 = vmul.f32 %v5315_v19, %v5252_v24  ;;  %v2507_v25 = vmul.f32 %v4560_v53, %v5128_v7  ;;  %v2514_v53 = vadd.f32 %v4628_v8, %v2506_v27 }
 0xa89   : > { %v3237_v21 = vpop.f32.mrb[15].mxu1  ;;  %v2518_v3 = vadd.f32 %v4612_v12, %v2510_v62 }
 0xa8a   : > { %v3251_v30 = vadd.f32 %v3250_v58, %v3244_v18  ;;  %v2515_v36 = vadd.f32 %v4624_v9, %v2507_v25 }
 0xa8c   : > { %v3252_v31 = vadd.f32 %v3251_v30, %v3245_v2 }
 0xa8e   : > { %v3253_v28 = vadd.f32 %v3252_v31, %v3246_v23 }
 0xa90   : > { %3254 = vadd.xlane.f32.xlu1 %v3253_v28 }
 0xb1d   : > { %v3255_v1 = vpop.xlane.xlu1 %3254 }
 0xb1e   : > { %3876 = vrcp.f32 %v3255_v1  ;;  %vm3256_vm2 = vcmp.gt.f32.partialorder %v3255_v1, 0.0 }
 0xb1f   : > { %3878 = vrcp.f32 %v5184_v61 }
 0xb28   : > { %v3877_v47 = vpop.eup %3876 }
 0xb29   : > { %v3258_v44 = vmul.f32 %v3877_v47, %v5184_v61 }
 0xb2b   : > { %v3259_v7 = vsel %vm3256_vm2, %v3258_v44, 0.0 }
 0xb2c   : > { %v3260_v8 = vmul.f32 %v3259_v7, %v5199_v37  ;;  %v3261_v9 = vmul.f32 %v3259_v7, %v5196_v34  ;;  %v3262_v18 = vmul.f32 %v3259_v7, %v5227_v40  ;;  %v3263_v10 = vmul.f32 %v3259_v7, %v5202_v4 }
 0xb2d   : > { %v3264_v11 = vmul.f32 %v3259_v7, %v5249_v41  ;;  %v3265_v12 = vmul.f32 %v3259_v7, %v5230_v42  ;;  %v3266_v56 = vmul.f32 %v3259_v7, %v5269_v60  ;;  %v3267_v13 = vmul.f32 %v3259_v7, %v5252_v24 }
 0xb2e   : > { %v5355_v8 = vadd.f32 %v3260_v8, %v2514_v53   ;;  %v5357_v9 = vadd.f32 %v3261_v9, %v2515_v36   ;;  %v5359_v14 = vadd.f32 %v3262_v18, %v2516_v52   ;;  %v5361_v15 = vadd.f32 %v3263_v10, %v2517_v39  }
 0xb2f   : > { %v5363_v2 = vadd.f32 %v3264_v11, %v2518_v3   ;;  %v5365_v23 = vadd.f32 %v3265_v12, %v2519_v51   ;;  %v3276_v28 = vmul.f32 %v3259_v7, %v5291_v29  ;;  %v3277_v27 = vmul.f32 %v3259_v7, %v5297_v0 }
 0xb30   : > { %v5572_v58 = vmov %v5355_v8  ;;  %v5573_v63 = vmov %v5357_v9  ;;  %v5574_v22 = vmov %v5359_v14  ;;  %v5575_v21 = vmov %v5361_v15 }
 0xb31   : > { %v5576_v30 = vmov %v5363_v2  ;;  %v5367_v14 = vadd.f32 %v3266_v56, %v2520_v50   ;;  %v5369_v15 = vadd.f32 %v3267_v13, %v2521_v49   ;;  %v3278_v25 = vmul.f32 %v3259_v7, %v5295_v32 }
 0xb32   : > { %v3279_v5 = vmul.f32 %v3259_v7, %v5301_v38  ;;  %v3280_v57 = vmul.f32 %v3259_v7, %v3068_v6  ;;  %v5376_v62 = vsub.f32 %v5140_v48, %v3276_v28   ;;  %v5379_v16 = vsub.f32 %v5143_v45, %v3277_v27  }
 0xb33   : > { %v5577_v31 = vmov %v5367_v14  ;;  %v5578_v1 = vmov %v5369_v15  ;;  %v5382_v18 = vsub.f32 %v5146_v55, %v3278_v25   ;;  %v3281_v35 = vmul.f32 %v3259_v7, %v3070_v33 }
 0xb34   : > { %v5385_v54 = vsub.f32 %v5150_v43, %v3279_v5   ;;  %v3292_v0 = vmul.f32 %v5376_v62, %v5376_v62  ;;  %v3293_v32 = vmul.f32 %v5379_v16, %v5379_v16  ;;  %v3282_v38 = vmul.f32 %v3259_v7, %v5312_v46 }
 0xb35   : > { %v5393_v48 = vsub.f32 %v5158_v17, %v3280_v57   ;;  %v3294_v45 = vmul.f32 %v5382_v18, %v5382_v18  ;;  %v3283_v6 = vmul.f32 %v3259_v7, %v5315_v19  ;;  %v3289_v2 = vsub.f32 %v5164_v26, %v3281_v35   ;;  %v3879_v26 = vpop.eup %3878 }
 0xb36   : > { %v5579_v29 = vmov %v5385_v54  ;;  %v3300_v55 = vadd.f32 %v3293_v32, %v3292_v0  ;;  %v3290_v28 = vsub.f32 %v5169_v59, %v3282_v38   ;;  %v5588_v15 = vmov %v5578_v1 }
 0xb37   : > { %v3295_v43 = vmul.f32 %v5579_v29, %v5579_v29  ;;  %v3296_v46 = vmul.f32 %v5393_v48, %v5393_v48  ;;  %v3291_v47 = vsub.f32 %v5174_v20, %v3283_v6   ;;  %v3297_v53 = vmul.f32 %v3289_v2, %v3289_v2 }
 0xb38   : > { %v3301_v33 = vadd.f32 %v3300_v55, %v3294_v45  ;;  %v3298_v44 = vmul.f32 %v3290_v28, %v3290_v28  ;;  %v5589_v14 = vmov %v5577_v31 }
 0xb39   : > { %v3299_v19 = vmul.f32 %v3291_v47, %v3291_v47 }
 0xb3a   : > { %v3302_v17 = vadd.f32 %v3301_v33, %v3295_v43 }
 0xb3c   : > { %v3303_v36 = vadd.f32 %v3302_v17, %v3296_v46 }
 0xb3e   : > { %v3304_v52 = vadd.f32 %v3303_v36, %v3297_v53 }
 0xb40   : > { %v3305_v39 = vadd.f32 %v3304_v52, %v3298_v44 }
 0xb42   : > { %v3306_v3 = vadd.f32 %v3305_v39, %v3299_v19  ;;  %v5586_v19 = vmov %v5379_v16 }
 0xb44   : > { %3307 = vadd.xlane.f32.xlu1 %v3306_v3 }
 0xbd1   : > { %v3308_v51 = vpop.xlane.xlu1 %3307  }
 0xbd2   : > { %v3311_v59 = vmul.f32 %v3879_v26, %v3308_v51  ;;  %v3330_v50 = vrot.slane %v3308_v51, 4  ;;  %v5585_v26 = vmov %v5579_v29 }
 0xbd4   : > { %v3312_v49 = vsel %vm3309_vm3, %v3311_v59, 0.0  ;;  %v3331_v7 = vmax.f32 %v3308_v51, %v3330_v50 }
 0xbd5   : > { %v3313_v20 = vmul.f32 %v3312_v49, %v5199_v37  ;;  %v3314_v8 = vmul.f32 %v3312_v49, %v5196_v34  ;;  %v3315_v9 = vmul.f32 %v3312_v49, %v5227_v40  ;;  %v3316_v10 = vmul.f32 %v3312_v49, %v5202_v4 }
 0xbd6   : > { %v3317_v11 = vmul.f32 %v3312_v49, %v5249_v41  ;;  %v3318_v12 = vmul.f32 %v3312_v49, %v5230_v42  ;;  %v3319_v56 = vmul.f32 %v3312_v49, %v5269_v60  ;;  %v3320_v13 = vmul.f32 %v3312_v49, %v5252_v24 }
 0xbd7   : > { %v3321_v54 = vadd.f32 %v3313_v20, %v5376_v62   ;;  %v3322_v53 = vadd.f32 %v3314_v8, %v5379_v16   ;;  %v3323_v36 = vadd.f32 %v3315_v9, %v5382_v18   ;;  %v3324_v52 = vadd.f32 %v3316_v10, %v5579_v29  }
 0xbd8   : > { %v3325_v39 = vadd.f32 %v3317_v11, %v5393_v48   ;;  %v3326_v61 = vadd.f32 %v3318_v12, %v3289_v2   ;;  %v3327_v50 = vadd.f32 %v3319_v56, %v3290_v28   ;;  %v3328_v49 = vadd.f32 %v3320_v13, %v3291_v47  }
 0xbd9   : > { %v3332_v34 = vrot.slane %v3331_v7, 2  ;;  %v5584_v24 = vmov %v5393_v48  ;;  %v5587_v60 = vmov %v5376_v62  ;;  %v5590_v13 = vmov %v5365_v23 }
 0xbda   : > { %v5591_v12 = vmov %v5576_v30  ;;  %v5592_v11 = vmov %v5575_v21  ;;  %v5593_v10 = vmov %v5574_v22  ;;  %v5594_v9 = vmov %v5573_v63 }
 0xbdb   : > { %v3333_v37 = vmax.f32 %v3331_v7, %v3332_v34  ;;  %v5595_v8 = vmov %v5572_v58 }
 0xbdd   : > { %v3334_v4 = vrot.slane %v3333_v37, 1 }
 0xbdf   : > { %v3335_v40 = vmax.f32 %v3333_v37, %v3334_v4  ;;  %v5581_v37 = vmov %v3308_v51  ;;  %v5582_v51 = vmov %v3326_v61  ;;  %v5583_v61 = vmov %v3291_v47 }
 0xbe1   : > { %3588 = vpush %v3335_v40 }
 0xc12   : > { %s3589_s6 = spop %3588 }
 0xc13   : > { %p1304_p2 = scmp.ge.f32.partialorder %s3589_s6, 1e-06 }
 0xc15   : > { %p5423_p3 = pnand %p1304_p2, %p1303_p1 }
 0xc16   :  { %v5597_v3 = vmov (%p5423_p3), %v5578_v1  ;;  %v5598_v7 = vmov (%p5423_p3), %v5577_v31  ;;  %v5599_v44 = vmov (%p5423_p3), %v5365_v23  ;;  %v5600_v45 = vmov (%p5423_p3), %v5576_v30 }
 0xc17   :  { %1308 = sbr.rel (!%p5423_p3) target bundleno = 971 (0x3cb), region = 43  ;;  %v5601_v46 = vmov (%p5423_p3), %v5575_v21  ;;  %v5602_v47 = vmov (%p5423_p3), %v5574_v22  ;;  %v5603_v33 = vmov (%p5423_p3), %v5573_v63  ;;  %v5604_v48 = vmov (%p5423_p3), %v5572_v58 }
 0xc1e PF:  { %3337 = vst [vmem:[%s5555_s3] sm:$0xff] %v4664_v48  ;;  %3338 = vst [vmem:[%s5555_s3 + $0x8] sm:$0xff] %v4660_v33  ;;  %v4664_v48 = vphi %v5563_v48, %v5604_v48   ;;  %v4660_v33 = vphi %v5562_v33, %v5603_v33   ;;  %v4656_v47 = vphi %v5561_v47, %v5602_v47   ;;  %v4652_v46 = vphi %v5560_v46, %v5601_v46   ;;  %v4648_v45 = vphi %v5559_v45, %v5600_v45   ;;  %v4644_v44 = vphi %v5558_v44, %v5599_v44   ;;  %v4640_v7 = vphi %v5557_v7, %v5598_v7   ;;  %v4636_v3 = vphi %v5556_v3, %v5597_v3  }
 0xc1f   :  { %3339 = vst [vmem:[%s5555_s3 + $0x10] sm:$0xff] %v4656_v47  ;;  %3340 = vst [vmem:[%s5555_s3 + $0x18] sm:$0xff] %v4652_v46 }
 0xc20   :  { %3341 = vst [vmem:[%s5555_s3 + $0x20] sm:$0xff] %v4648_v45  ;;  %3342 = vst [vmem:[%s5555_s3 + $0x28] sm:$0xff] %v4644_v44 }
 0xc21   :  { %3343 = vst [vmem:[%s5555_s3 + $0x30] sm:$0xff] %v4640_v7  ;;  %3344 = vst [vmem:[%s5555_s3 + $0x38] sm:$0xff] %v4636_v3 }
 0xc22   :  { %3349 = vsyncmov [#allocation3] }
 0xc25   :  { %s3350_s23 = vpop.sfrf %3349 }
 0xc26   :  { %p3441_p4 = scmp.ne.s32.totalorder %s3350_s23, 0 }
 0xc28   :  { %3354 = shalt.err (%p3441_p4)  }

</bundles_post_ra>
